<compile_context>
chip_gen: v7x
topology: tpu7x:2x2x1
jax: 0.10.0
libtpu: 0.0.40
codegen_flags: <defaults>
</compile_context>

<pallas_src>
import functools

import jax
import jax.numpy as jnp
from jax import lax
from jax.experimental import pallas as pl
from jax.experimental.pallas import tpu as pltpu


# ----------------------------------------------------------------------------
# small in-kernel helpers (pure jnp, f32)
# ----------------------------------------------------------------------------
def _layer_norm(x, gamma, beta, eps=1e-5):
    """f32 LayerNorm over the last axis (PyTorch nn.LayerNorm semantics)."""
    mu = jnp.mean(x, axis=-1, keepdims=True)
    xc = x - mu
    var = jnp.mean(xc * xc, axis=-1, keepdims=True)
    return xc * lax.rsqrt(var + eps) * gamma + beta


# ----------------------------------------------------------------------------
# parameter preparation (done ONCE per model, reused by every decoder layer)
# ----------------------------------------------------------------------------
def prepare_params(p, *, compute_dtype=jnp.bfloat16):
    """Cast weight matrices to the MXU compute dtype and reshape biases / LN
    params to (1, dim) once, so the per-layer wrappers do not emit extra HBM
    cast passes on every forward call."""
    cdt = compute_dtype
    f32 = jnp.float32
    dim = p["wq"].shape[0]
    ffn_dim = p["w_ff1"].shape[1]
    out = {"_prepared": True}
    for i in (1, 2, 3, 4):
        out[f"ln{i}_g"] = p[f"ln{i}_g"].reshape(1, dim).astype(f32)
        out[f"ln{i}_b"] = p[f"ln{i}_b"].reshape(1, dim).astype(f32)
    out["wq"], out["bq"] = p["wq"].astype(cdt), p["bq"].reshape(1, dim).astype(f32)
    out["wkv"], out["bkv"] = p["wkv"].astype(cdt), p["bkv"].reshape(1, 2 * dim).astype(f32)
    out["wp"], out["bp"] = p["wp"].astype(cdt), p["bp"].reshape(1, dim).astype(f32)
    out["w_in"], out["b_in"] = p["w_in"].astype(cdt), p["b_in"].reshape(1, 3 * dim).astype(f32)
    out["w_out"], out["b_out"] = p["w_out"].astype(cdt), p["b_out"].reshape(1, dim).astype(f32)
    out["w_ff1"], out["b_ff1"] = p["w_ff1"].astype(cdt), p["b_ff1"].reshape(1, ffn_dim).astype(f32)
    out["w_ff2"], out["b_ff2"] = p["w_ff2"].astype(cdt), p["b_ff2"].reshape(1, dim).astype(f32)
    return out


# ----------------------------------------------------------------------------
# Kernel A: LN1 + masked cross-attention (online softmax over context tiles)
#           + output projection + residual
# ----------------------------------------------------------------------------
def _masked_cross_attn_kernel(
        tile_valid_ref,                                              # scalar prefetch (SMEM)
        x_ref, ctx_ref, mask_ref,
        ln1_g_ref, ln1_b_ref, wq_ref, bq_ref, wkv_ref, bkv_ref, wp_ref, bp_ref,
        o_ref,
        q_sc, m_sc, l_sc, acc_sc,
        *, num_heads, scale, compute_dtype):
    kv_idx = pl.program_id(2)
    dim = x_ref.shape[2]
    d = dim // num_heads
    cdt = compute_dtype
    neg_inf = jnp.float32(-jnp.inf)
    approx = jnp.dtype(cdt) != jnp.dtype(jnp.float32)

    # ---- once per (batch, query tile): LN1 + single dense Q projection,
    #      stored in its NATURAL (tn, dim) layout (one lane-dense store).
    @pl.when(kv_idx == 0)
    def _init():
        xn = _layer_norm(x_ref[0].astype(jnp.float32), ln1_g_ref[...], ln1_b_ref[...])
        q = jnp.dot(xn.astype(cdt), wq_ref[...],
                    preferred_element_type=jnp.float32) + bq_ref[...]      # (tn, D) f32
        q_sc[...] = (q * scale).astype(cdt)
        m_sc[...] = jnp.full(m_sc.shape, neg_inf, jnp.float32)
        l_sc[...] = jnp.zeros(l_sc.shape, jnp.float32)
        acc_sc[...] = jnp.zeros(acc_sc.shape, jnp.float32)

    # ---- skip entirely-masked (query-tile, context-tile) blocks.
    flat = (pl.program_id(0) * pl.num_programs(1) + pl.program_id(1)) \
        * pl.num_programs(2) + kv_idx

    @pl.when(tile_valid_ref[flat] != 0)
    def _tile():
        # single fused KV projection for this context tile (full-width MXU matmul)
        kv = jnp.dot(ctx_ref[0].astype(cdt), wkv_ref[...],
                     preferred_element_type=jnp.float32) + bkv_ref[...]    # (tm, 2D) f32
        kv = kv.astype(cdt)
        valid = mask_ref[0] != 0                                           # (tn, tm) bool

        # per-head online-softmax update.  K/V per head are lane-slice *reads*
        # of the kv value (no head-major relayout / masked scratch stores).
        for h in range(num_heads):
            lo, hi = h * d, (h + 1) * d
            q_h = q_sc[:, lo:hi]                                           # (tn, d) cdt
            k_h = kv[:, lo:hi]                                             # (tm, d) cdt
            v_h = kv[:, dim + lo: dim + hi]                                # (tm, d) cdt
            dots = lax.dot_general(q_h, k_h, (((1,), (1,)), ((), ())),
                                   preferred_element_type=jnp.float32)     # (tn, tm)
            dots = jnp.where(valid, dots, neg_inf)
            m_prev = m_sc[h]                                               # (tn, 1)
            m_new = jnp.maximum(m_prev, jnp.max(dots, axis=-1, keepdims=True))
            # rows fully masked so far keep m == -inf; subtract 0 there -> NaN-free
            m_safe = jnp.where(m_new == neg_inf, jnp.float32(0.0), m_new)
            alpha = jnp.exp(m_prev - m_safe)
            # exp runs at the compute dtype (bf16 on MXU path) -- EUP/vreg win;
            # the running sum / accumulator stay f32.
            p = jnp.exp((dots - m_safe).astype(cdt))                       # (tn, tm) cdt
            l_sc[h] = alpha * l_sc[h] + jnp.sum(p, axis=-1, keepdims=True,
                                                dtype=jnp.float32)
            pv = lax.dot_general(p, v_h, (((1,), (0,)), ((), ())),
                                 preferred_element_type=jnp.float32)       # (tn, d)
            acc_sc[h] = alpha * acc_sc[h] + pv
            m_sc[h] = m_new

    # ---- last context tile: normalize + output projection (accumulated from
    #      per-head row-slices of Wp; no merged-head scratch) + residual.
    @pl.when(kv_idx == pl.num_programs(2) - 1)
    def _finalize():
        out = x_ref[0].astype(jnp.float32) + bp_ref[...]
        for h in range(num_heads):
            lo, hi = h * d, (h + 1) * d
            l_h = l_sc[h]
            # fully-masked rows (l == 0) output 0 (PyTorch would produce NaN).
            inv = jnp.where(l_h > 0.0, pl.reciprocal(l_h, approx=approx),
                            jnp.float32(0.0))
            o_h = (acc_sc[h] * inv).astype(cdt)                            # (tn, d)
            out = out + jnp.dot(o_h, wp_ref[lo:hi, :],
                                preferred_element_type=jnp.float32)        # (tn, D)
        o_ref[0] = out.astype(o_ref.dtype)


def masked_cross_attention(x, context, mask_i8, p, *, num_heads,
                           block_q=128, block_kv=1024,
                           compute_dtype=jnp.bfloat16,
                           vmem_limit_bytes=48 * 1024 * 1024):
    b, n, dim = x.shape
    m = context.shape[1]
    d = dim // num_heads
    scale = float(d) ** -0.5
    cdt = compute_dtype

    tn = block_q if n % block_q == 0 else n
    # context tile: multiple of 128, never larger than block_kv, pad M up to it
    # (no full-extent fallback -> no VMEM cliff at production M ~ 16k).
    tm = min(block_kv, pl.cdiv(m, 128) * 128)
    m_pad = pl.cdiv(m, tm) * tm
    if m_pad != m:
        # TODO(synk): multi-layer callers should pad context/mask once per forward.
        context = jnp.pad(context, ((0, 0), (0, m_pad - m), (0, 0)))
        mask_i8 = jnp.pad(mask_i8, ((0, 0), (0, 0), (0, m_pad - m)))
    nq, nk = n // tn, m_pad // tm

    # per-(batch, query-tile, context-tile) "any valid position" table -> SMEM.
    tile_valid = jnp.any(mask_i8.reshape(b, nq, tn, nk, tm) != 0,
                         axis=(2, 4)).astype(jnp.int32).reshape(-1)

    kernel = functools.partial(_masked_cross_attn_kernel, num_heads=num_heads,
                               scale=scale, compute_dtype=cdt)
    wfull = lambda bb, qi, ki, tv: (0, 0)

    return pl.pallas_call(
        kernel,
        out_shape=jax.ShapeDtypeStruct((b, n, dim), x.dtype),
        grid_spec=pltpu.PrefetchScalarGridSpec(
            num_scalar_prefetch=1,
            grid=(b, nq, nk),
            in_specs=[
                pl.BlockSpec((1, tn, dim), lambda bb, qi, ki, tv: (bb, qi, 0)),   # x
                pl.BlockSpec((1, tm, dim), lambda bb, qi, ki, tv: (bb, ki, 0)),   # context
                pl.BlockSpec((1, tn, tm), lambda bb, qi, ki, tv: (bb, qi, ki)),   # mask int8
                pl.BlockSpec((1, dim), wfull),        # LN1 gamma
                pl.BlockSpec((1, dim), wfull),        # LN1 beta
                pl.BlockSpec((dim, dim), wfull),      # Wq
                pl.BlockSpec((1, dim), wfull),        # bq
                pl.BlockSpec((dim, 2 * dim), wfull),  # Wkv
                pl.BlockSpec((1, 2 * dim), wfull),    # bkv
                pl.BlockSpec((dim, dim), wfull),      # Wp
                pl.BlockSpec((1, dim), wfull),        # bp
            ],
            out_specs=pl.BlockSpec((1, tn, dim), lambda bb, qi, ki, tv: (bb, qi, 0)),
            scratch_shapes=[
                pltpu.VMEM((tn, dim), cdt),                       # q (natural layout)
                pltpu.VMEM((num_heads, tn, 1), jnp.float32),      # running max
                pltpu.VMEM((num_heads, tn, 1), jnp.float32),      # running sum
                pltpu.VMEM((num_heads, tn, d), jnp.float32),      # output accumulator
            ],
        ),
        compiler_params=pltpu.CompilerParams(
            dimension_semantics=("parallel", "parallel", "arbitrary"),
            vmem_limit_bytes=vmem_limit_bytes),
    )(tile_valid, x, context, mask_i8,
      p["ln1_g"], p["ln1_b"], p["wq"], p["bq"], p["wkv"], p["bkv"], p["wp"], p["bp"])


# ----------------------------------------------------------------------------
# Kernel B: LN2 + self-attention + residual, LN3 + FFN + residual, LN4
#           (block_b batch elements per grid step)
# ----------------------------------------------------------------------------
def _self_attn_ffn_kernel(
        y_ref,
        ln2_g_ref, ln2_b_ref, win_ref, bin_ref, wo_ref, bo_ref,
        ln3_g_ref, ln3_b_ref, w1_ref, b1_ref, w2_ref, b2_ref,
        ln4_g_ref, ln4_b_ref,
        o_ref,
        *, num_heads, scale, compute_dtype):
    blk_b, n, dim = y_ref.shape
    d = dim // num_heads
    cdt = compute_dtype
    approx = jnp.dtype(cdt) != jnp.dtype(jnp.float32)
    rows = blk_b * n

    y = y_ref[...].astype(jnp.float32).reshape(rows, dim)

    # ---- self-attention (pre-norm LN2) + residual
    # TODO(synk): nn.MultiheadAttention defaults to batch_first=False, so the PyTorch
    # code as written would attend across the batch axis; implemented here as the
    # intended per-batch self-attention over the n query tokens.
    hx = _layer_norm(y, ln2_g_ref[...], ln2_b_ref[...])
    qkv = jnp.dot(hx.astype(cdt), win_ref[...],
                  preferred_element_type=jnp.float32) + bin_ref[...]       # (rows, 3D) f32
    sa_rows = []
    for bi in range(blk_b):
        r0 = bi * n
        sa_bi = None
        for h in range(num_heads):
            lo, hi = h * d, (h + 1) * d
            q_h = (qkv[r0:r0 + n, lo:hi] * scale).astype(cdt)
            k_h = qkv[r0:r0 + n, dim + lo: dim + hi].astype(cdt)
            v_h = qkv[r0:r0 + n, 2 * dim + lo: 2 * dim + hi].astype(cdt)
            dots = lax.dot_general(q_h, k_h, (((1,), (1,)), ((), ())),
                                   preferred_element_type=jnp.float32)     # (n, n)
            dots = dots - jnp.max(dots, axis=-1, keepdims=True)
            pr = jnp.exp(dots)
            pr = pr * pl.reciprocal(jnp.sum(pr, axis=-1, keepdims=True), approx=approx)
            attn = lax.dot_general(pr.astype(cdt), v_h, (((1,), (0,)), ((), ())),
                                   preferred_element_type=jnp.float32)     # (n, d)
            contrib = jnp.dot(attn.astype(cdt), wo_ref[lo:hi, :],
                              preferred_element_type=jnp.float32)          # (n, D)
            sa_bi = contrib if sa_bi is None else sa_bi + contrib
        sa_rows.append(sa_bi)
    sa = sa_rows[0] if blk_b == 1 else jnp.concatenate(sa_rows, axis=0)
    y = y + sa + bo_ref[...]

    # ---- feed-forward (pre-norm LN3) + residual
    h2 = _layer_norm(y, ln3_g_ref[...], ln3_b_ref[...])
    f = jnp.dot(h2.astype(cdt), w1_ref[...],
                preferred_element_type=jnp.float32) + b1_ref[...]
    # TODO(synk): PyTorch nn.GELU() is exact (erf); tanh approximation (EUP-friendly) used here.
    f = jax.nn.gelu(f, approximate=True)
    f = jnp.dot(f.astype(cdt), w2_ref[...],
                preferred_element_type=jnp.float32) + b2_ref[...]
    y = y + f

    # ---- final LN4 (all Dropout layers are identity at inference / dropout=0)
    out = _layer_norm(y, ln4_g_ref[...], ln4_b_ref[...])
    o_ref[...] = out.reshape(blk_b, n, dim).astype(o_ref.dtype)


def self_attention_ffn(y, p, *, num_heads, block_b=2, compute_dtype=jnp.bfloat16,
                       vmem_limit_bytes=32 * 1024 * 1024):
    b, n, dim = y.shape
    ffn_dim = p["w_ff1"].shape[1]
    d = dim // num_heads
    scale = float(d) ** -0.5
    cdt = compute_dtype

    if n % 8 != 0:
        block_b = 1  # keep the in-kernel (block_b*n, dim) flatten layout-preserving
    block_b = max(bb for bb in range(1, min(block_b, b) + 1) if b % bb == 0)

    kernel = functools.partial(_self_attn_ffn_kernel, num_heads=num_heads,
                               scale=scale, compute_dtype=cdt)
    wfull = lambda bb: (0, 0)

    return pl.pallas_call(
        kernel,
        out_shape=jax.ShapeDtypeStruct((b, n, dim), y.dtype),
        grid_spec=pltpu.PrefetchScalarGridSpec(
            num_scalar_prefetch=0,
            grid=(b // block_b,),
            in_specs=[
                pl.BlockSpec((block_b, n, dim), lambda bb: (bb, 0, 0)),                  # y
                pl.BlockSpec((1, dim), wfull), pl.BlockSpec((1, dim), wfull),            # LN2
                pl.BlockSpec((dim, 3 * dim), wfull), pl.BlockSpec((1, 3 * dim), wfull),  # in_proj
                pl.BlockSpec((dim, dim), wfull), pl.BlockSpec((1, dim), wfull),          # out_proj
                pl.BlockSpec((1, dim), wfull), pl.BlockSpec((1, dim), wfull),            # LN3
                pl.BlockSpec((dim, ffn_dim), wfull), pl.BlockSpec((1, ffn_dim), wfull),  # FFN 1
                pl.BlockSpec((ffn_dim, dim), wfull), pl.BlockSpec((1, dim), wfull),      # FFN 2
                pl.BlockSpec((1, dim), wfull), pl.BlockSpec((1, dim), wfull),            # LN4
            ],
            out_specs=pl.BlockSpec((block_b, n, dim), lambda bb: (bb, 0, 0)),
        ),
        compiler_params=pltpu.CompilerParams(
            dimension_semantics=("parallel",),
            vmem_limit_bytes=vmem_limit_bytes),
    )(y,
      p["ln2_g"], p["ln2_b"], p["w_in"], p["b_in"], p["w_out"], p["b_out"],
      p["ln3_g"], p["ln3_b"], p["w_ff1"], p["b_ff1"], p["w_ff2"], p["b_ff2"],
      p["ln4_g"], p["ln4_b"])


# ----------------------------------------------------------------------------
# Full decoder layer
# ----------------------------------------------------------------------------
def mask2former_decoder_layer(x, context, mask, params, *, num_heads,
                              block_q=128, block_kv=1024, block_b=2,
                              compute_dtype=jnp.bfloat16):
    b, n, _ = x.shape
    if not params.get("_prepared", False):
        # one-off cast; multi-layer callers should call prepare_params() once and reuse.
        params = prepare_params(params, compute_dtype=compute_dtype)
    if mask.ndim == 3 and mask.dtype == jnp.int8:
        mask_i8 = mask
    else:
        # mask.flatten(2, 3); 0 => masked out. int8 cuts its HBM traffic 4x vs f32.
        # TODO(synk): compute once per forward pass and share across decoder layers.
        mask_i8 = (mask.reshape(b, n, -1) != 0).astype(jnp.int8)
    y = masked_cross_attention(x, context, mask_i8, params, num_heads=num_heads,
                               block_q=block_q, block_kv=block_kv,
                               compute_dtype=compute_dtype)
    return self_attention_ffn(y, params, num_heads=num_heads, block_b=block_b,
                              compute_dtype=compute_dtype)


# ----------------------------------------------------------------------------
# Pure-JAX reference (f32, highest matmul precision) of the PyTorch forward
# ----------------------------------------------------------------------------
def decoder_layer_reference(x, context, mask, p, *, num_heads):
    def ln(v, g, b, eps=1e-5):
        mu = v.mean(-1, keepdims=True)
        var = ((v - mu) ** 2).mean(-1, keepdims=True)
        return (v - mu) / jnp.sqrt(var + eps) * g + b

    with jax.default_matmul_precision("float32"):
        b_, n, dim = x.shape
        m = context.shape[1]
        h_ = num_heads
        d = dim // h_
        scale = float(d) ** -0.5

        # masked cross-attention + residual
        hx = ln(x, p["ln1_g"], p["ln1_b"])
        q = hx @ p["wq"] + p["bq"]
        kv = context @ p["wkv"] + p["bkv"]
        q = q.reshape(b_, n, h_, d).transpose(0, 2, 1, 3)
        kvr = kv.reshape(b_, m, 2, h_, d).transpose(2, 0, 3, 1, 4)
        k, v = kvr[0], kvr[1]
        dots = jnp.einsum("bhnd,bhmd->bhnm", q, k) * scale
        maskf = mask.reshape(b_, n, m)[:, None]
        dots = jnp.where(maskf == 0, -jnp.inf, dots)
        attn = jax.nn.softmax(dots, axis=-1)
        out = jnp.einsum("bhnm,bhmd->bhnd", attn, v)
        out = out.transpose(0, 2, 1, 3).reshape(b_, n, dim)
        x = x + (out @ p["wp"] + p["bp"])

        # self-attention + residual
        hx = ln(x, p["ln2_g"], p["ln2_b"])
        qkv = hx @ p["w_in"] + p["b_in"]
        q, k, v = qkv[..., :dim], qkv[..., dim:2 * dim], qkv[..., 2 * dim:]
        q = q.reshape(b_, n, h_, d).transpose(0, 2, 1, 3) * scale
        k = k.reshape(b_, n, h_, d).transpose(0, 2, 1, 3)
        v = v.reshape(b_, n, h_, d).transpose(0, 2, 1, 3)
        dots = jnp.einsum("bhnd,bhmd->bhnm", q, k)
        attn = jax.nn.softmax(dots, axis=-1)
        out = jnp.einsum("bhnm,bhmd->bhnd", attn, v)
        out = out.transpose(0, 2, 1, 3).reshape(b_, n, dim)
        x = x + (out @ p["w_out"] + p["b_out"])

        # feed-forward + residual
        hx = ln(x, p["ln3_g"], p["ln3_b"])
        f = jax.nn.gelu(hx @ p["w_ff1"] + p["b_ff1"], approximate=True)
        x = x + (f @ p["w_ff2"] + p["b_ff2"])

        return ln(x, p["ln4_g"], p["ln4_b"])


def init_params(key, dim, ffn_dim):
    keys = iter(jax.random.split(key, 24))

    def linear(fan_in, fan_out):
        w = jax.random.normal(next(keys), (fan_in, fan_out), jnp.float32) / float(fan_in) ** 0.5
        b = 0.02 * jax.random.normal(next(keys), (fan_out,), jnp.float32)
        return w, b

    p = {}
    p["wq"], p["bq"] = linear(dim, dim)
    p["wkv"], p["bkv"] = linear(dim, 2 * dim)
    p["wp"], p["bp"] = linear(dim, dim)
    p["w_in"], p["b_in"] = linear(dim, 3 * dim)
    p["w_out"], p["b_out"] = linear(dim, dim)
    p["w_ff1"], p["b_ff1"] = linear(dim, ffn_dim)
    p["w_ff2"], p["b_ff2"] = linear(ffn_dim, dim)
    for i in (1, 2, 3, 4):
        p[f"ln{i}_g"] = 1.0 + 0.1 * jax.random.normal(next(keys), (dim,), jnp.float32)
        p[f"ln{i}_b"] = 0.1 * jax.random.normal(next(keys), (dim,), jnp.float32)
    return p


if __name__ == "__main__":
    B, N, DIM, HEADS = 2, 8, 128, 8
    FFN_DIM = 256
    MH, MW = 16, 15                     # mask spatial dims -> context length M = 240
    M = MH * MW                         # padded to 256 inside the kernel wrapper

    root = jax.random.PRNGKey(0)
    params = init_params(root, DIM, FFN_DIM)

    kx, kc, km = jax.random.split(jax.random.fold_in(root, 1), 3)
    x = jax.random.normal(kx, (B, N, DIM), jnp.float32)
    context = jax.random.normal(kc, (B, M, DIM), jnp.float32)
    mask = (jax.random.uniform(km, (B, N, MH, MW)) > 0.3).astype(jnp.float32)
    # batch 0: context positions >= 120 fully masked -> the 2nd context tile is
    # skipped via the tile-valid table (exercises the skip path).
    mask = mask.at[0, :, 8:, :].set(0.0)
    # keep at least one valid context position per query row (a fully-masked row
    # is NaN in the PyTorch module as well)
    mask = mask.at[:, :, 0, 0].set(1.0)

    ref = decoder_layer_reference(x, context, mask, params, num_heads=HEADS)

    # f32-compute path; block_kv=128 -> two context tiles (one padded + one skipped
    # for batch 0), exercising the online-softmax pipeline, padding and skipping.
    prep32 = prepare_params(params, compute_dtype=jnp.float32)
    out_f32 = mask2former_decoder_layer(
        x, context, mask, prep32, num_heads=HEADS,
        block_kv=128, compute_dtype=jnp.float32)
    out_f32 = jax.block_until_ready(out_f32)
    assert out_f32.shape == (B, N, DIM)
    err32 = float(jnp.max(jnp.abs(out_f32 - ref)))
    assert jnp.allclose(out_f32, ref, atol=5e-2, rtol=5e-2), f"f32 path max err {err32}"

    # bf16 MXU path (production config): context cast to bf16 ONCE per forward
    # (shared by all decoder layers), weights prepared once; looser tolerance
    # for bf16 rounding + bf16 softmax probabilities.
    prep16 = prepare_params(params, compute_dtype=jnp.bfloat16)
    ctx_bf16 = context.astype(jnp.bfloat16)
    out_bf16 = mask2former_decoder_layer(
        x, ctx_bf16, mask, prep16, num_heads=HEADS,
        block_kv=128, compute_dtype=jnp.bfloat16)
    out_bf16 = jax.block_until_ready(out_bf16)
    err16 = float(jnp.max(jnp.abs(out_bf16 - ref)))
    assert jnp.allclose(out_bf16, ref, atol=1e-1, rtol=1e-1), f"bf16 path max err {err16}"

    print("KERNEL_OK")
</pallas_src>

<mosaic_0001>
module attributes {stable_mosaic.version = 11 : i64} {
  func.func @_masked_cross_attn_kernel(%arg0: i32, %arg1: i32, %arg2: i32, %arg3: memref<4xi32, #tpu.memory_space<smem>>, %arg4: memref<1x8x128xf32, #tpu.memory_space<vmem>>, %arg5: memref<1x128x128xf32, #tpu.memory_space<vmem>>, %arg6: memref<1x8x128xi8, #tpu.memory_space<vmem>>, %arg7: memref<1x128xf32, #tpu.memory_space<vmem>>, %arg8: memref<1x128xf32, #tpu.memory_space<vmem>>, %arg9: memref<128x128xf32, #tpu.memory_space<vmem>>, %arg10: memref<1x128xf32, #tpu.memory_space<vmem>>, %arg11: memref<128x256xf32, #tpu.memory_space<vmem>>, %arg12: memref<1x256xf32, #tpu.memory_space<vmem>>, %arg13: memref<128x128xf32, #tpu.memory_space<vmem>>, %arg14: memref<1x128xf32, #tpu.memory_space<vmem>>, %arg15: memref<1x8x128xf32, #tpu.memory_space<vmem>>, %arg16: memref<8x128xf32, #tpu.memory_space<vmem>>, %arg17: memref<8x8x1xf32, #tpu.memory_space<vmem>>, %arg18: memref<8x8x1xf32, #tpu.memory_space<vmem>>, %arg19: memref<8x8x16xf32, #tpu.memory_space<vmem>>) attributes {dimension_semantics = [#tpu.dimension_semantics<parallel>, #tpu.dimension_semantics<parallel>, #tpu.dimension_semantics<arbitrary>], iteration_bounds = array<i64: 2, 1, 2>, scalar_prefetch = 1 : i64, scratch_operands = 4 : i64, tpu.core_type = #tpu.core_type<tc>, window_params = [{transform_indices = @transform_0, window_bounds = array<i64: 1, 8, 128>}, {transform_indices = @transform_1, window_bounds = array<i64: 1, 128, 128>}, {transform_indices = @transform_2, window_bounds = array<i64: 1, 8, 128>}, {pipeline_mode = #tpu.pipeline_mode<synchronous>, transform_indices = @transform_3, window_bounds = array<i64: 1, 128>}, {pipeline_mode = #tpu.pipeline_mode<synchronous>, transform_indices = @transform_4, window_bounds = array<i64: 1, 128>}, {pipeline_mode = #tpu.pipeline_mode<synchronous>, transform_indices = @transform_5, window_bounds = array<i64: 128, 128>}, {pipeline_mode = #tpu.pipeline_mode<synchronous>, transform_indices = @transform_6, window_bounds = array<i64: 1, 128>}, {pipeline_mode = #tpu.pipeline_mode<synchronous>, transform_indices = @transform_7, window_bounds = array<i64: 128, 256>}, {pipeline_mode = #tpu.pipeline_mode<synchronous>, transform_indices = @transform_8, window_bounds = array<i64: 1, 256>}, {pipeline_mode = #tpu.pipeline_mode<synchronous>, transform_indices = @transform_9, window_bounds = array<i64: 128, 128>}, {pipeline_mode = #tpu.pipeline_mode<synchronous>, transform_indices = @transform_10, window_bounds = array<i64: 1, 128>}, {transform_indices = @transform_11, window_bounds = array<i64: 1, 8, 128>}]} {
    %c0_i32 = arith.constant 0 : i32
    %0 = arith.cmpi eq, %arg2, %c0_i32 : i32
    %1 = arith.extui %0 : i1 to i32
    %cst = arith.constant 0xFF800000 : f32
    %c0_i32_0 = arith.constant 0 : i32
    %2 = arith.cmpi ne, %1, %c0_i32_0 : i32
    scf.if %2 {
      %c0 = arith.constant 0 : index
      %c0_6 = arith.constant 0 : index
      %c0_7 = arith.constant 0 : index
      %15 = vector.load %arg4[%c0, %c0_6, %c0_7] : memref<1x8x128xf32, #tpu.memory_space<vmem>>, vector<1x8x128xf32>
      %16 = vector.shape_cast %15 : vector<1x8x128xf32> to vector<8x128xf32>
      %c0_8 = arith.constant 0 : index
      %c0_9 = arith.constant 0 : index
      %17 = vector.load %arg7[%c0_8, %c0_9] : memref<1x128xf32, #tpu.memory_space<vmem>>, vector<1x128xf32>
      %c0_10 = arith.constant 0 : index
      %c0_11 = arith.constant 0 : index
      %18 = vector.load %arg8[%c0_10, %c0_11] : memref<1x128xf32, #tpu.memory_space<vmem>>, vector<1x128xf32>
      %cst_12 = arith.constant dense<0.000000e+00> : vector<8xf32>
      %19 = vector.multi_reduction <add>, %16, %cst_12 [1] : vector<8x128xf32> to vector<8xf32>
      %20 = vector.shape_cast %19 : vector<8xf32> to vector<8x1xf32>
      %cst_13 = arith.constant 1.280000e+02 : f32
      %21 = vector.broadcast %cst_13 : f32 to vector<8x1xf32>
      %22 = arith.divf %20, %21 : vector<8x1xf32>
      %23 = vector.broadcast %22 : vector<8x1xf32> to vector<8x128xf32>
      %24 = arith.subf %16, %23 : vector<8x128xf32>
      %25 = arith.mulf %24, %24 : vector<8x128xf32>
      %cst_14 = arith.constant dense<0.000000e+00> : vector<8xf32>
      %26 = vector.multi_reduction <add>, %25, %cst_14 [1] : vector<8x128xf32> to vector<8xf32>
      %27 = vector.shape_cast %26 : vector<8xf32> to vector<8x1xf32>
      %cst_15 = arith.constant 1.280000e+02 : f32
      %28 = vector.broadcast %cst_15 : f32 to vector<8x1xf32>
      %29 = arith.divf %27, %28 : vector<8x1xf32>
      %cst_16 = arith.constant 9.99999974E-6 : f32
      %30 = vector.broadcast %cst_16 : f32 to vector<8x1xf32>
      %31 = arith.addf %29, %30 : vector<8x1xf32>
      %32 = math.rsqrt %31 : vector<8x1xf32>
      %33 = vector.broadcast %32 : vector<8x1xf32> to vector<8x128xf32>
      %34 = arith.mulf %24, %33 : vector<8x128xf32>
      %35 = vector.broadcast %17 : vector<1x128xf32> to vector<8x128xf32>
      %36 = arith.mulf %34, %35 : vector<8x128xf32>
      %37 = vector.broadcast %18 : vector<1x128xf32> to vector<8x128xf32>
      %38 = arith.addf %36, %37 : vector<8x128xf32>
      %c0_17 = arith.constant 0 : index
      %c0_18 = arith.constant 0 : index
      %39 = vector.load %arg9[%c0_17, %c0_18] : memref<128x128xf32, #tpu.memory_space<vmem>>, vector<128x128xf32>
      %cst_19 = arith.constant dense<0.000000e+00> : vector<8x128xf32>
      %40 = tpu.matmul %38, %39, %cst_19 {dimension_numbers = #tpu.dot_dimension_numbers<[1], [0], [0], [1], [0, 0, 1, 1], [], []>} : vector<8x128xf32>, vector<128x128xf32>, vector<8x128xf32> -> vector<8x128xf32>
      %c0_20 = arith.constant 0 : index
      %c0_21 = arith.constant 0 : index
      %41 = vector.load %arg10[%c0_20, %c0_21] : memref<1x128xf32, #tpu.memory_space<vmem>>, vector<1x128xf32>
      %42 = vector.broadcast %41 : vector<1x128xf32> to vector<8x128xf32>
      %43 = arith.addf %40, %42 : vector<8x128xf32>
      %cst_22 = arith.constant 2.500000e-01 : f32
      %44 = vector.broadcast %cst_22 : f32 to vector<8x128xf32>
      %45 = arith.mulf %43, %44 : vector<8x128xf32>
      %c0_23 = arith.constant 0 : index
      %c0_24 = arith.constant 0 : index
      %46 = vector.load %arg16[%c0_23, %c0_24] : memref<8x128xf32, #tpu.memory_space<vmem>>, vector<8x128xf32>
      tpu.vector_store %arg16[%c0_23, %c0_24], %45 {strides = array<i32>} : memref<8x128xf32, #tpu.memory_space<vmem>>, vector<8x128xf32>,
      %47 = vector.broadcast %cst : f32 to vector<8x8x1xf32>
      %c0_25 = arith.constant 0 : index
      %c0_26 = arith.constant 0 : index
      %c0_27 = arith.constant 0 : index
      %48 = vector.load %arg17[%c0_25, %c0_26, %c0_27] : memref<8x8x1xf32, #tpu.memory_space<vmem>>, vector<8x8x1xf32>
      tpu.vector_store %arg17[%c0_25, %c0_26, %c0_27], %47 {strides = array<i32>} : memref<8x8x1xf32, #tpu.memory_space<vmem>>, vector<8x8x1xf32>,
      %cst_28 = arith.constant 0.000000e+00 : f32
      %49 = vector.broadcast %cst_28 : f32 to vector<8x8x1xf32>
      %c0_29 = arith.constant 0 : index
      %c0_30 = arith.constant 0 : index
      %c0_31 = arith.constant 0 : index
      %50 = vector.load %arg18[%c0_29, %c0_30, %c0_31] : memref<8x8x1xf32, #tpu.memory_space<vmem>>, vector<8x8x1xf32>
      tpu.vector_store %arg18[%c0_29, %c0_30, %c0_31], %49 {strides = array<i32>} : memref<8x8x1xf32, #tpu.memory_space<vmem>>, vector<8x8x1xf32>,
      %cst_32 = arith.constant 0.000000e+00 : f32
      %51 = vector.broadcast %cst_32 : f32 to vector<8x8x16xf32>
      %c0_33 = arith.constant 0 : index
      %c0_34 = arith.constant 0 : index
      %c0_35 = arith.constant 0 : index
      %52 = vector.load %arg19[%c0_33, %c0_34, %c0_35] : memref<8x8x16xf32, #tpu.memory_space<vmem>>, vector<8x8x16xf32>
      tpu.vector_store %arg19[%c0_33, %c0_34, %c0_35], %51 {strides = array<i32>} : memref<8x8x16xf32, #tpu.memory_space<vmem>>, vector<8x8x16xf32>,
    } else {
    }
    %c1_i32 = arith.constant 1 : i32
    %3 = arith.muli %arg0, %c1_i32 : i32
    %4 = arith.addi %3, %arg1 : i32
    %c2_i32 = arith.constant 2 : i32
    %5 = arith.muli %4, %c2_i32 : i32
    %6 = arith.addi %5, %arg2 : i32
    %7 = arith.index_cast %6 : i32 to index
    %8 = memref.load %arg3[%7] : memref<4xi32, #tpu.memory_space<smem>>
    %c0_i32_1 = arith.constant 0 : i32
    %9 = arith.cmpi ne, %8, %c0_i32_1 : i32
    %10 = arith.extui %9 : i1 to i32
    %cst_2 = arith.constant 0xFF800000 : f32
    %c0_i32_3 = arith.constant 0 : i32
    %11 = arith.cmpi ne, %10, %c0_i32_3 : i32
    scf.if %11 {
      %c0 = arith.constant 0 : index
      %c0_6 = arith.constant 0 : index
      %c0_7 = arith.constant 0 : index
      %15 = vector.load %arg5[%c0, %c0_6, %c0_7] : memref<1x128x128xf32, #tpu.memory_space<vmem>>, vector<1x128x128xf32>
      %16 = vector.shape_cast %15 : vector<1x128x128xf32> to vector<128x128xf32>
      %c0_8 = arith.constant 0 : index
      %c0_9 = arith.constant 0 : index
      %17 = vector.load %arg11[%c0_8, %c0_9] : memref<128x256xf32, #tpu.memory_space<vmem>>, vector<128x256xf32>
      %cst_10 = arith.constant dense<0.000000e+00> : vector<128x256xf32>
      %18 = tpu.matmul %16, %17, %cst_10 {dimension_numbers = #tpu.dot_dimension_numbers<[1], [0], [0], [1], [0, 0, 1, 1], [], []>} : vector<128x128xf32>, vector<128x256xf32>, vector<128x256xf32> -> vector<128x256xf32>
      %c0_11 = arith.constant 0 : index
      %c0_12 = arith.constant 0 : index
      %19 = vector.load %arg12[%c0_11, %c0_12] : memref<1x256xf32, #tpu.memory_space<vmem>>, vector<1x256xf32>
      %20 = vector.broadcast %19 : vector<1x256xf32> to vector<128x256xf32>
      %21 = arith.addf %18, %20 : vector<128x256xf32>
      %c0_13 = arith.constant 0 : index
      %c0_14 = arith.constant 0 : index
      %c0_15 = arith.constant 0 : index
      %22 = vector.load %arg6[%c0_13, %c0_14, %c0_15] : memref<1x8x128xi8, #tpu.memory_space<vmem>>, vector<1x8x128xi8>
      %23 = vector.shape_cast %22 : vector<1x8x128xi8> to vector<8x128xi8>
      %c0_i8 = arith.constant 0 : i8
      %24 = vector.broadcast %c0_i8 : i8 to vector<8x128xi8>
      %25 = arith.cmpi ne, %23, %24 : vector<8x128xi8>
      %c0_16 = arith.constant 0 : index
      %c0_17 = arith.constant 0 : index
      %26 = vector.load %arg16[%c0_16, %c0_17] : memref<8x128xf32, #tpu.memory_space<vmem>>, vector<8x16xf32>
      %27 = vector.extract_strided_slice %21 {offsets = [0, 0], sizes = [128, 16], strides = [1, 1]} : vector<128x256xf32> to vector<128x16xf32>
      %28 = vector.extract_strided_slice %21 {offsets = [0, 128], sizes = [128, 16], strides = [1, 1]} : vector<128x256xf32> to vector<128x16xf32>
      %cst_18 = arith.constant dense<0.000000e+00> : vector<8x128xf32>
      %29 = tpu.matmul %26, %27, %cst_18 {dimension_numbers = #tpu.dot_dimension_numbers<[1], [1], [0], [0], [0, 0, 1, 0], [], []>} : vector<8x16xf32>, vector<128x16xf32>, vector<8x128xf32> -> vector<8x128xf32>
      %30 = vector.broadcast %cst_2 : f32 to vector<8x128xf32>
      %31 = arith.select %25, %29, %30 : vector<8x128xi1>, vector<8x128xf32>
      %c0_19 = arith.constant 0 : index
      %c0_20 = arith.constant 0 : index
      %c0_21 = arith.constant 0 : index
      %32 = vector.load %arg17[%c0_19, %c0_20, %c0_21] : memref<8x8x1xf32, #tpu.memory_space<vmem>>, vector<1x8x1xf32>
      %33 = vector.shape_cast %32 : vector<1x8x1xf32> to vector<8x1xf32>
      %cst_22 = arith.constant dense<0xFF800000> : vector<8xf32>
      %34 = vector.multi_reduction <maximumf>, %31, %cst_22 [1] : vector<8x128xf32> to vector<8xf32>
      %35 = vector.shape_cast %34 : vector<8xf32> to vector<8x1xf32>
      %36 = arith.maximumf %33, %35 : vector<8x1xf32>
      %37 = vector.broadcast %cst_2 : f32 to vector<8x1xf32>
      %38 = arith.cmpf oeq, %36, %37 : vector<8x1xf32>
      %cst_23 = arith.constant 0.000000e+00 : f32
      %39 = vector.broadcast %cst_23 : f32 to vector<8x1xf32>
      %40 = arith.select %38, %39, %36 : vector<8x1xi1>, vector<8x1xf32>
      %41 = arith.subf %33, %40 : vector<8x1xf32>
      %42 = math.exp %41 : vector<8x1xf32>
      %43 = vector.broadcast %40 : vector<8x1xf32> to vector<8x128xf32>
      %44 = arith.subf %31, %43 : vector<8x128xf32>
      %45 = math.exp %44 : vector<8x128xf32>
      %c0_24 = arith.constant 0 : index
      %c0_25 = arith.constant 0 : index
      %c0_26 = arith.constant 0 : index
      %46 = vector.load %arg18[%c0_24, %c0_25, %c0_26] : memref<8x8x1xf32, #tpu.memory_space<vmem>>, vector<1x8x1xf32>
      %47 = vector.shape_cast %46 : vector<1x8x1xf32> to vector<8x1xf32>
      %48 = arith.mulf %42, %47 : vector<8x1xf32>
      %cst_27 = arith.constant dense<0.000000e+00> : vector<8xf32>
      %49 = vector.multi_reduction <add>, %45, %cst_27 [1] : vector<8x128xf32> to vector<8xf32>
      %50 = vector.shape_cast %49 : vector<8xf32> to vector<8x1xf32>
      %51 = arith.addf %48, %50 : vector<8x1xf32>
      %c0_28 = arith.constant 0 : index
      %c0_29 = arith.constant 0 : index
      %c0_30 = arith.constant 0 : index
      %52 = vector.load %arg18[%c0_28, %c0_29, %c0_30] : memref<8x8x1xf32, #tpu.memory_space<vmem>>, vector<1x8x1xf32>
      %53 = vector.shape_cast %52 : vector<1x8x1xf32> to vector<8x1xf32>
      %54 = vector.shape_cast %51 : vector<8x1xf32> to vector<1x8x1xf32>
      tpu.vector_store %arg18[%c0_28, %c0_29, %c0_30], %54 {strides = array<i32>} : memref<8x8x1xf32, #tpu.memory_space<vmem>>, vector<1x8x1xf32>,
      %cst_31 = arith.constant dense<0.000000e+00> : vector<8x16xf32>
      %55 = tpu.matmul %45, %28, %cst_31 {dimension_numbers = #tpu.dot_dimension_numbers<[1], [0], [0], [1], [0, 0, 1, 1], [], []>} : vector<8x128xf32>, vector<128x16xf32>, vector<8x16xf32> -> vector<8x16xf32>
      %c0_32 = arith.constant 0 : index
      %c0_33 = arith.constant 0 : index
      %c0_34 = arith.constant 0 : index
      %56 = vector.load %arg19[%c0_32, %c0_33, %c0_34] : memref<8x8x16xf32, #tpu.memory_space<vmem>>, vector<1x8x16xf32>
      %57 = vector.shape_cast %56 : vector<1x8x16xf32> to vector<8x16xf32>
      %58 = vector.broadcast %42 : vector<8x1xf32> to vector<8x16xf32>
      %59 = arith.mulf %58, %57 : vector<8x16xf32>
      %60 = arith.addf %59, %55 : vector<8x16xf32>
      %c0_35 = arith.constant 0 : index
      %c0_36 = arith.constant 0 : index
      %c0_37 = arith.constant 0 : index
      %61 = vector.load %arg19[%c0_35, %c0_36, %c0_37] : memref<8x8x16xf32, #tpu.memory_space<vmem>>, vector<1x8x16xf32>
      %62 = vector.shape_cast %61 : vector<1x8x16xf32> to vector<8x16xf32>
      %63 = vector.shape_cast %60 : vector<8x16xf32> to vector<1x8x16xf32>
      tpu.vector_store %arg19[%c0_35, %c0_36, %c0_37], %63 {strides = array<i32>} : memref<8x8x16xf32, #tpu.memory_space<vmem>>, vector<1x8x16xf32>,
      %c0_38 = arith.constant 0 : index
      %c0_39 = arith.constant 0 : index
      %c0_40 = arith.constant 0 : index
      %64 = vector.load %arg17[%c0_38, %c0_39, %c0_40] : memref<8x8x1xf32, #tpu.memory_space<vmem>>, vector<1x8x1xf32>
      %65 = vector.shape_cast %64 : vector<1x8x1xf32> to vector<8x1xf32>
      %66 = vector.shape_cast %36 : vector<8x1xf32> to vector<1x8x1xf32>
      tpu.vector_store %arg17[%c0_38, %c0_39, %c0_40], %66 {strides = array<i32>} : memref<8x8x1xf32, #tpu.memory_space<vmem>>, vector<1x8x1xf32>,
      %c0_41 = arith.constant 0 : index
      %c16 = arith.constant 16 : index
      %67 = vector.load %arg16[%c0_41, %c16] : memref<8x128xf32, #tpu.memory_space<vmem>>, vector<8x16xf32>
      %68 = vector.extract_strided_slice %21 {offsets = [0, 16], sizes = [128, 16], strides = [1, 1]} : vector<128x256xf32> to vector<128x16xf32>
      %69 = vector.extract_strided_slice %21 {offsets = [0, 144], sizes = [128, 16], strides = [1, 1]} : vector<128x256xf32> to vector<128x16xf32>
      %cst_42 = arith.constant dense<0.000000e+00> : vector<8x128xf32>
      %70 = tpu.matmul %67, %68, %cst_42 {dimension_numbers = #tpu.dot_dimension_numbers<[1], [1], [0], [0], [0, 0, 1, 0], [], []>} : vector<8x16xf32>, vector<128x16xf32>, vector<8x128xf32> -> vector<8x128xf32>
      %71 = vector.broadcast %cst_2 : f32 to vector<8x128xf32>
      %72 = arith.select %25, %70, %71 : vector<8x128xi1>, vector<8x128xf32>
      %c1 = arith.constant 1 : index
      %c0_43 = arith.constant 0 : index
      %c0_44 = arith.constant 0 : index
      %73 = vector.load %arg17[%c1, %c0_43, %c0_44] : memref<8x8x1xf32, #tpu.memory_space<vmem>>, vector<1x8x1xf32>
      %74 = vector.shape_cast %73 : vector<1x8x1xf32> to vector<8x1xf32>
      %cst_45 = arith.constant dense<0xFF800000> : vector<8xf32>
      %75 = vector.multi_reduction <maximumf>, %72, %cst_45 [1] : vector<8x128xf32> to vector<8xf32>
      %76 = vector.shape_cast %75 : vector<8xf32> to vector<8x1xf32>
      %77 = arith.maximumf %74, %76 : vector<8x1xf32>
      %78 = vector.broadcast %cst_2 : f32 to vector<8x1xf32>
      %79 = arith.cmpf oeq, %77, %78 : vector<8x1xf32>
      %cst_46 = arith.constant 0.000000e+00 : f32
      %80 = vector.broadcast %cst_46 : f32 to vector<8x1xf32>
      %81 = arith.select %79, %80, %77 : vector<8x1xi1>, vector<8x1xf32>
      %82 = arith.subf %74, %81 : vector<8x1xf32>
      %83 = math.exp %82 : vector<8x1xf32>
      %84 = vector.broadcast %81 : vector<8x1xf32> to vector<8x128xf32>
      %85 = arith.subf %72, %84 : vector<8x128xf32>
      %86 = math.exp %85 : vector<8x128xf32>
      %c1_47 = arith.constant 1 : index
      %c0_48 = arith.constant 0 : index
      %c0_49 = arith.constant 0 : index
      %87 = vector.load %arg18[%c1_47, %c0_48, %c0_49] : memref<8x8x1xf32, #tpu.memory_space<vmem>>, vector<1x8x1xf32>
      %88 = vector.shape_cast %87 : vector<1x8x1xf32> to vector<8x1xf32>
      %89 = arith.mulf %83, %88 : vector<8x1xf32>
      %cst_50 = arith.constant dense<0.000000e+00> : vector<8xf32>
      %90 = vector.multi_reduction <add>, %86, %cst_50 [1] : vector<8x128xf32> to vector<8xf32>
      %91 = vector.shape_cast %90 : vector<8xf32> to vector<8x1xf32>
      %92 = arith.addf %89, %91 : vector<8x1xf32>
      %c1_51 = arith.constant 1 : index
      %c0_52 = arith.constant 0 : index
      %c0_53 = arith.constant 0 : index
      %93 = vector.load %arg18[%c1_51, %c0_52, %c0_53] : memref<8x8x1xf32, #tpu.memory_space<vmem>>, vector<1x8x1xf32>
      %94 = vector.shape_cast %93 : vector<1x8x1xf32> to vector<8x1xf32>
      %95 = vector.shape_cast %92 : vector<8x1xf32> to vector<1x8x1xf32>
      tpu.vector_store %arg18[%c1_51, %c0_52, %c0_53], %95 {strides = array<i32>} : memref<8x8x1xf32, #tpu.memory_space<vmem>>, vector<1x8x1xf32>,
      %cst_54 = arith.constant dense<0.000000e+00> : vector<8x16xf32>
      %96 = tpu.matmul %86, %69, %cst_54 {dimension_numbers = #tpu.dot_dimension_numbers<[1], [0], [0], [1], [0, 0, 1, 1], [], []>} : vector<8x128xf32>, vector<128x16xf32>, vector<8x16xf32> -> vector<8x16xf32>
      %c1_55 = arith.constant 1 : index
      %c0_56 = arith.constant 0 : index
      %c0_57 = arith.constant 0 : index
      %97 = vector.load %arg19[%c1_55, %c0_56, %c0_57] : memref<8x8x16xf32, #tpu.memory_space<vmem>>, vector<1x8x16xf32>
      %98 = vector.shape_cast %97 : vector<1x8x16xf32> to vector<8x16xf32>
      %99 = vector.broadcast %83 : vector<8x1xf32> to vector<8x16xf32>
      %100 = arith.mulf %99, %98 : vector<8x16xf32>
      %101 = arith.addf %100, %96 : vector<8x16xf32>
      %c1_58 = arith.constant 1 : index
      %c0_59 = arith.constant 0 : index
      %c0_60 = arith.constant 0 : index
      %102 = vector.load %arg19[%c1_58, %c0_59, %c0_60] : memref<8x8x16xf32, #tpu.memory_space<vmem>>, vector<1x8x16xf32>
      %103 = vector.shape_cast %102 : vector<1x8x16xf32> to vector<8x16xf32>
      %104 = vector.shape_cast %101 : vector<8x16xf32> to vector<1x8x16xf32>
      tpu.vector_store %arg19[%c1_58, %c0_59, %c0_60], %104 {strides = array<i32>} : memref<8x8x16xf32, #tpu.memory_space<vmem>>, vector<1x8x16xf32>,
      %c1_61 = arith.constant 1 : index
      %c0_62 = arith.constant 0 : index
      %c0_63 = arith.constant 0 : index
      %105 = vector.load %arg17[%c1_61, %c0_62, %c0_63] : memref<8x8x1xf32, #tpu.memory_space<vmem>>, vector<1x8x1xf32>
      %106 = vector.shape_cast %105 : vector<1x8x1xf32> to vector<8x1xf32>
      %107 = vector.shape_cast %77 : vector<8x1xf32> to vector<1x8x1xf32>
      tpu.vector_store %arg17[%c1_61, %c0_62, %c0_63], %107 {strides = array<i32>} : memref<8x8x1xf32, #tpu.memory_space<vmem>>, vector<1x8x1xf32>,
      %c0_64 = arith.constant 0 : index
      %c32 = arith.constant 32 : index
      %108 = vector.load %arg16[%c0_64, %c32] : memref<8x128xf32, #tpu.memory_space<vmem>>, vector<8x16xf32>
      %109 = vector.extract_strided_slice %21 {offsets = [0, 32], sizes = [128, 16], strides = [1, 1]} : vector<128x256xf32> to vector<128x16xf32>
      %110 = vector.extract_strided_slice %21 {offsets = [0, 160], sizes = [128, 16], strides = [1, 1]} : vector<128x256xf32> to vector<128x16xf32>
      %cst_65 = arith.constant dense<0.000000e+00> : vector<8x128xf32>
      %111 = tpu.matmul %108, %109, %cst_65 {dimension_numbers = #tpu.dot_dimension_numbers<[1], [1], [0], [0], [0, 0, 1, 0], [], []>} : vector<8x16xf32>, vector<128x16xf32>, vector<8x128xf32> -> vector<8x128xf32>
      %112 = vector.broadcast %cst_2 : f32 to vector<8x128xf32>
      %113 = arith.select %25, %111, %112 : vector<8x128xi1>, vector<8x128xf32>
      %c2 = arith.constant 2 : index
      %c0_66 = arith.constant 0 : index
      %c0_67 = arith.constant 0 : index
      %114 = vector.load %arg17[%c2, %c0_66, %c0_67] : memref<8x8x1xf32, #tpu.memory_space<vmem>>, vector<1x8x1xf32>
      %115 = vector.shape_cast %114 : vector<1x8x1xf32> to vector<8x1xf32>
      %cst_68 = arith.constant dense<0xFF800000> : vector<8xf32>
      %116 = vector.multi_reduction <maximumf>, %113, %cst_68 [1] : vector<8x128xf32> to vector<8xf32>
      %117 = vector.shape_cast %116 : vector<8xf32> to vector<8x1xf32>
      %118 = arith.maximumf %115, %117 : vector<8x1xf32>
      %119 = vector.broadcast %cst_2 : f32 to vector<8x1xf32>
      %120 = arith.cmpf oeq, %118, %119 : vector<8x1xf32>
      %cst_69 = arith.constant 0.000000e+00 : f32
      %121 = vector.broadcast %cst_69 : f32 to vector<8x1xf32>
      %122 = arith.select %120, %121, %118 : vector<8x1xi1>, vector<8x1xf32>
      %123 = arith.subf %115, %122 : vector<8x1xf32>
      %124 = math.exp %123 : vector<8x1xf32>
      %125 = vector.broadcast %122 : vector<8x1xf32> to vector<8x128xf32>
      %126 = arith.subf %113, %125 : vector<8x128xf32>
      %127 = math.exp %126 : vector<8x128xf32>
      %c2_70 = arith.constant 2 : index
      %c0_71 = arith.constant 0 : index
      %c0_72 = arith.constant 0 : index
      %128 = vector.load %arg18[%c2_70, %c0_71, %c0_72] : memref<8x8x1xf32, #tpu.memory_space<vmem>>, vector<1x8x1xf32>
      %129 = vector.shape_cast %128 : vector<1x8x1xf32> to vector<8x1xf32>
      %130 = arith.mulf %124, %129 : vector<8x1xf32>
      %cst_73 = arith.constant dense<0.000000e+00> : vector<8xf32>
      %131 = vector.multi_reduction <add>, %127, %cst_73 [1] : vector<8x128xf32> to vector<8xf32>
      %132 = vector.shape_cast %131 : vector<8xf32> to vector<8x1xf32>
      %133 = arith.addf %130, %132 : vector<8x1xf32>
      %c2_74 = arith.constant 2 : index
      %c0_75 = arith.constant 0 : index
      %c0_76 = arith.constant 0 : index
      %134 = vector.load %arg18[%c2_74, %c0_75, %c0_76] : memref<8x8x1xf32, #tpu.memory_space<vmem>>, vector<1x8x1xf32>
      %135 = vector.shape_cast %134 : vector<1x8x1xf32> to vector<8x1xf32>
      %136 = vector.shape_cast %133 : vector<8x1xf32> to vector<1x8x1xf32>
      tpu.vector_store %arg18[%c2_74, %c0_75, %c0_76], %136 {strides = array<i32>} : memref<8x8x1xf32, #tpu.memory_space<vmem>>, vector<1x8x1xf32>,
      %cst_77 = arith.constant dense<0.000000e+00> : vector<8x16xf32>
      %137 = tpu.matmul %127, %110, %cst_77 {dimension_numbers = #tpu.dot_dimension_numbers<[1], [0], [0], [1], [0, 0, 1, 1], [], []>} : vector<8x128xf32>, vector<128x16xf32>, vector<8x16xf32> -> vector<8x16xf32>
      %c2_78 = arith.constant 2 : index
      %c0_79 = arith.constant 0 : index
      %c0_80 = arith.constant 0 : index
      %138 = vector.load %arg19[%c2_78, %c0_79, %c0_80] : memref<8x8x16xf32, #tpu.memory_space<vmem>>, vector<1x8x16xf32>
      %139 = vector.shape_cast %138 : vector<1x8x16xf32> to vector<8x16xf32>
      %140 = vector.broadcast %124 : vector<8x1xf32> to vector<8x16xf32>
      %141 = arith.mulf %140, %139 : vector<8x16xf32>
      %142 = arith.addf %141, %137 : vector<8x16xf32>
      %c2_81 = arith.constant 2 : index
      %c0_82 = arith.constant 0 : index
      %c0_83 = arith.constant 0 : index
      %143 = vector.load %arg19[%c2_81, %c0_82, %c0_83] : memref<8x8x16xf32, #tpu.memory_space<vmem>>, vector<1x8x16xf32>
      %144 = vector.shape_cast %143 : vector<1x8x16xf32> to vector<8x16xf32>
      %145 = vector.shape_cast %142 : vector<8x16xf32> to vector<1x8x16xf32>
      tpu.vector_store %arg19[%c2_81, %c0_82, %c0_83], %145 {strides = array<i32>} : memref<8x8x16xf32, #tpu.memory_space<vmem>>, vector<1x8x16xf32>,
      %c2_84 = arith.constant 2 : index
      %c0_85 = arith.constant 0 : index
      %c0_86 = arith.constant 0 : index
      %146 = vector.load %arg17[%c2_84, %c0_85, %c0_86] : memref<8x8x1xf32, #tpu.memory_space<vmem>>, vector<1x8x1xf32>
      %147 = vector.shape_cast %146 : vector<1x8x1xf32> to vector<8x1xf32>
      %148 = vector.shape_cast %118 : vector<8x1xf32> to vector<1x8x1xf32>
      tpu.vector_store %arg17[%c2_84, %c0_85, %c0_86], %148 {strides = array<i32>} : memref<8x8x1xf32, #tpu.memory_space<vmem>>, vector<1x8x1xf32>,
      %c0_87 = arith.constant 0 : index
      %c48 = arith.constant 48 : index
      %149 = vector.load %arg16[%c0_87, %c48] : memref<8x128xf32, #tpu.memory_space<vmem>>, vector<8x16xf32>
      %150 = vector.extract_strided_slice %21 {offsets = [0, 48], sizes = [128, 16], strides = [1, 1]} : vector<128x256xf32> to vector<128x16xf32>
      %151 = vector.extract_strided_slice %21 {offsets = [0, 176], sizes = [128, 16], strides = [1, 1]} : vector<128x256xf32> to vector<128x16xf32>
      %cst_88 = arith.constant dense<0.000000e+00> : vector<8x128xf32>
      %152 = tpu.matmul %149, %150, %cst_88 {dimension_numbers = #tpu.dot_dimension_numbers<[1], [1], [0], [0], [0, 0, 1, 0], [], []>} : vector<8x16xf32>, vector<128x16xf32>, vector<8x128xf32> -> vector<8x128xf32>
      %153 = vector.broadcast %cst_2 : f32 to vector<8x128xf32>
      %154 = arith.select %25, %152, %153 : vector<8x128xi1>, vector<8x128xf32>
      %c3 = arith.constant 3 : index
      %c0_89 = arith.constant 0 : index
      %c0_90 = arith.constant 0 : index
      %155 = vector.load %arg17[%c3, %c0_89, %c0_90] : memref<8x8x1xf32, #tpu.memory_space<vmem>>, vector<1x8x1xf32>
      %156 = vector.shape_cast %155 : vector<1x8x1xf32> to vector<8x1xf32>
      %cst_91 = arith.constant dense<0xFF800000> : vector<8xf32>
      %157 = vector.multi_reduction <maximumf>, %154, %cst_91 [1] : vector<8x128xf32> to vector<8xf32>
      %158 = vector.shape_cast %157 : vector<8xf32> to vector<8x1xf32>
      %159 = arith.maximumf %156, %158 : vector<8x1xf32>
      %160 = vector.broadcast %cst_2 : f32 to vector<8x1xf32>
      %161 = arith.cmpf oeq, %159, %160 : vector<8x1xf32>
      %cst_92 = arith.constant 0.000000e+00 : f32
      %162 = vector.broadcast %cst_92 : f32 to vector<8x1xf32>
      %163 = arith.select %161, %162, %159 : vector<8x1xi1>, vector<8x1xf32>
      %164 = arith.subf %156, %163 : vector<8x1xf32>
      %165 = math.exp %164 : vector<8x1xf32>
      %166 = vector.broadcast %163 : vector<8x1xf32> to vector<8x128xf32>
      %167 = arith.subf %154, %166 : vector<8x128xf32>
      %168 = math.exp %167 : vector<8x128xf32>
      %c3_93 = arith.constant 3 : index
      %c0_94 = arith.constant 0 : index
      %c0_95 = arith.constant 0 : index
      %169 = vector.load %arg18[%c3_93, %c0_94, %c0_95] : memref<8x8x1xf32, #tpu.memory_space<vmem>>, vector<1x8x1xf32>
      %170 = vector.shape_cast %169 : vector<1x8x1xf32> to vector<8x1xf32>
      %171 = arith.mulf %165, %170 : vector<8x1xf32>
      %cst_96 = arith.constant dense<0.000000e+00> : vector<8xf32>
      %172 = vector.multi_reduction <add>, %168, %cst_96 [1] : vector<8x128xf32> to vector<8xf32>
      %173 = vector.shape_cast %172 : vector<8xf32> to vector<8x1xf32>
      %174 = arith.addf %171, %173 : vector<8x1xf32>
      %c3_97 = arith.constant 3 : index
      %c0_98 = arith.constant 0 : index
      %c0_99 = arith.constant 0 : index
      %175 = vector.load %arg18[%c3_97, %c0_98, %c0_99] : memref<8x8x1xf32, #tpu.memory_space<vmem>>, vector<1x8x1xf32>
      %176 = vector.shape_cast %175 : vector<1x8x1xf32> to vector<8x1xf32>
      %177 = vector.shape_cast %174 : vector<8x1xf32> to vector<1x8x1xf32>
      tpu.vector_store %arg18[%c3_97, %c0_98, %c0_99], %177 {strides = array<i32>} : memref<8x8x1xf32, #tpu.memory_space<vmem>>, vector<1x8x1xf32>,
      %cst_100 = arith.constant dense<0.000000e+00> : vector<8x16xf32>
      %178 = tpu.matmul %168, %151, %cst_100 {dimension_numbers = #tpu.dot_dimension_numbers<[1], [0], [0], [1], [0, 0, 1, 1], [], []>} : vector<8x128xf32>, vector<128x16xf32>, vector<8x16xf32> -> vector<8x16xf32>
      %c3_101 = arith.constant 3 : index
      %c0_102 = arith.constant 0 : index
      %c0_103 = arith.constant 0 : index
      %179 = vector.load %arg19[%c3_101, %c0_102, %c0_103] : memref<8x8x16xf32, #tpu.memory_space<vmem>>, vector<1x8x16xf32>
      %180 = vector.shape_cast %179 : vector<1x8x16xf32> to vector<8x16xf32>
      %181 = vector.broadcast %165 : vector<8x1xf32> to vector<8x16xf32>
      %182 = arith.mulf %181, %180 : vector<8x16xf32>
      %183 = arith.addf %182, %178 : vector<8x16xf32>
      %c3_104 = arith.constant 3 : index
      %c0_105 = arith.constant 0 : index
      %c0_106 = arith.constant 0 : index
      %184 = vector.load %arg19[%c3_104, %c0_105, %c0_106] : memref<8x8x16xf32, #tpu.memory_space<vmem>>, vector<1x8x16xf32>
      %185 = vector.shape_cast %184 : vector<1x8x16xf32> to vector<8x16xf32>
      %186 = vector.shape_cast %183 : vector<8x16xf32> to vector<1x8x16xf32>
      tpu.vector_store %arg19[%c3_104, %c0_105, %c0_106], %186 {strides = array<i32>} : memref<8x8x16xf32, #tpu.memory_space<vmem>>, vector<1x8x16xf32>,
      %c3_107 = arith.constant 3 : index
      %c0_108 = arith.constant 0 : index
      %c0_109 = arith.constant 0 : index
      %187 = vector.load %arg17[%c3_107, %c0_108, %c0_109] : memref<8x8x1xf32, #tpu.memory_space<vmem>>, vector<1x8x1xf32>
      %188 = vector.shape_cast %187 : vector<1x8x1xf32> to vector<8x1xf32>
      %189 = vector.shape_cast %159 : vector<8x1xf32> to vector<1x8x1xf32>
      tpu.vector_store %arg17[%c3_107, %c0_108, %c0_109], %189 {strides = array<i32>} : memref<8x8x1xf32, #tpu.memory_space<vmem>>, vector<1x8x1xf32>,
      %c0_110 = arith.constant 0 : index
      %c64 = arith.constant 64 : index
      %190 = vector.load %arg16[%c0_110, %c64] : memref<8x128xf32, #tpu.memory_space<vmem>>, vector<8x16xf32>
      %191 = vector.extract_strided_slice %21 {offsets = [0, 64], sizes = [128, 16], strides = [1, 1]} : vector<128x256xf32> to vector<128x16xf32>
      %192 = vector.extract_strided_slice %21 {offsets = [0, 192], sizes = [128, 16], strides = [1, 1]} : vector<128x256xf32> to vector<128x16xf32>
      %cst_111 = arith.constant dense<0.000000e+00> : vector<8x128xf32>
      %193 = tpu.matmul %190, %191, %cst_111 {dimension_numbers = #tpu.dot_dimension_numbers<[1], [1], [0], [0], [0, 0, 1, 0], [], []>} : vector<8x16xf32>, vector<128x16xf32>, vector<8x128xf32> -> vector<8x128xf32>
      %194 = vector.broadcast %cst_2 : f32 to vector<8x128xf32>
      %195 = arith.select %25, %193, %194 : vector<8x128xi1>, vector<8x128xf32>
      %c4 = arith.constant 4 : index
      %c0_112 = arith.constant 0 : index
      %c0_113 = arith.constant 0 : index
      %196 = vector.load %arg17[%c4, %c0_112, %c0_113] : memref<8x8x1xf32, #tpu.memory_space<vmem>>, vector<1x8x1xf32>
      %197 = vector.shape_cast %196 : vector<1x8x1xf32> to vector<8x1xf32>
      %cst_114 = arith.constant dense<0xFF800000> : vector<8xf32>
      %198 = vector.multi_reduction <maximumf>, %195, %cst_114 [1] : vector<8x128xf32> to vector<8xf32>
      %199 = vector.shape_cast %198 : vector<8xf32> to vector<8x1xf32>
      %200 = arith.maximumf %197, %199 : vector<8x1xf32>
      %201 = vector.broadcast %cst_2 : f32 to vector<8x1xf32>
      %202 = arith.cmpf oeq, %200, %201 : vector<8x1xf32>
      %cst_115 = arith.constant 0.000000e+00 : f32
      %203 = vector.broadcast %cst_115 : f32 to vector<8x1xf32>
      %204 = arith.select %202, %203, %200 : vector<8x1xi1>, vector<8x1xf32>
      %205 = arith.subf %197, %204 : vector<8x1xf32>
      %206 = math.exp %205 : vector<8x1xf32>
      %207 = vector.broadcast %204 : vector<8x1xf32> to vector<8x128xf32>
      %208 = arith.subf %195, %207 : vector<8x128xf32>
      %209 = math.exp %208 : vector<8x128xf32>
      %c4_116 = arith.constant 4 : index
      %c0_117 = arith.constant 0 : index
      %c0_118 = arith.constant 0 : index
      %210 = vector.load %arg18[%c4_116, %c0_117, %c0_118] : memref<8x8x1xf32, #tpu.memory_space<vmem>>, vector<1x8x1xf32>
      %211 = vector.shape_cast %210 : vector<1x8x1xf32> to vector<8x1xf32>
      %212 = arith.mulf %206, %211 : vector<8x1xf32>
      %cst_119 = arith.constant dense<0.000000e+00> : vector<8xf32>
      %213 = vector.multi_reduction <add>, %209, %cst_119 [1] : vector<8x128xf32> to vector<8xf32>
      %214 = vector.shape_cast %213 : vector<8xf32> to vector<8x1xf32>
      %215 = arith.addf %212, %214 : vector<8x1xf32>
      %c4_120 = arith.constant 4 : index
      %c0_121 = arith.constant 0 : index
      %c0_122 = arith.constant 0 : index
      %216 = vector.load %arg18[%c4_120, %c0_121, %c0_122] : memref<8x8x1xf32, #tpu.memory_space<vmem>>, vector<1x8x1xf32>
      %217 = vector.shape_cast %216 : vector<1x8x1xf32> to vector<8x1xf32>
      %218 = vector.shape_cast %215 : vector<8x1xf32> to vector<1x8x1xf32>
      tpu.vector_store %arg18[%c4_120, %c0_121, %c0_122], %218 {strides = array<i32>} : memref<8x8x1xf32, #tpu.memory_space<vmem>>, vector<1x8x1xf32>,
      %cst_123 = arith.constant dense<0.000000e+00> : vector<8x16xf32>
      %219 = tpu.matmul %209, %192, %cst_123 {dimension_numbers = #tpu.dot_dimension_numbers<[1], [0], [0], [1], [0, 0, 1, 1], [], []>} : vector<8x128xf32>, vector<128x16xf32>, vector<8x16xf32> -> vector<8x16xf32>
      %c4_124 = arith.constant 4 : index
      %c0_125 = arith.constant 0 : index
      %c0_126 = arith.constant 0 : index
      %220 = vector.load %arg19[%c4_124, %c0_125, %c0_126] : memref<8x8x16xf32, #tpu.memory_space<vmem>>, vector<1x8x16xf32>
      %221 = vector.shape_cast %220 : vector<1x8x16xf32> to vector<8x16xf32>
      %222 = vector.broadcast %206 : vector<8x1xf32> to vector<8x16xf32>
      %223 = arith.mulf %222, %221 : vector<8x16xf32>
      %224 = arith.addf %223, %219 : vector<8x16xf32>
      %c4_127 = arith.constant 4 : index
      %c0_128 = arith.constant 0 : index
      %c0_129 = arith.constant 0 : index
      %225 = vector.load %arg19[%c4_127, %c0_128, %c0_129] : memref<8x8x16xf32, #tpu.memory_space<vmem>>, vector<1x8x16xf32>
      %226 = vector.shape_cast %225 : vector<1x8x16xf32> to vector<8x16xf32>
      %227 = vector.shape_cast %224 : vector<8x16xf32> to vector<1x8x16xf32>
      tpu.vector_store %arg19[%c4_127, %c0_128, %c0_129], %227 {strides = array<i32>} : memref<8x8x16xf32, #tpu.memory_space<vmem>>, vector<1x8x16xf32>,
      %c4_130 = arith.constant 4 : index
      %c0_131 = arith.constant 0 : index
      %c0_132 = arith.constant 0 : index
      %228 = vector.load %arg17[%c4_130, %c0_131, %c0_132] : memref<8x8x1xf32, #tpu.memory_space<vmem>>, vector<1x8x1xf32>
      %229 = vector.shape_cast %228 : vector<1x8x1xf32> to vector<8x1xf32>
      %230 = vector.shape_cast %200 : vector<8x1xf32> to vector<1x8x1xf32>
      tpu.vector_store %arg17[%c4_130, %c0_131, %c0_132], %230 {strides = array<i32>} : memref<8x8x1xf32, #tpu.memory_space<vmem>>, vector<1x8x1xf32>,
      %c0_133 = arith.constant 0 : index
      %c80 = arith.constant 80 : index
      %231 = vector.load %arg16[%c0_133, %c80] : memref<8x128xf32, #tpu.memory_space<vmem>>, vector<8x16xf32>
      %232 = vector.extract_strided_slice %21 {offsets = [0, 80], sizes = [128, 16], strides = [1, 1]} : vector<128x256xf32> to vector<128x16xf32>
      %233 = vector.extract_strided_slice %21 {offsets = [0, 208], sizes = [128, 16], strides = [1, 1]} : vector<128x256xf32> to vector<128x16xf32>
      %cst_134 = arith.constant dense<0.000000e+00> : vector<8x128xf32>
      %234 = tpu.matmul %231, %232, %cst_134 {dimension_numbers = #tpu.dot_dimension_numbers<[1], [1], [0], [0], [0, 0, 1, 0], [], []>} : vector<8x16xf32>, vector<128x16xf32>, vector<8x128xf32> -> vector<8x128xf32>
      %235 = vector.broadcast %cst_2 : f32 to vector<8x128xf32>
      %236 = arith.select %25, %234, %235 : vector<8x128xi1>, vector<8x128xf32>
      %c5 = arith.constant 5 : index
      %c0_135 = arith.constant 0 : index
      %c0_136 = arith.constant 0 : index
      %237 = vector.load %arg17[%c5, %c0_135, %c0_136] : memref<8x8x1xf32, #tpu.memory_space<vmem>>, vector<1x8x1xf32>
      %238 = vector.shape_cast %237 : vector<1x8x1xf32> to vector<8x1xf32>
      %cst_137 = arith.constant dense<0xFF800000> : vector<8xf32>
      %239 = vector.multi_reduction <maximumf>, %236, %cst_137 [1] : vector<8x128xf32> to vector<8xf32>
      %240 = vector.shape_cast %239 : vector<8xf32> to vector<8x1xf32>
      %241 = arith.maximumf %238, %240 : vector<8x1xf32>
      %242 = vector.broadcast %cst_2 : f32 to vector<8x1xf32>
      %243 = arith.cmpf oeq, %241, %242 : vector<8x1xf32>
      %cst_138 = arith.constant 0.000000e+00 : f32
      %244 = vector.broadcast %cst_138 : f32 to vector<8x1xf32>
      %245 = arith.select %243, %244, %241 : vector<8x1xi1>, vector<8x1xf32>
      %246 = arith.subf %238, %245 : vector<8x1xf32>
      %247 = math.exp %246 : vector<8x1xf32>
      %248 = vector.broadcast %245 : vector<8x1xf32> to vector<8x128xf32>
      %249 = arith.subf %236, %248 : vector<8x128xf32>
      %250 = math.exp %249 : vector<8x128xf32>
      %c5_139 = arith.constant 5 : index
      %c0_140 = arith.constant 0 : index
      %c0_141 = arith.constant 0 : index
      %251 = vector.load %arg18[%c5_139, %c0_140, %c0_141] : memref<8x8x1xf32, #tpu.memory_space<vmem>>, vector<1x8x1xf32>
      %252 = vector.shape_cast %251 : vector<1x8x1xf32> to vector<8x1xf32>
      %253 = arith.mulf %247, %252 : vector<8x1xf32>
      %cst_142 = arith.constant dense<0.000000e+00> : vector<8xf32>
      %254 = vector.multi_reduction <add>, %250, %cst_142 [1] : vector<8x128xf32> to vector<8xf32>
      %255 = vector.shape_cast %254 : vector<8xf32> to vector<8x1xf32>
      %256 = arith.addf %253, %255 : vector<8x1xf32>
      %c5_143 = arith.constant 5 : index
      %c0_144 = arith.constant 0 : index
      %c0_145 = arith.constant 0 : index
      %257 = vector.load %arg18[%c5_143, %c0_144, %c0_145] : memref<8x8x1xf32, #tpu.memory_space<vmem>>, vector<1x8x1xf32>
      %258 = vector.shape_cast %257 : vector<1x8x1xf32> to vector<8x1xf32>
      %259 = vector.shape_cast %256 : vector<8x1xf32> to vector<1x8x1xf32>
      tpu.vector_store %arg18[%c5_143, %c0_144, %c0_145], %259 {strides = array<i32>} : memref<8x8x1xf32, #tpu.memory_space<vmem>>, vector<1x8x1xf32>,
      %cst_146 = arith.constant dense<0.000000e+00> : vector<8x16xf32>
      %260 = tpu.matmul %250, %233, %cst_146 {dimension_numbers = #tpu.dot_dimension_numbers<[1], [0], [0], [1], [0, 0, 1, 1], [], []>} : vector<8x128xf32>, vector<128x16xf32>, vector<8x16xf32> -> vector<8x16xf32>
      %c5_147 = arith.constant 5 : index
      %c0_148 = arith.constant 0 : index
      %c0_149 = arith.constant 0 : index
      %261 = vector.load %arg19[%c5_147, %c0_148, %c0_149] : memref<8x8x16xf32, #tpu.memory_space<vmem>>, vector<1x8x16xf32>
      %262 = vector.shape_cast %261 : vector<1x8x16xf32> to vector<8x16xf32>
      %263 = vector.broadcast %247 : vector<8x1xf32> to vector<8x16xf32>
      %264 = arith.mulf %263, %262 : vector<8x16xf32>
      %265 = arith.addf %264, %260 : vector<8x16xf32>
      %c5_150 = arith.constant 5 : index
      %c0_151 = arith.constant 0 : index
      %c0_152 = arith.constant 0 : index
      %266 = vector.load %arg19[%c5_150, %c0_151, %c0_152] : memref<8x8x16xf32, #tpu.memory_space<vmem>>, vector<1x8x16xf32>
      %267 = vector.shape_cast %266 : vector<1x8x16xf32> to vector<8x16xf32>
      %268 = vector.shape_cast %265 : vector<8x16xf32> to vector<1x8x16xf32>
      tpu.vector_store %arg19[%c5_150, %c0_151, %c0_152], %268 {strides = array<i32>} : memref<8x8x16xf32, #tpu.memory_space<vmem>>, vector<1x8x16xf32>,
      %c5_153 = arith.constant 5 : index
      %c0_154 = arith.constant 0 : index
      %c0_155 = arith.constant 0 : index
      %269 = vector.load %arg17[%c5_153, %c0_154, %c0_155] : memref<8x8x1xf32, #tpu.memory_space<vmem>>, vector<1x8x1xf32>
      %270 = vector.shape_cast %269 : vector<1x8x1xf32> to vector<8x1xf32>
      %271 = vector.shape_cast %241 : vector<8x1xf32> to vector<1x8x1xf32>
      tpu.vector_store %arg17[%c5_153, %c0_154, %c0_155], %271 {strides = array<i32>} : memref<8x8x1xf32, #tpu.memory_space<vmem>>, vector<1x8x1xf32>,
      %c0_156 = arith.constant 0 : index
      %c96 = arith.constant 96 : index
      %272 = vector.load %arg16[%c0_156, %c96] : memref<8x128xf32, #tpu.memory_space<vmem>>, vector<8x16xf32>
      %273 = vector.extract_strided_slice %21 {offsets = [0, 96], sizes = [128, 16], strides = [1, 1]} : vector<128x256xf32> to vector<128x16xf32>
      %274 = vector.extract_strided_slice %21 {offsets = [0, 224], sizes = [128, 16], strides = [1, 1]} : vector<128x256xf32> to vector<128x16xf32>
      %cst_157 = arith.constant dense<0.000000e+00> : vector<8x128xf32>
      %275 = tpu.matmul %272, %273, %cst_157 {dimension_numbers = #tpu.dot_dimension_numbers<[1], [1], [0], [0], [0, 0, 1, 0], [], []>} : vector<8x16xf32>, vector<128x16xf32>, vector<8x128xf32> -> vector<8x128xf32>
      %276 = vector.broadcast %cst_2 : f32 to vector<8x128xf32>
      %277 = arith.select %25, %275, %276 : vector<8x128xi1>, vector<8x128xf32>
      %c6 = arith.constant 6 : index
      %c0_158 = arith.constant 0 : index
      %c0_159 = arith.constant 0 : index
      %278 = vector.load %arg17[%c6, %c0_158, %c0_159] : memref<8x8x1xf32, #tpu.memory_space<vmem>>, vector<1x8x1xf32>
      %279 = vector.shape_cast %278 : vector<1x8x1xf32> to vector<8x1xf32>
      %cst_160 = arith.constant dense<0xFF800000> : vector<8xf32>
      %280 = vector.multi_reduction <maximumf>, %277, %cst_160 [1] : vector<8x128xf32> to vector<8xf32>
      %281 = vector.shape_cast %280 : vector<8xf32> to vector<8x1xf32>
      %282 = arith.maximumf %279, %281 : vector<8x1xf32>
      %283 = vector.broadcast %cst_2 : f32 to vector<8x1xf32>
      %284 = arith.cmpf oeq, %282, %283 : vector<8x1xf32>
      %cst_161 = arith.constant 0.000000e+00 : f32
      %285 = vector.broadcast %cst_161 : f32 to vector<8x1xf32>
      %286 = arith.select %284, %285, %282 : vector<8x1xi1>, vector<8x1xf32>
      %287 = arith.subf %279, %286 : vector<8x1xf32>
      %288 = math.exp %287 : vector<8x1xf32>
      %289 = vector.broadcast %286 : vector<8x1xf32> to vector<8x128xf32>
      %290 = arith.subf %277, %289 : vector<8x128xf32>
      %291 = math.exp %290 : vector<8x128xf32>
      %c6_162 = arith.constant 6 : index
      %c0_163 = arith.constant 0 : index
      %c0_164 = arith.constant 0 : index
      %292 = vector.load %arg18[%c6_162, %c0_163, %c0_164] : memref<8x8x1xf32, #tpu.memory_space<vmem>>, vector<1x8x1xf32>
      %293 = vector.shape_cast %292 : vector<1x8x1xf32> to vector<8x1xf32>
      %294 = arith.mulf %288, %293 : vector<8x1xf32>
      %cst_165 = arith.constant dense<0.000000e+00> : vector<8xf32>
      %295 = vector.multi_reduction <add>, %291, %cst_165 [1] : vector<8x128xf32> to vector<8xf32>
      %296 = vector.shape_cast %295 : vector<8xf32> to vector<8x1xf32>
      %297 = arith.addf %294, %296 : vector<8x1xf32>
      %c6_166 = arith.constant 6 : index
      %c0_167 = arith.constant 0 : index
      %c0_168 = arith.constant 0 : index
      %298 = vector.load %arg18[%c6_166, %c0_167, %c0_168] : memref<8x8x1xf32, #tpu.memory_space<vmem>>, vector<1x8x1xf32>
      %299 = vector.shape_cast %298 : vector<1x8x1xf32> to vector<8x1xf32>
      %300 = vector.shape_cast %297 : vector<8x1xf32> to vector<1x8x1xf32>
      tpu.vector_store %arg18[%c6_166, %c0_167, %c0_168], %300 {strides = array<i32>} : memref<8x8x1xf32, #tpu.memory_space<vmem>>, vector<1x8x1xf32>,
      %cst_169 = arith.constant dense<0.000000e+00> : vector<8x16xf32>
      %301 = tpu.matmul %291, %274, %cst_169 {dimension_numbers = #tpu.dot_dimension_numbers<[1], [0], [0], [1], [0, 0, 1, 1], [], []>} : vector<8x128xf32>, vector<128x16xf32>, vector<8x16xf32> -> vector<8x16xf32>
      %c6_170 = arith.constant 6 : index
      %c0_171 = arith.constant 0 : index
      %c0_172 = arith.constant 0 : index
      %302 = vector.load %arg19[%c6_170, %c0_171, %c0_172] : memref<8x8x16xf32, #tpu.memory_space<vmem>>, vector<1x8x16xf32>
      %303 = vector.shape_cast %302 : vector<1x8x16xf32> to vector<8x16xf32>
      %304 = vector.broadcast %288 : vector<8x1xf32> to vector<8x16xf32>
      %305 = arith.mulf %304, %303 : vector<8x16xf32>
      %306 = arith.addf %305, %301 : vector<8x16xf32>
      %c6_173 = arith.constant 6 : index
      %c0_174 = arith.constant 0 : index
      %c0_175 = arith.constant 0 : index
      %307 = vector.load %arg19[%c6_173, %c0_174, %c0_175] : memref<8x8x16xf32, #tpu.memory_space<vmem>>, vector<1x8x16xf32>
      %308 = vector.shape_cast %307 : vector<1x8x16xf32> to vector<8x16xf32>
      %309 = vector.shape_cast %306 : vector<8x16xf32> to vector<1x8x16xf32>
      tpu.vector_store %arg19[%c6_173, %c0_174, %c0_175], %309 {strides = array<i32>} : memref<8x8x16xf32, #tpu.memory_space<vmem>>, vector<1x8x16xf32>,
      %c6_176 = arith.constant 6 : index
      %c0_177 = arith.constant 0 : index
      %c0_178 = arith.constant 0 : index
      %310 = vector.load %arg17[%c6_176, %c0_177, %c0_178] : memref<8x8x1xf32, #tpu.memory_space<vmem>>, vector<1x8x1xf32>
      %311 = vector.shape_cast %310 : vector<1x8x1xf32> to vector<8x1xf32>
      %312 = vector.shape_cast %282 : vector<8x1xf32> to vector<1x8x1xf32>
      tpu.vector_store %arg17[%c6_176, %c0_177, %c0_178], %312 {strides = array<i32>} : memref<8x8x1xf32, #tpu.memory_space<vmem>>, vector<1x8x1xf32>,
      %c0_179 = arith.constant 0 : index
      %c112 = arith.constant 112 : index
      %313 = vector.load %arg16[%c0_179, %c112] : memref<8x128xf32, #tpu.memory_space<vmem>>, vector<8x16xf32>
      %314 = vector.extract_strided_slice %21 {offsets = [0, 112], sizes = [128, 16], strides = [1, 1]} : vector<128x256xf32> to vector<128x16xf32>
      %315 = vector.extract_strided_slice %21 {offsets = [0, 240], sizes = [128, 16], strides = [1, 1]} : vector<128x256xf32> to vector<128x16xf32>
      %cst_180 = arith.constant dense<0.000000e+00> : vector<8x128xf32>
      %316 = tpu.matmul %313, %314, %cst_180 {dimension_numbers = #tpu.dot_dimension_numbers<[1], [1], [0], [0], [0, 0, 1, 0], [], []>} : vector<8x16xf32>, vector<128x16xf32>, vector<8x128xf32> -> vector<8x128xf32>
      %317 = vector.broadcast %cst_2 : f32 to vector<8x128xf32>
      %318 = arith.select %25, %316, %317 : vector<8x128xi1>, vector<8x128xf32>
      %c7 = arith.constant 7 : index
      %c0_181 = arith.constant 0 : index
      %c0_182 = arith.constant 0 : index
      %319 = vector.load %arg17[%c7, %c0_181, %c0_182] : memref<8x8x1xf32, #tpu.memory_space<vmem>>, vector<1x8x1xf32>
      %320 = vector.shape_cast %319 : vector<1x8x1xf32> to vector<8x1xf32>
      %cst_183 = arith.constant dense<0xFF800000> : vector<8xf32>
      %321 = vector.multi_reduction <maximumf>, %318, %cst_183 [1] : vector<8x128xf32> to vector<8xf32>
      %322 = vector.shape_cast %321 : vector<8xf32> to vector<8x1xf32>
      %323 = arith.maximumf %320, %322 : vector<8x1xf32>
      %324 = vector.broadcast %cst_2 : f32 to vector<8x1xf32>
      %325 = arith.cmpf oeq, %323, %324 : vector<8x1xf32>
      %cst_184 = arith.constant 0.000000e+00 : f32
      %326 = vector.broadcast %cst_184 : f32 to vector<8x1xf32>
      %327 = arith.select %325, %326, %323 : vector<8x1xi1>, vector<8x1xf32>
      %328 = arith.subf %320, %327 : vector<8x1xf32>
      %329 = math.exp %328 : vector<8x1xf32>
      %330 = vector.broadcast %327 : vector<8x1xf32> to vector<8x128xf32>
      %331 = arith.subf %318, %330 : vector<8x128xf32>
      %332 = math.exp %331 : vector<8x128xf32>
      %c7_185 = arith.constant 7 : index
      %c0_186 = arith.constant 0 : index
      %c0_187 = arith.constant 0 : index
      %333 = vector.load %arg18[%c7_185, %c0_186, %c0_187] : memref<8x8x1xf32, #tpu.memory_space<vmem>>, vector<1x8x1xf32>
      %334 = vector.shape_cast %333 : vector<1x8x1xf32> to vector<8x1xf32>
      %335 = arith.mulf %329, %334 : vector<8x1xf32>
      %cst_188 = arith.constant dense<0.000000e+00> : vector<8xf32>
      %336 = vector.multi_reduction <add>, %332, %cst_188 [1] : vector<8x128xf32> to vector<8xf32>
      %337 = vector.shape_cast %336 : vector<8xf32> to vector<8x1xf32>
      %338 = arith.addf %335, %337 : vector<8x1xf32>
      %c7_189 = arith.constant 7 : index
      %c0_190 = arith.constant 0 : index
      %c0_191 = arith.constant 0 : index
      %339 = vector.load %arg18[%c7_189, %c0_190, %c0_191] : memref<8x8x1xf32, #tpu.memory_space<vmem>>, vector<1x8x1xf32>
      %340 = vector.shape_cast %339 : vector<1x8x1xf32> to vector<8x1xf32>
      %341 = vector.shape_cast %338 : vector<8x1xf32> to vector<1x8x1xf32>
      tpu.vector_store %arg18[%c7_189, %c0_190, %c0_191], %341 {strides = array<i32>} : memref<8x8x1xf32, #tpu.memory_space<vmem>>, vector<1x8x1xf32>,
      %cst_192 = arith.constant dense<0.000000e+00> : vector<8x16xf32>
      %342 = tpu.matmul %332, %315, %cst_192 {dimension_numbers = #tpu.dot_dimension_numbers<[1], [0], [0], [1], [0, 0, 1, 1], [], []>} : vector<8x128xf32>, vector<128x16xf32>, vector<8x16xf32> -> vector<8x16xf32>
      %c7_193 = arith.constant 7 : index
      %c0_194 = arith.constant 0 : index
      %c0_195 = arith.constant 0 : index
      %343 = vector.load %arg19[%c7_193, %c0_194, %c0_195] : memref<8x8x16xf32, #tpu.memory_space<vmem>>, vector<1x8x16xf32>
      %344 = vector.shape_cast %343 : vector<1x8x16xf32> to vector<8x16xf32>
      %345 = vector.broadcast %329 : vector<8x1xf32> to vector<8x16xf32>
      %346 = arith.mulf %345, %344 : vector<8x16xf32>
      %347 = arith.addf %346, %342 : vector<8x16xf32>
      %c7_196 = arith.constant 7 : index
      %c0_197 = arith.constant 0 : index
      %c0_198 = arith.constant 0 : index
      %348 = vector.load %arg19[%c7_196, %c0_197, %c0_198] : memref<8x8x16xf32, #tpu.memory_space<vmem>>, vector<1x8x16xf32>
      %349 = vector.shape_cast %348 : vector<1x8x16xf32> to vector<8x16xf32>
      %350 = vector.shape_cast %347 : vector<8x16xf32> to vector<1x8x16xf32>
      tpu.vector_store %arg19[%c7_196, %c0_197, %c0_198], %350 {strides = array<i32>} : memref<8x8x16xf32, #tpu.memory_space<vmem>>, vector<1x8x16xf32>,
      %c7_199 = arith.constant 7 : index
      %c0_200 = arith.constant 0 : index
      %c0_201 = arith.constant 0 : index
      %351 = vector.load %arg17[%c7_199, %c0_200, %c0_201] : memref<8x8x1xf32, #tpu.memory_space<vmem>>, vector<1x8x1xf32>
      %352 = vector.shape_cast %351 : vector<1x8x1xf32> to vector<8x1xf32>
      %353 = vector.shape_cast %323 : vector<8x1xf32> to vector<1x8x1xf32>
      tpu.vector_store %arg17[%c7_199, %c0_200, %c0_201], %353 {strides = array<i32>} : memref<8x8x1xf32, #tpu.memory_space<vmem>>, vector<1x8x1xf32>,
    } else {
    }
    %c1_i32_4 = arith.constant 1 : i32
    %12 = arith.cmpi eq, %arg2, %c1_i32_4 : i32
    %13 = arith.extui %12 : i1 to i32
    %c0_i32_5 = arith.constant 0 : i32
    %14 = arith.cmpi ne, %13, %c0_i32_5 : i32
    scf.if %14 {
      %c0 = arith.constant 0 : index
      %c0_6 = arith.constant 0 : index
      %c0_7 = arith.constant 0 : index
      %15 = vector.load %arg4[%c0, %c0_6, %c0_7] : memref<1x8x128xf32, #tpu.memory_space<vmem>>, vector<1x8x128xf32>
      %16 = vector.shape_cast %15 : vector<1x8x128xf32> to vector<8x128xf32>
      %c0_8 = arith.constant 0 : index
      %c0_9 = arith.constant 0 : index
      %17 = vector.load %arg14[%c0_8, %c0_9] : memref<1x128xf32, #tpu.memory_space<vmem>>, vector<1x128xf32>
      %18 = vector.broadcast %17 : vector<1x128xf32> to vector<8x128xf32>
      %19 = arith.addf %16, %18 : vector<8x128xf32>
      %c0_10 = arith.constant 0 : index
      %c0_11 = arith.constant 0 : index
      %c0_12 = arith.constant 0 : index
      %20 = vector.load %arg18[%c0_10, %c0_11, %c0_12] : memref<8x8x1xf32, #tpu.memory_space<vmem>>, vector<1x8x1xf32>
      %21 = vector.shape_cast %20 : vector<1x8x1xf32> to vector<8x1xf32>
      %cst_13 = arith.constant 0.000000e+00 : f32
      %22 = vector.broadcast %cst_13 : f32 to vector<8x1xf32>
      %23 = arith.cmpf ogt, %21, %22 : vector<8x1xf32>
      %24 = tpu.reciprocal %21 : vector<8x1xf32> -> vector<8x1xf32>
      %cst_14 = arith.constant 0.000000e+00 : f32
      %25 = vector.broadcast %cst_14 : f32 to vector<8x1xf32>
      %26 = arith.select %23, %24, %25 : vector<8x1xi1>, vector<8x1xf32>
      %c0_15 = arith.constant 0 : index
      %c0_16 = arith.constant 0 : index
      %c0_17 = arith.constant 0 : index
      %27 = vector.load %arg19[%c0_15, %c0_16, %c0_17] : memref<8x8x16xf32, #tpu.memory_space<vmem>>, vector<1x8x16xf32>
      %28 = vector.shape_cast %27 : vector<1x8x16xf32> to vector<8x16xf32>
      %29 = vector.broadcast %26 : vector<8x1xf32> to vector<8x16xf32>
      %30 = arith.mulf %28, %29 : vector<8x16xf32>
      %c0_18 = arith.constant 0 : index
      %c0_19 = arith.constant 0 : index
      %31 = vector.load %arg13[%c0_18, %c0_19] : memref<128x128xf32, #tpu.memory_space<vmem>>, vector<16x128xf32>
      %cst_20 = arith.constant dense<0.000000e+00> : vector<8x128xf32>
      %32 = tpu.matmul %30, %31, %cst_20 {dimension_numbers = #tpu.dot_dimension_numbers<[1], [0], [0], [1], [0, 0, 1, 1], [], []>} : vector<8x16xf32>, vector<16x128xf32>, vector<8x128xf32> -> vector<8x128xf32>
      %33 = arith.addf %19, %32 : vector<8x128xf32>
      %c1 = arith.constant 1 : index
      %c0_21 = arith.constant 0 : index
      %c0_22 = arith.constant 0 : index
      %34 = vector.load %arg18[%c1, %c0_21, %c0_22] : memref<8x8x1xf32, #tpu.memory_space<vmem>>, vector<1x8x1xf32>
      %35 = vector.shape_cast %34 : vector<1x8x1xf32> to vector<8x1xf32>
      %cst_23 = arith.constant 0.000000e+00 : f32
      %36 = vector.broadcast %cst_23 : f32 to vector<8x1xf32>
      %37 = arith.cmpf ogt, %35, %36 : vector<8x1xf32>
      %38 = tpu.reciprocal %35 : vector<8x1xf32> -> vector<8x1xf32>
      %cst_24 = arith.constant 0.000000e+00 : f32
      %39 = vector.broadcast %cst_24 : f32 to vector<8x1xf32>
      %40 = arith.select %37, %38, %39 : vector<8x1xi1>, vector<8x1xf32>
      %c1_25 = arith.constant 1 : index
      %c0_26 = arith.constant 0 : index
      %c0_27 = arith.constant 0 : index
      %41 = vector.load %arg19[%c1_25, %c0_26, %c0_27] : memref<8x8x16xf32, #tpu.memory_space<vmem>>, vector<1x8x16xf32>
      %42 = vector.shape_cast %41 : vector<1x8x16xf32> to vector<8x16xf32>
      %43 = vector.broadcast %40 : vector<8x1xf32> to vector<8x16xf32>
      %44 = arith.mulf %42, %43 : vector<8x16xf32>
      %c16 = arith.constant 16 : index
      %c0_28 = arith.constant 0 : index
      %45 = vector.load %arg13[%c16, %c0_28] : memref<128x128xf32, #tpu.memory_space<vmem>>, vector<16x128xf32>
      %cst_29 = arith.constant dense<0.000000e+00> : vector<8x128xf32>
      %46 = tpu.matmul %44, %45, %cst_29 {dimension_numbers = #tpu.dot_dimension_numbers<[1], [0], [0], [1], [0, 0, 1, 1], [], []>} : vector<8x16xf32>, vector<16x128xf32>, vector<8x128xf32> -> vector<8x128xf32>
      %47 = arith.addf %33, %46 : vector<8x128xf32>
      %c2 = arith.constant 2 : index
      %c0_30 = arith.constant 0 : index
      %c0_31 = arith.constant 0 : index
      %48 = vector.load %arg18[%c2, %c0_30, %c0_31] : memref<8x8x1xf32, #tpu.memory_space<vmem>>, vector<1x8x1xf32>
      %49 = vector.shape_cast %48 : vector<1x8x1xf32> to vector<8x1xf32>
      %cst_32 = arith.constant 0.000000e+00 : f32
      %50 = vector.broadcast %cst_32 : f32 to vector<8x1xf32>
      %51 = arith.cmpf ogt, %49, %50 : vector<8x1xf32>
      %52 = tpu.reciprocal %49 : vector<8x1xf32> -> vector<8x1xf32>
      %cst_33 = arith.constant 0.000000e+00 : f32
      %53 = vector.broadcast %cst_33 : f32 to vector<8x1xf32>
      %54 = arith.select %51, %52, %53 : vector<8x1xi1>, vector<8x1xf32>
      %c2_34 = arith.constant 2 : index
      %c0_35 = arith.constant 0 : index
      %c0_36 = arith.constant 0 : index
      %55 = vector.load %arg19[%c2_34, %c0_35, %c0_36] : memref<8x8x16xf32, #tpu.memory_space<vmem>>, vector<1x8x16xf32>
      %56 = vector.shape_cast %55 : vector<1x8x16xf32> to vector<8x16xf32>
      %57 = vector.broadcast %54 : vector<8x1xf32> to vector<8x16xf32>
      %58 = arith.mulf %56, %57 : vector<8x16xf32>
      %c32 = arith.constant 32 : index
      %c0_37 = arith.constant 0 : index
      %59 = vector.load %arg13[%c32, %c0_37] : memref<128x128xf32, #tpu.memory_space<vmem>>, vector<16x128xf32>
      %cst_38 = arith.constant dense<0.000000e+00> : vector<8x128xf32>
      %60 = tpu.matmul %58, %59, %cst_38 {dimension_numbers = #tpu.dot_dimension_numbers<[1], [0], [0], [1], [0, 0, 1, 1], [], []>} : vector<8x16xf32>, vector<16x128xf32>, vector<8x128xf32> -> vector<8x128xf32>
      %61 = arith.addf %47, %60 : vector<8x128xf32>
      %c3 = arith.constant 3 : index
      %c0_39 = arith.constant 0 : index
      %c0_40 = arith.constant 0 : index
      %62 = vector.load %arg18[%c3, %c0_39, %c0_40] : memref<8x8x1xf32, #tpu.memory_space<vmem>>, vector<1x8x1xf32>
      %63 = vector.shape_cast %62 : vector<1x8x1xf32> to vector<8x1xf32>
      %cst_41 = arith.constant 0.000000e+00 : f32
      %64 = vector.broadcast %cst_41 : f32 to vector<8x1xf32>
      %65 = arith.cmpf ogt, %63, %64 : vector<8x1xf32>
      %66 = tpu.reciprocal %63 : vector<8x1xf32> -> vector<8x1xf32>
      %cst_42 = arith.constant 0.000000e+00 : f32
      %67 = vector.broadcast %cst_42 : f32 to vector<8x1xf32>
      %68 = arith.select %65, %66, %67 : vector<8x1xi1>, vector<8x1xf32>
      %c3_43 = arith.constant 3 : index
      %c0_44 = arith.constant 0 : index
      %c0_45 = arith.constant 0 : index
      %69 = vector.load %arg19[%c3_43, %c0_44, %c0_45] : memref<8x8x16xf32, #tpu.memory_space<vmem>>, vector<1x8x16xf32>
      %70 = vector.shape_cast %69 : vector<1x8x16xf32> to vector<8x16xf32>
      %71 = vector.broadcast %68 : vector<8x1xf32> to vector<8x16xf32>
      %72 = arith.mulf %70, %71 : vector<8x16xf32>
      %c48 = arith.constant 48 : index
      %c0_46 = arith.constant 0 : index
      %73 = vector.load %arg13[%c48, %c0_46] : memref<128x128xf32, #tpu.memory_space<vmem>>, vector<16x128xf32>
      %cst_47 = arith.constant dense<0.000000e+00> : vector<8x128xf32>
      %74 = tpu.matmul %72, %73, %cst_47 {dimension_numbers = #tpu.dot_dimension_numbers<[1], [0], [0], [1], [0, 0, 1, 1], [], []>} : vector<8x16xf32>, vector<16x128xf32>, vector<8x128xf32> -> vector<8x128xf32>
      %75 = arith.addf %61, %74 : vector<8x128xf32>
      %c4 = arith.constant 4 : index
      %c0_48 = arith.constant 0 : index
      %c0_49 = arith.constant 0 : index
      %76 = vector.load %arg18[%c4, %c0_48, %c0_49] : memref<8x8x1xf32, #tpu.memory_space<vmem>>, vector<1x8x1xf32>
      %77 = vector.shape_cast %76 : vector<1x8x1xf32> to vector<8x1xf32>
      %cst_50 = arith.constant 0.000000e+00 : f32
      %78 = vector.broadcast %cst_50 : f32 to vector<8x1xf32>
      %79 = arith.cmpf ogt, %77, %78 : vector<8x1xf32>
      %80 = tpu.reciprocal %77 : vector<8x1xf32> -> vector<8x1xf32>
      %cst_51 = arith.constant 0.000000e+00 : f32
      %81 = vector.broadcast %cst_51 : f32 to vector<8x1xf32>
      %82 = arith.select %79, %80, %81 : vector<8x1xi1>, vector<8x1xf32>
      %c4_52 = arith.constant 4 : index
      %c0_53 = arith.constant 0 : index
      %c0_54 = arith.constant 0 : index
      %83 = vector.load %arg19[%c4_52, %c0_53, %c0_54] : memref<8x8x16xf32, #tpu.memory_space<vmem>>, vector<1x8x16xf32>
      %84 = vector.shape_cast %83 : vector<1x8x16xf32> to vector<8x16xf32>
      %85 = vector.broadcast %82 : vector<8x1xf32> to vector<8x16xf32>
      %86 = arith.mulf %84, %85 : vector<8x16xf32>
      %c64 = arith.constant 64 : index
      %c0_55 = arith.constant 0 : index
      %87 = vector.load %arg13[%c64, %c0_55] : memref<128x128xf32, #tpu.memory_space<vmem>>, vector<16x128xf32>
      %cst_56 = arith.constant dense<0.000000e+00> : vector<8x128xf32>
      %88 = tpu.matmul %86, %87, %cst_56 {dimension_numbers = #tpu.dot_dimension_numbers<[1], [0], [0], [1], [0, 0, 1, 1], [], []>} : vector<8x16xf32>, vector<16x128xf32>, vector<8x128xf32> -> vector<8x128xf32>
      %89 = arith.addf %75, %88 : vector<8x128xf32>
      %c5 = arith.constant 5 : index
      %c0_57 = arith.constant 0 : index
      %c0_58 = arith.constant 0 : index
      %90 = vector.load %arg18[%c5, %c0_57, %c0_58] : memref<8x8x1xf32, #tpu.memory_space<vmem>>, vector<1x8x1xf32>
      %91 = vector.shape_cast %90 : vector<1x8x1xf32> to vector<8x1xf32>
      %cst_59 = arith.constant 0.000000e+00 : f32
      %92 = vector.broadcast %cst_59 : f32 to vector<8x1xf32>
      %93 = arith.cmpf ogt, %91, %92 : vector<8x1xf32>
      %94 = tpu.reciprocal %91 : vector<8x1xf32> -> vector<8x1xf32>
      %cst_60 = arith.constant 0.000000e+00 : f32
      %95 = vector.broadcast %cst_60 : f32 to vector<8x1xf32>
      %96 = arith.select %93, %94, %95 : vector<8x1xi1>, vector<8x1xf32>
      %c5_61 = arith.constant 5 : index
      %c0_62 = arith.constant 0 : index
      %c0_63 = arith.constant 0 : index
      %97 = vector.load %arg19[%c5_61, %c0_62, %c0_63] : memref<8x8x16xf32, #tpu.memory_space<vmem>>, vector<1x8x16xf32>
      %98 = vector.shape_cast %97 : vector<1x8x16xf32> to vector<8x16xf32>
      %99 = vector.broadcast %96 : vector<8x1xf32> to vector<8x16xf32>
      %100 = arith.mulf %98, %99 : vector<8x16xf32>
      %c80 = arith.constant 80 : index
      %c0_64 = arith.constant 0 : index
      %101 = vector.load %arg13[%c80, %c0_64] : memref<128x128xf32, #tpu.memory_space<vmem>>, vector<16x128xf32>
      %cst_65 = arith.constant dense<0.000000e+00> : vector<8x128xf32>
      %102 = tpu.matmul %100, %101, %cst_65 {dimension_numbers = #tpu.dot_dimension_numbers<[1], [0], [0], [1], [0, 0, 1, 1], [], []>} : vector<8x16xf32>, vector<16x128xf32>, vector<8x128xf32> -> vector<8x128xf32>
      %103 = arith.addf %89, %102 : vector<8x128xf32>
      %c6 = arith.constant 6 : index
      %c0_66 = arith.constant 0 : index
      %c0_67 = arith.constant 0 : index
      %104 = vector.load %arg18[%c6, %c0_66, %c0_67] : memref<8x8x1xf32, #tpu.memory_space<vmem>>, vector<1x8x1xf32>
      %105 = vector.shape_cast %104 : vector<1x8x1xf32> to vector<8x1xf32>
      %cst_68 = arith.constant 0.000000e+00 : f32
      %106 = vector.broadcast %cst_68 : f32 to vector<8x1xf32>
      %107 = arith.cmpf ogt, %105, %106 : vector<8x1xf32>
      %108 = tpu.reciprocal %105 : vector<8x1xf32> -> vector<8x1xf32>
      %cst_69 = arith.constant 0.000000e+00 : f32
      %109 = vector.broadcast %cst_69 : f32 to vector<8x1xf32>
      %110 = arith.select %107, %108, %109 : vector<8x1xi1>, vector<8x1xf32>
      %c6_70 = arith.constant 6 : index
      %c0_71 = arith.constant 0 : index
      %c0_72 = arith.constant 0 : index
      %111 = vector.load %arg19[%c6_70, %c0_71, %c0_72] : memref<8x8x16xf32, #tpu.memory_space<vmem>>, vector<1x8x16xf32>
      %112 = vector.shape_cast %111 : vector<1x8x16xf32> to vector<8x16xf32>
      %113 = vector.broadcast %110 : vector<8x1xf32> to vector<8x16xf32>
      %114 = arith.mulf %112, %113 : vector<8x16xf32>
      %c96 = arith.constant 96 : index
      %c0_73 = arith.constant 0 : index
      %115 = vector.load %arg13[%c96, %c0_73] : memref<128x128xf32, #tpu.memory_space<vmem>>, vector<16x128xf32>
      %cst_74 = arith.constant dense<0.000000e+00> : vector<8x128xf32>
      %116 = tpu.matmul %114, %115, %cst_74 {dimension_numbers = #tpu.dot_dimension_numbers<[1], [0], [0], [1], [0, 0, 1, 1], [], []>} : vector<8x16xf32>, vector<16x128xf32>, vector<8x128xf32> -> vector<8x128xf32>
      %117 = arith.addf %103, %116 : vector<8x128xf32>
      %c7 = arith.constant 7 : index
      %c0_75 = arith.constant 0 : index
      %c0_76 = arith.constant 0 : index
      %118 = vector.load %arg18[%c7, %c0_75, %c0_76] : memref<8x8x1xf32, #tpu.memory_space<vmem>>, vector<1x8x1xf32>
      %119 = vector.shape_cast %118 : vector<1x8x1xf32> to vector<8x1xf32>
      %cst_77 = arith.constant 0.000000e+00 : f32
      %120 = vector.broadcast %cst_77 : f32 to vector<8x1xf32>
      %121 = arith.cmpf ogt, %119, %120 : vector<8x1xf32>
      %122 = tpu.reciprocal %119 : vector<8x1xf32> -> vector<8x1xf32>
      %cst_78 = arith.constant 0.000000e+00 : f32
      %123 = vector.broadcast %cst_78 : f32 to vector<8x1xf32>
      %124 = arith.select %121, %122, %123 : vector<8x1xi1>, vector<8x1xf32>
      %c7_79 = arith.constant 7 : index
      %c0_80 = arith.constant 0 : index
      %c0_81 = arith.constant 0 : index
      %125 = vector.load %arg19[%c7_79, %c0_80, %c0_81] : memref<8x8x16xf32, #tpu.memory_space<vmem>>, vector<1x8x16xf32>
      %126 = vector.shape_cast %125 : vector<1x8x16xf32> to vector<8x16xf32>
      %127 = vector.broadcast %124 : vector<8x1xf32> to vector<8x16xf32>
      %128 = arith.mulf %126, %127 : vector<8x16xf32>
      %c112 = arith.constant 112 : index
      %c0_82 = arith.constant 0 : index
      %129 = vector.load %arg13[%c112, %c0_82] : memref<128x128xf32, #tpu.memory_space<vmem>>, vector<16x128xf32>
      %cst_83 = arith.constant dense<0.000000e+00> : vector<8x128xf32>
      %130 = tpu.matmul %128, %129, %cst_83 {dimension_numbers = #tpu.dot_dimension_numbers<[1], [0], [0], [1], [0, 0, 1, 1], [], []>} : vector<8x16xf32>, vector<16x128xf32>, vector<8x128xf32> -> vector<8x128xf32>
      %131 = arith.addf %117, %130 : vector<8x128xf32>
      %c0_84 = arith.constant 0 : index
      %c0_85 = arith.constant 0 : index
      %c0_86 = arith.constant 0 : index
      %132 = vector.load %arg15[%c0_84, %c0_85, %c0_86] : memref<1x8x128xf32, #tpu.memory_space<vmem>>, vector<1x8x128xf32>
      %133 = vector.shape_cast %132 : vector<1x8x128xf32> to vector<8x128xf32>
      %134 = vector.shape_cast %131 : vector<8x128xf32> to vector<1x8x128xf32>
      tpu.vector_store %arg15[%c0_84, %c0_85, %c0_86], %134 {strides = array<i32>} : memref<1x8x128xf32, #tpu.memory_space<vmem>>, vector<1x8x128xf32>,
    } else {
    }
    return
  }
  func.func @transform_0(%arg0: i32, %arg1: i32, %arg2: i32, %arg3: memref<4xi32, #tpu.memory_space<smem>>) -> (i32, i32, i32) {
    %c0_i32 = arith.constant 0 : i32
    %c0_i32_0 = arith.constant 0 : i32
    return %arg0, %arg1, %c0_i32 : i32, i32, i32
  }
  func.func @transform_1(%arg0: i32, %arg1: i32, %arg2: i32, %arg3: memref<4xi32, #tpu.memory_space<smem>>) -> (i32, i32, i32) {
    %c0_i32 = arith.constant 0 : i32
    %c0_i32_0 = arith.constant 0 : i32
    return %arg0, %arg2, %c0_i32 : i32, i32, i32
  }
  func.func @transform_2(%arg0: i32, %arg1: i32, %arg2: i32, %arg3: memref<4xi32, #tpu.memory_space<smem>>) -> (i32, i32, i32) {
    %c0_i32 = arith.constant 0 : i32
    return %arg0, %arg1, %arg2 : i32, i32, i32
  }
  func.func @transform_3(%arg0: i32, %arg1: i32, %arg2: i32, %arg3: memref<4xi32, #tpu.memory_space<smem>>) -> (i32, i32) {
    %c0_i32 = arith.constant 0 : i32
    %c0_i32_0 = arith.constant 0 : i32
    %c0_i32_1 = arith.constant 0 : i32
    return %c0_i32, %c0_i32_0 : i32, i32
  }
  func.func @transform_4(%arg0: i32, %arg1: i32, %arg2: i32, %arg3: memref<4xi32, #tpu.memory_space<smem>>) -> (i32, i32) {
    %c0_i32 = arith.constant 0 : i32
    %c0_i32_0 = arith.constant 0 : i32
    %c0_i32_1 = arith.constant 0 : i32
    return %c0_i32, %c0_i32_0 : i32, i32
  }
  func.func @transform_5(%arg0: i32, %arg1: i32, %arg2: i32, %arg3: memref<4xi32, #tpu.memory_space<smem>>) -> (i32, i32) {
    %c0_i32 = arith.constant 0 : i32
    %c0_i32_0 = arith.constant 0 : i32
    %c0_i32_1 = arith.constant 0 : i32
    return %c0_i32, %c0_i32_0 : i32, i32
  }
  func.func @transform_6(%arg0: i32, %arg1: i32, %arg2: i32, %arg3: memref<4xi32, #tpu.memory_space<smem>>) -> (i32, i32) {
    %c0_i32 = arith.constant 0 : i32
    %c0_i32_0 = arith.constant 0 : i32
    %c0_i32_1 = arith.constant 0 : i32
    return %c0_i32, %c0_i32_0 : i32, i32
  }
  func.func @transform_7(%arg0: i32, %arg1: i32, %arg2: i32, %arg3: memref<4xi32, #tpu.memory_space<smem>>) -> (i32, i32) {
    %c0_i32 = arith.constant 0 : i32
    %c0_i32_0 = arith.constant 0 : i32
    %c0_i32_1 = arith.constant 0 : i32
    return %c0_i32, %c0_i32_0 : i32, i32
  }
  func.func @transform_8(%arg0: i32, %arg1: i32, %arg2: i32, %arg3: memref<4xi32, #tpu.memory_space<smem>>) -> (i32, i32) {
    %c0_i32 = arith.constant 0 : i32
    %c0_i32_0 = arith.constant 0 : i32
    %c0_i32_1 = arith.constant 0 : i32
    return %c0_i32, %c0_i32_0 : i32, i32
  }
  func.func @transform_9(%arg0: i32, %arg1: i32, %arg2: i32, %arg3: memref<4xi32, #tpu.memory_space<smem>>) -> (i32, i32) {
    %c0_i32 = arith.constant 0 : i32
    %c0_i32_0 = arith.constant 0 : i32
    %c0_i32_1 = arith.constant 0 : i32
    return %c0_i32, %c0_i32_0 : i32, i32
  }
  func.func @transform_10(%arg0: i32, %arg1: i32, %arg2: i32, %arg3: memref<4xi32, #tpu.memory_space<smem>>) -> (i32, i32) {
    %c0_i32 = arith.constant 0 : i32
    %c0_i32_0 = arith.constant 0 : i32
    %c0_i32_1 = arith.constant 0 : i32
    return %c0_i32, %c0_i32_0 : i32, i32
  }
  func.func @transform_11(%arg0: i32, %arg1: i32, %arg2: i32, %arg3: memref<4xi32, #tpu.memory_space<smem>>) -> (i32, i32, i32) {
    %c0_i32 = arith.constant 0 : i32
    %c0_i32_0 = arith.constant 0 : i32
    return %arg0, %arg1, %c0_i32 : i32, i32, i32
  }
}

</mosaic_0001>

<bundles_post_ra>
// kernel: tpu_custom_call.1
= control target key start
LH: loop header
LB: loop body
LE: loop exit
PB: predicated region body
PF: predicated region fallthrough
CT: control target
= control target key end

     0   :  { %s8419_s0 = inlined_call_operand.hbm [shape: s32[4], index: 0, kind: input, shape index: {}]   ;;  %s8420_s1 = inlined_call_operand.hbm [shape: f32[2,8,128], index: 1, kind: input, shape index: {}]   ;;  %s8421_s2 = inlined_call_operand.hbm [shape: f32[2,256,128], index: 2, kind: input, shape index: {}]   ;;  %s8422_s3 = inlined_call_operand.vmem [shape: s8[2,8,256], index: 3, kind: input, shape index: {}]   ;;  %s8423_s4 = inlined_call_operand.vmem [shape: f32[1,128], index: 4, kind: input, shape index: {}]   ;;  %s8424_s5 = inlined_call_operand.vmem [shape: f32[1,128], index: 5, kind: input, shape index: {}]   ;;  %s8425_s6 = inlined_call_operand.hbm [shape: f32[128,128], index: 6, kind: input, shape index: {}]   ;;  %s8426_s7 = inlined_call_operand.vmem [shape: f32[1,128], index: 7, kind: input, shape index: {}]   ;;  %s8427_s8 = inlined_call_operand.hbm [shape: f32[128,256], index: 8, kind: input, shape index: {}]   ;;  %s8428_s9 = inlined_call_operand.vmem [shape: f32[1,256], index: 9, kind: input, shape index: {}]   ;;  %s8429_s10 = inlined_call_operand.hbm [shape: f32[128,128], index: 10, kind: input, shape index: {}]   ;;  %s8430_s11 = inlined_call_operand.vmem [shape: f32[1,128], index: 11, kind: input, shape index: {}]   ;;  %s8431_s12 = inlined_call_operand.hbm [shape: f32[2,8,128], index: 12, kind: output, shape index: {}]  }
   0x1   :  { %8448 = sst [smem:[#allocation32_spill]] %s8420_s1  ;;  %s6627_s23 = scalar_lea.hbm %s8419_s0, 16 }
   0x2   :  { %8449 = sst [smem:[#allocation33_spill]] %s8422_s3  ;;  %p6628_p0 = scmp.ne.s32.totalorder %s8419_s0, %s6627_s23 }
   0x3   :  { %8450 = sst [smem:[#allocation34_spill]] %s8423_s4  ;;  %p6631_p1 = scmp.lt.u32.totalorder %s6627_s23, %s8419_s0 }
   0x4   :  { %8451 = sst [smem:[#allocation35_spill]] %s8424_s5 }
   0x5   :  { %8452 = sst [smem:[#allocation36_spill]] %s8425_s6  ;;  %p6633_p2 = pnand %p6631_p1, %p6628_p0 }
   0x6   :  { %8453 = sst [smem:[#allocation37_spill]] %s8426_s7 }
   0x7   :  { %8454 = sst [smem:[#allocation38_spill]] %s8427_s8 }
   0x8   :  { %8455 = sst [smem:[#allocation39_spill]] %s8428_s9 }
   0x9   :  { %8456 = sst [smem:[#allocation40_spill]] %s8429_s10 }
   0xa   :  { %8457 = sst [smem:[#allocation41_spill]] %s8430_s11 }
   0xb   :  { %8458 = sst [smem:[#allocation42_spill]] %s8431_s12 }
   0xc   :  { %6636 = shalt.err (!%p6633_p2)  }
   0xd   :  { %s6919_s28 = smov [#allocation7]  }
   0xe   :  { %18 = dma.hbm_to_smem %s8419_s0, 16, %s6919_s28, [#allocation6] }
   0xf   :  { %6853 = dma.done.wait [#allocation6], 16 }
  0x10   :  { %6854 = vsyncadd [#allocation6], 4294967280 }
  0x11   :  { %20 = sfence }
  0x12   :  { %21 = vsyncpa [#allocation9], 0 }
  0x13   :  { %23 = vsyncpa [#allocation9 + $0x1], 0 }
  0x14   :  { %24 = vsyncpa [#allocation12], 0 }
  0x15   :  { %26 = vsyncpa [#allocation12 + $0x1], 0 }
  0x16   :  { %27 = vsyncpa [#allocation15], 0 }
  0x17   :  { %28 = vsyncpa [#allocation10], 0 }
  0x18   :  { %30 = vsyncpa [#allocation10 + $0x1], 0  ;;  %s7026_s13 = smov 0   ;;  %s7028_s14 = smov 0  }
  0x19   :  { %s7030_s15 = smov 0   ;;  %s7032_s16 = smov 0  }
  0x1a   :  { %s7034_s17 = smov 0   ;;  %s7036_s0 = smov 0  }
  0x1b   :  { %s7038_s18 = smov 0   ;;  %s7040_s19 = smov 0  }
  0x1c   :  { %s7042_s20 = smov 0   ;;  %s7044_s21 = smov 0  }
  0x1d   :  { %s7046_s22 = smov 0  }
  0x1e LB: > { %8459 = sst [smem:[#allocation24_spill]] %s6897_s0  ;;  %s7080_s23 = sadd.s32 4294967295, %s6917_s22   ;;  %s6917_s22 = sphi %s7046_s22, %s36_s22   ;;  %s6913_s21 = sphi %s7044_s21, %s8529_s21   ;;  %s6909_s20 = sphi %s7042_s20, %s8528_s20   ;;  %s6905_s19 = sphi %s7040_s19, %s8527_s19   ;;  %s6901_s18 = sphi %s7038_s18, %s8526_s18   ;;  %s6897_s0 = sphi %s7036_s0, %s8518_s0   ;;  %s6893_s17 = sphi %s7034_s17, %s8525_s17   ;;  %s6889_s16 = sphi %s7032_s16, %s8524_s16   ;;  %s6885_s15 = sphi %s7030_s15, %s8523_s15   ;;  %s6881_s14 = sphi %s7028_s14, %s8522_s14   ;;  %s6877_s13 = sphi %s7026_s13, %s8521_s13  }
  0x1f   : > { %8460 = sst [smem:[#allocation25_spill]] %s6901_s18  ;;  %p105_p3 = scmp.ne.s32.totalorder %s6881_s14, %s6877_s13 }
  0x20   : > { %8461 = sst [smem:[#allocation26_spill]] %s6905_s19  ;;  %p8433_p4 = scmp.eq.s32.totalorder %s7080_s23, 0 }
  0x21   : > { %p4169_p5 = scmp.ge.s32.totalorder %s6917_s22, 1  ;;  %p342_p6 = scmp.lt.s32.totalorder %s6917_s22, 5 }
  0x22   : > { %p7088_p7 = por %p105_p3, %p8433_p4  ;;  %s6920_s26 = smov [#allocation13]  }
  0x23   : > { %p7092_p8 = pnand %p4169_p5, %p342_p6  ;;  %s360_s27 = sshll.u32 %s6920_s26, 4  ;;  %s361_s27 = int_to_ptr.vmem [resolvable:$true] %s360_s27 }
  0x24   : > { %s8462_s24 = scalar_select %p7088_p7, 1, 0 }
  0x25   : > { %s8463_s25 = scalar_select %p7092_p8, 1, 0 }
  0x26   : > { %p5869_p9 = pneg %p7092_p8  ;;  %s6921_s29 = smov [#allocation14]  }
  0x27   : > { %s376_s30 = sshll.u32 %s6921_s29, 4  ;;  %s8465_s6 = sld [smem:[#allocation36_spill]]  ;;  %s7104_s30 = int_to_ptr.vmem [resolvable:$true] %s376_s30 }
  0x28   : > { %p7100_p10 = pnand %p5869_p9, %p8433_p4 }
  0x2a   : > { %p7114_p12 = pneg %p7100_p10 }
  0x2d   : > { %s6637_s11 = scalar_lea.hbm %s8465_s6, 2048 }
  0x2e   : > { %p6638_p11 = scmp.ne.s32.totalorder %s8465_s6, %s6637_s11  ;;  %p6644_p1 = scmp.lt.u32.totalorder %s6637_s11, %s8465_s6 }
  0x30   : > { %p6640_p13 = pnand %p7114_p12, %p6638_p11 }
  0x32   : > { %p6641_p0 = pneg %p6640_p13 }
  0x34   : > { %p6646_p2 = pnand %p6644_p1, %p6641_p0 }
  0x36   : > { %6649 = shalt.err (!%p6646_p2)
}
  0x37   : > { %s6650_s12 = scalar_lea.vmem %s361_s27, 2048  ;;  %p6658_p9 = scmp.lt.s32.totalorder %s361_s27, %s361_s27 }
  0x38   : > { %p6651_p3 = scmp.ne.s32.totalorder %s361_s27, %s6650_s12  ;;  %p6659_p4 = scmp.lt.s32.totalorder %s6650_s12, %s6650_s12 }
  0x3a   : > { %p6653_p5 = pnand %p6651_p3, %p7114_p12  ;;  %p6660_p7 = por %p6659_p4, %p6658_p9 }
  0x3c   : > { %p6654_p6 = pneg %p6653_p5 }
  0x3e   : > { %p6661_p8 = pnand %p6660_p7, %p6654_p6 }
  0x40   : > { %6664 = shalt.err (!%p6661_p8)
}
  0x41   : > { %s8438_s7 = smov 128   ;;  %s8440_s9 = smov 8  }
  0x42   : > { %5872 = dma.hbm_to_vmem [thread:$0]  (!%p7100_p10), %s8465_s6, 2048, %s361_s27, [#allocation12], %s8438_s7, %s8438_s7, %s8440_s9  }
  0x43   : > { %s8467_s8 = sld [smem:[#allocation38_spill]] }
  0x49   : > { %s6665_s4 = scalar_lea.hbm %s8467_s8, 4096 }
  0x4a   : > { %p6666_p4 = scmp.ne.s32.totalorder %s8467_s8, %s6665_s4  ;;  %p6672_p11 = scmp.lt.u32.totalorder %s6665_s4, %s8467_s8 }
  0x4c   : > { %p6668_p7 = pnand %p6666_p4, %p7114_p12 }
  0x4e   : > { %p6669_p8 = pneg %p6668_p7 }
  0x50   : > { %p6674_p13 = pnand %p6672_p11, %p6669_p8 }
  0x52   : > { %6677 = shalt.err (!%p6674_p13)
}
  0x53   : > { %s6678_s27 = scalar_lea.vmem %s7104_s30, 4096  ;;  %p6686_p3 = scmp.lt.s32.totalorder %s7104_s30, %s7104_s30 }
  0x54   : > { %p6679_p0 = scmp.ne.s32.totalorder %s7104_s30, %s6678_s27  ;;  %p6687_p5 = scmp.lt.s32.totalorder %s6678_s27, %s6678_s27 }
  0x56   : > { %p6681_p1 = pnand %p6679_p0, %p7114_p12  ;;  %p6688_p6 = por %p6687_p5, %p6686_p3 }
  0x58   : > { %p6682_p2 = pneg %p6681_p1 }
  0x5a   : > { %p6689_p9 = pnand %p6688_p6, %p6682_p2 }
  0x5c   : > { %6692 = shalt.err (!%p6689_p9)
}
  0x5d   : > { %s6924_s3 = smov 256   ;;  %s6925_s4 = smov 16  }
  0x5e   : > { %5875 = dma.hbm_to_vmem [thread:$0]  (!%p7100_p10), %s8467_s8, 4096, %s7104_s30, [#allocation15], %s6924_s3, %s6924_s3, %s6925_s4  }
  0x5f   : > { %s6926_s5 = smov [#allocation16]   ;;  %s8468_s10 = sld [smem:[#allocation40_spill]] }
  0x60   : > { %s392_s11 = sshll.u32 %s6926_s5, 4  ;;  %s393_s11 = int_to_ptr.vmem [resolvable:$true] %s392_s11 }
  0x65   : > { %s6693_s12 = scalar_lea.hbm %s8468_s10, 2048 }
  0x66   : > { %p6694_p4 = scmp.ne.s32.totalorder %s8468_s10, %s6693_s12  ;;  %p6700_p11 = scmp.lt.u32.totalorder %s6693_s12, %s8468_s10 }
  0x68   : > { %p6696_p7 = pnand %p6694_p4, %p7114_p12 }
  0x6a   : > { %p6697_p8 = pneg %p6696_p7 }
  0x6c   : > { %p6702_p13 = pnand %p6700_p11, %p6697_p8 }
  0x6e   : > { %6705 = shalt.err (!%p6702_p13)
}
  0x6f   : > { %s6706_s30 = scalar_lea.vmem %s393_s11, 2048  ;;  %p6714_p3 = scmp.lt.s32.totalorder %s393_s11, %s393_s11 }
  0x70   : > { %p6707_p0 = scmp.ne.s32.totalorder %s393_s11, %s6706_s30  ;;  %p6715_p5 = scmp.lt.s32.totalorder %s6706_s30, %s6706_s30 }
  0x72   : > { %p6709_p1 = pnand %p6707_p0, %p7114_p12  ;;  %p6716_p6 = por %p6715_p5, %p6714_p3 }
  0x74   : > { %p6710_p2 = pneg %p6709_p1 }
  0x76   : > { %p6717_p9 = pnand %p6716_p6, %p6710_p2 }
  0x78   : > { %6720 = shalt.err (!%p6717_p9)
}
  0x79   : > { %s8469_s7 = smov 8   ;;  %s8470_s3 = smov 128  }
  0x7a   : > { %5878 = dma.hbm_to_vmem [thread:$0]  (!%p7100_p10), %s8468_s10, 2048, %s393_s11, [#allocation15], %s8470_s3, %s8470_s3, %s8469_s7  }
  0x7b   : > { %s4168_s28 = sadd.s32 4294967294, %s6917_s22   ;;  %s48_s26 = sadd.s32 1, %s6909_s20 }
  0x7c   : > { %s55_s4 = sadd.s32 1, %s6913_s21  ;;  %p49_p12 = scmp.ge.s32.totalorder %s48_s26, 2 }
  0x7d   : > { %s64_s18 = sadd.s32 1, %s6897_s0  ;;  %p71_p4 = scmp.ne.s32.totalorder %s6897_s0, %s6893_s17 }
  0x7e   : > { %p72_p7 = scmp.eq.s32.totalorder %s6917_s22, 0  ;;  %s8531_s26 = smov (%p49_p12, %s48_s26), 0 }
  0x7f   : > { %8471 = sst [smem:[#allocation27_spill]] %s8531_s26  ;;  %s8533_s4 = smov (!%p49_p12, %s55_s4), %s6913_s21 }
  0x80   : > { %p7192_p10 = por %p72_p7, %p71_p4  ;;  %p77_p8 = scmp.ne.s32.totalorder %s6893_s17, %s6889_s16 }
  0x81   : > { %p57_p11 = scmp.ge.s32.totalorder %s8533_s4, 2  ;;  %s88_s5 = ssub.s32 %s6909_s20, %s8531_s26 }
  0x82   : > { %p8473_p13 = scmp.eq.s32.totalorder %s7080_s23, 0  ;;  %s92_s13 = sadd.s32 1, %s6885_s15 }
  0x83   : > { %s8535_s4 = smov (%p57_p11, %s8533_s4), 0  ;;  %p99_p1 = scmp.ne.s32.totalorder %s6885_s15, %s6881_s14 }
  0x84   : > { %p7205_p0 = por %p8473_p13, %p77_p8  ;;  %8475 = sst [smem:[#allocation28_spill]] %s8535_s4 }
  0x85   : > { %p329_p2 = scmp.eq.s32.totalorder %s7080_s23, 3  ;;  %s59_s29 = ssub.s32 %s6913_s21, %s8535_s4 }
  0x86   : > { %s8474_s11 = scalar_select %p7205_p0, 1, 0 }
  0x87   : > { %p335_p3 = scmp.eq.s32.totalorder %s4168_s28, 3  ;;  %p62_p5 = scmp.eq.s32.totalorder %s59_s29, 0 }
  0x88   : > { %s89_s12 = sor.u32 %s88_s5, %s59_s29  ;;  %p7219_p9 = por %p99_p1, %p72_p7 }
  0x89   : > { %p90_p6 = scmp.eq.s32.totalorder %s89_s12, 0  ;;  %p7232_p12 = por %p329_p2, %p71_p4 }
  0x8a   : > { %s7224_s30 = scalar_select %p62_p5, %s6897_s0, %s64_s18  }
  0x8b   : > { %s7227_s6 = scalar_select %p90_p6, %s6885_s15, %s92_s13  }
  0x8c   : > { %8477 = sst [smem:[#allocation29_spill]] %s7224_s30  ;;  %p7239_p11 = por %p335_p3, %p77_p8 }
  0x8d   : > { %8478 = sst [smem:[#allocation30_spill]] %s7227_s6  ;;  %p5893_p13 = scmp.lt.s32.totalorder %s6917_s22, 4 }
  0x8e   : > { %s8479_s9 = scalar_select %p7232_p12, 1, 0 }
  0x8f   : > { %s8480_s28 = scalar_select %p7239_p11, 1, 0 }
  0x90   : > { %s409_s5 = sand.u32 1, %s6897_s0   ;;  %s4175_s12 = sshll.u32 %s6913_s21, 7 }
  0x91   : > { %8481 = sst [smem:[#allocation31_spill]] %s8480_s28  ;;  %s4174_s29 = sshll.u32 %s409_s5, 3 }
  0x92   : > { %s8482_s1 = sld [smem:[#allocation32_spill]]  ;;  %s413_s13 = scalar_lea.vmem [#allocation8], %s4174_s29 }
  0x93   : > { %s421_s4 = sshll.u32 %s413_s13, 4  ;;  %p7255_p4 = pnand %p5893_p13, %p7192_p10  ;;  %s7251_s4 = int_to_ptr.vmem [resolvable:$true] %s421_s4 }
  0x94   : > { %p7261_p7 = pnand %p5893_p13, %p7219_p9 }
  0x95   : > { %p6723_p1 = pneg %p7255_p4 }
  0x98   : > { %s7249_s18 = scalar_lea.hbm %s8482_s1, %s4175_s12  ;;  %s410_s12 = scalar_lea.sflag [#allocation9], %s409_s5 }
  0x99   : > { %s6721_s30 = scalar_lea.hbm %s7249_s18, 128  ;;  %s6726_s27 = scalar_lea.hbm %s8482_s1, 256 }
  0x9a   : > { %p6722_p8 = scmp.ne.s32.totalorder %s7249_s18, %s6721_s30  ;;  %p6727_p3 = scmp.lt.u32.totalorder %s7249_s18, %s8482_s1 }
  0x9b   : > { %p6728_p5 = scmp.lt.u32.totalorder %s6726_s27, %s6721_s30  ;;  %p6730_p9 = scmp.lt.u32.totalorder %s6721_s30, %s7249_s18 }
  0x9c   : > { %p6724_p2 = pnand %p6723_p1, %p6722_p8 }
  0x9d   : > { %p6729_p6 = por %p6728_p5, %p6727_p3 }
  0x9e   : > { %p6725_p10 = pneg %p6724_p2 }
  0x9f   : > { %p6731_p13 = por %p6730_p9, %p6729_p6 }
  0xa1   : > { %p6732_p11 = pnand %p6731_p13, %p6725_p10 }
  0xa3   : > { %6735 = shalt.err (!%p6732_p11)
}
  0xa4   : > { %s6736_s5 = scalar_lea.vmem %s7251_s4, 128  ;;  %s6927_s19 = smov [#allocation8]  }
  0xa5   : > { %p6737_p8 = scmp.ne.s32.totalorder %s7251_s4, %s6736_s5  ;;  %s6741_s29 = sshll.u32 %s6927_s19, 4  ;;  %s6742_s29 = int_to_ptr.vmem [resolvable:$false] %s6741_s29 }
  0xa6   : > { %s6743_s0 = scalar_lea.vmem %s6742_s29, 256  ;;  %p6744_p0 = scmp.lt.s32.totalorder %s7251_s4, %s6742_s29 }
  0xa7   : > { %p6739_p2 = pnand %p6737_p8, %p6723_p1  ;;  %p6745_p3 = scmp.lt.s32.totalorder %s6743_s0, %s6736_s5 }
  0xa9   : > { %p6740_p12 = pneg %p6739_p2  ;;  %p6746_p5 = por %p6745_p3, %p6744_p0 }
  0xab   : > { %p6747_p6 = pnand %p6746_p5, %p6740_p12 }
  0xad   : > { %6750 = shalt.err (!%p6747_p6)
}
  0xae   : > { %5882 = dma.hbm_to_vmem [thread:$0]  (!%p7255_p4), %s7249_s18, 128, %s7251_s4, %s410_s12  }
  0xaf   : > { %s430_s30 = sand.u32 1, %s6885_s15   ;;  %s4177_s13 = sshll.u32 %s6909_s20, 4 }
  0xb0   : > { %s4176_s27 = sshll.u32 %s430_s30, 7  ;;  %s4178_s19 = sshll.u32 %s6913_s21, 5 }
  0xb1   : > { %s438_s29 = sadd.s32 %s4178_s19, %s4177_s13  ;;  %s432_s5 = scalar_lea.vmem [#allocation11], %s4176_s27 }
  0xb2   : > { %s441_s0 = sshll.u32 %s432_s5, 4  ;;  %s4179_s10 = sshll.u32 %s438_s29, 7  ;;  %s7294_s0 = int_to_ptr.vmem [resolvable:$true] %s441_s0 }
  0xb3   : > { %s7299_s6 = scalar_lea.hbm %s8421_s2, %s4179_s10  ;;  %s8485_s28 = sand.u32 1, %s6917_s22  }
  0xb4   : > { %s7303_s4 = scalar_lea.sflag [#allocation12], %s8485_s28  ;;  %s6751_s18 = scalar_lea.hbm %s7299_s6, 2048 }
  0xb5   : > { %p6752_p0 = scmp.ne.s32.totalorder %s7299_s6, %s6751_s18  ;;  %p6753_p12 = pneg %p7261_p7 }
  0xb6   : > { %s6756_s1 = scalar_lea.hbm %s8421_s2, 8192  ;;  %p6757_p1 = scmp.lt.u32.totalorder %s7299_s6, %s8421_s2 }
  0xb7   : > { %p6754_p11 = pnand %p6753_p12, %p6752_p0  ;;  %p6758_p10 = scmp.lt.u32.totalorder %s6756_s1, %s6751_s18 }
  0xb8   : > { %p6760_p13 = scmp.lt.u32.totalorder %s6751_s18, %s7299_s6 }
  0xb9   : > { %p6755_p4 = pneg %p6754_p11  ;;  %p6759_p9 = por %p6758_p10, %p6757_p1 }
  0xbb   : > { %p6761_p8 = por %p6760_p13, %p6759_p9 }
  0xbd   : > { %p6762_p2 = pnand %p6761_p8, %p6755_p4 }
  0xbf   : > { %6765 = shalt.err (!%p6762_p2)
}
  0xc0   : > { %s6766_s28 = scalar_lea.vmem %s7294_s0, 2048  ;;  %s6928_s13 = smov [#allocation11]  }
  0xc1   : > { %p6767_p3 = scmp.ne.s32.totalorder %s7294_s0, %s6766_s28  ;;  %s6771_s19 = sshll.u32 %s6928_s13, 4  ;;  %s6772_s19 = int_to_ptr.vmem [resolvable:$false] %s6771_s19 }
  0xc2   : > { %s6773_s29 = scalar_lea.vmem %s6772_s19, 4096  ;;  %p6774_p0 = scmp.lt.s32.totalorder %s7294_s0, %s6772_s19 }
  0xc3   : > { %p6769_p5 = pnand %p6767_p3, %p6753_p12  ;;  %p6775_p11 = scmp.lt.s32.totalorder %s6773_s29, %s6766_s28 }
  0xc5   : > { %p6770_p6 = pneg %p6769_p5  ;;  %p6776_p1 = por %p6775_p11, %p6774_p0 }
  0xc7   : > { %p6777_p10 = pnand %p6776_p1, %p6770_p6 }
  0xc9   : > { %6780 = shalt.err (!%p6777_p10)
}
  0xca   : > { %5885 = dma.hbm_to_vmem [thread:$0]  (!%p7261_p7), %s7299_s6, 2048, %s7294_s0, %s7303_s4, %s8470_s3, %s8470_s3, %s8469_s7  }
  0xcb   : > { %p8486_p12 = scmp.ne.s32.totalorder %s8463_s25, 0 }
  0xcc   : > { %s7337_s5 = sand.u32 (!%p8486_p12), 1, %s6893_s17   ;;  %p8487_p4 = scmp.ne.s32.totalorder (!%p8486_p12), %s8474_s11, 0 }
  0xcd   : > { %468 = sbr.rel (%p8486_p12) target bundleno = 5810 (0x16b2), region = 64  ;;  %s4181_s26 = sshll.u32 (!%p8486_p12), %s7337_s5, 3 }
  0xce   : > { %s471_s18 = scalar_lea.sflag (!%p8486_p12), [#allocation9], %s7337_s5  ;;  %s7341_s12 = scalar_lea.vmem (!%p8486_p12), [#allocation8], %s4181_s26 }
  0xd4   : > { %6856 = dma.done.wait (%p8487_p4), %s471_s18, 128  }
  0xd5   : > { %6858 = vsyncadd (%p8487_p4), %s471_s18, 4294967168  ;;  %s479_s25 = sand.u32 1, %s7080_s23   ;;  %s481_s7 = sand.u32 1, %s6881_s14  }
  0xd6   : > { %s4182_s3 = sshll.u32 %s481_s7, 7  ;;  %s480_s6 = scalar_lea.sflag [#allocation12], %s479_s25 }
  0xd7   : > { %s7349_s8 = scalar_lea.vmem [#allocation11], %s4182_s3  ;;  %p8488_p7 = scmp.ne.s32.totalorder %s8462_s24, 0 }
  0xd9   : > { %6860 = dma.done.wait (%p8488_p7), %s480_s6, 2048  }
  0xda   : > { %6862 = vsyncadd (%p8488_p7), %s480_s6, 4294965248  ;;  %p8489_p9 = scmp.eq.s32.totalorder %s7080_s23, 0 }
  0xdc   : > { %6864 = dma.done.wait (%p8489_p9), [#allocation12], 2048   ;;  %p8490_p13 = pmov %p8489_p9 }
  0xdd   : > { %p8491_p8 = pmov %p8489_p9 }
  0xde   : > { %6866 = vsyncadd (%p8490_p13), [#allocation12], 4294965248 }
  0xdf   : > { %6868 = dma.done.wait (%p8491_p8), [#allocation15], 6144   ;;  %p8492_p2 = pmov %p8491_p8 }
  0xe0   : > { %s8493_s11 = sld [smem:[#allocation26_spill]]  ;;  %s8494_s0 = sld [smem:[#allocation25_spill]] }
  0xe1   : > { %6870 = vsyncadd (%p8492_p2), [#allocation15], 4294961152  ;;  %s8495_s28 = sld [smem:[#allocation33_spill]]  ;;  %s7372_s19 = scalar_lea.vmem [#allocation17], %s4181_s26 }
  0xe6   : > { %p552_p3 = scmp.lt.s32.totalorder %s8493_s11, 1  ;;  %p556_p5 = scmp.lt.s32.totalorder %s8494_s0, 1 }
  0xe7   : > { %p4189_p6 = scmp.ne.s32.totalorder %s8494_s0, 0 }
  0xe8   : > { %s8537_s11 = smov (!%p552_p3, %s8493_s11), 1  ;;  %v570_v0 = vld [vmem:[%s7341_s12] sm:$0xff] (!%p4189_p6)  ;;  %v599_v1 = vld [vmem:[#allocation13] sm:$0xff] (!%p4189_p6)  ;;  %v600_v2 = vld [vmem:[#allocation13 + $0x8] sm:$0xff] (!%p4189_p6)  ;;  %v6929_v4 = vmov (!%p4189_p6), 0.0|0.0   ;;  %vm694_vm0 = vcmask (!%p4189_p6), 7168  }
  0xe9   : > { %s557_s24 = scalar_select %p556_p5, %s8494_s0, 1 }
  0xea   : > { %s4187_s4 = sshll.u32 %s8537_s11, 1  ;;  %569 = sbr.rel (%p4189_p6) target bundleno = 762 (0x2fa), region = 88  ;;  %573 = vadd.xlane.f32.xlu0 (!%p4189_p6), %v570_v0  ;;  %v601_v3 = vld [vmem:[#allocation13 + $0x10] sm:$0xff] (!%p4189_p6)  ;;  %5309 = vmatprep.subr.bf16.mxu0 (!%p4189_p6), %v6929_v4  ;;  %v5310_v5 = vpack.c.bf16 (!%p4189_p6), %v600_v2, %v599_v1  ;;  %v602_v6 = vld [vmem:[#allocation13 + $0x18] sm:$0xff] (!%p4189_p6)  ;;  %v603_v8 = vld [vmem:[#allocation13 + $0x20] sm:$0xff] (!%p4189_p6)  ;;  %vm6930_vm1 = vmmov (!%p4189_p6), 0  }
  0xeb   : > { %s561_s30 = sadd.s32 %s4187_s4, %s557_s24  ;;  %v5313_v7 = vpack.c.bf16 (!%p4189_p6), %v602_v6, %v601_v3  ;;  %v604_v9 = vld [vmem:[#allocation13 + $0x28] sm:$0xff] (!%p4189_p6)  ;;  %v605_v15 = vld [vmem:[#allocation13 + $0x30] sm:$0xff] (!%p4189_p6)  ;;  %v606_v16 = vld [vmem:[#allocation13 + $0x38] sm:$0xff] (!%p4189_p6)  ;;  %v6931_v23 = vmov (!%p4189_p6), 0.0   ;;  %vm711_vm2 = vcmask (!%p4189_p6), 130048   ;;  %v6932_v25 = vmov (!%p4189_p6), -inf  }
  0xec   : > { %s4188_s1 = sshll.u32 %s561_s30, 1  ;;  %5311 = vmatpush3.bf16.msra.mxu0 (!%p4189_p6), %v5310_v5  ;;  %v5316_v10 = vpack.c.bf16 (!%p4189_p6), %v604_v9, %v603_v8  ;;  %v5319_v17 = vpack.c.bf16 (!%p4189_p6), %v606_v16, %v605_v15  ;;  %v607_v18 = vld [vmem:[#allocation13 + $0x40] sm:$0xff] (!%p4189_p6)  ;;  %v608_v19 = vld [vmem:[#allocation13 + $0x48] sm:$0xff] (!%p4189_p6)  ;;  %v609_v21 = vld [vmem:[#allocation13 + $0x50] sm:$0xff] (!%p4189_p6)  ;;  %4690 = vmatprep.mubr.msk.f32.mxu0 (!%p4189_p6), %vm6930_vm1, %v6931_v23  ;;  %703 = vst.msk [vmem:[#allocation4] sm:$0xff] (!%p4189_p6), %vm694_vm0, %v6931_v23  ;;  %s8496_s26 = sld [smem:[#allocation34_spill]] (!%p4189_p6) }
  0xed   : > { %s7370_s13 = scalar_lea.vmem %s8495_s28, %s4188_s1  ;;  %5312 = vmatprep.subr.bf16.mxu0 (!%p4189_p6), %v6929_v4  ;;  %v5322_v20 = vpack.c.bf16 (!%p4189_p6), %v608_v19, %v607_v18  ;;  %v610_v22 = vld [vmem:[#allocation13 + $0x58] sm:$0xff] (!%p4189_p6)  ;;  %704 = vst.msk [vmem:[#allocation4 + $0x8] sm:$0xff] (!%p4189_p6), %vm694_vm0, %v6931_v23  ;;  %705 = vst.msk [vmem:[#allocation4 + $0x10] sm:$0xff] (!%p4189_p6), %vm694_vm0, %v6931_v23  ;;  %v611_v26 = vld [vmem:[#allocation13 + $0x60] sm:$0xff] (!%p4189_p6)  ;;  %s8497_s7 = sld [smem:[#allocation35_spill]] (!%p4189_p6) }
  0xee   : > { %706 = vst.msk [vmem:[#allocation4 + $0x18] sm:$0xff] (!%p4189_p6), %vm694_vm0, %v6931_v23  ;;  %707 = vst.msk [vmem:[#allocation4 + $0x20] sm:$0xff] (!%p4189_p6), %vm694_vm0, %v6931_v23  ;;  %v5325_v24 = vpack.c.bf16 (!%p4189_p6), %v610_v22, %v609_v21  ;;  %v612_v27 = vld [vmem:[#allocation13 + $0x68] sm:$0xff] (!%p4189_p6)  ;;  %v613_v29 = vld [vmem:[#allocation13 + $0x70] sm:$0xff] (!%p4189_p6)  ;;  %s8498_s11 = sld [smem:[#allocation37_spill]] (!%p4189_p6) }
  0xef   : > { %708 = vst.msk [vmem:[#allocation4 + $0x28] sm:$0xff] (!%p4189_p6), %vm694_vm0, %v6931_v23  ;;  %709 = vst.msk [vmem:[#allocation4 + $0x30] sm:$0xff] (!%p4189_p6), %vm694_vm0, %v6931_v23  ;;  %v5328_v28 = vpack.c.bf16 (!%p4189_p6), %v612_v27, %v611_v26  ;;  %v614_v30 = vld [vmem:[#allocation13 + $0x78] sm:$0xff] (!%p4189_p6) }
  0xf0   : > { %5314 = vmatpush3.bf16.msra.mxu0 (!%p4189_p6), %v5313_v7  ;;  %710 = vst.msk [vmem:[#allocation4 + $0x38] sm:$0xff] (!%p4189_p6), %vm694_vm0, %v6931_v23  ;;  %695 = vst.msk [vmem:[#allocation3] sm:$0xff] (!%p4189_p6), %vm694_vm0, %v6932_v25  ;;  %v5331_v31 = vpack.c.bf16 (!%p4189_p6), %v614_v30, %v613_v29 }
  0xf1   : > { %5315 = vmatprep.subr.bf16.mxu0 %v6929_v4  ;;  %696 = vst.msk [vmem:[#allocation3 + $0x8] sm:$0xff] %vm694_vm0, %v6932_v25  ;;  %697 = vst.msk [vmem:[#allocation3 + $0x10] sm:$0xff] %vm694_vm0, %v6932_v25 }
  0xf2   : > { %698 = vst.msk [vmem:[#allocation3 + $0x18] sm:$0xff] %vm694_vm0, %v6932_v25  ;;  %699 = vst.msk [vmem:[#allocation3 + $0x20] sm:$0xff] %vm694_vm0, %v6932_v25  ;;  %v4190_v36 = vld [vmem:[%s8496_s26] ss:$0 sm:$0xff] }
  0xf3   : > { %700 = vst.msk [vmem:[#allocation3 + $0x28] sm:$0xff] %vm694_vm0, %v6932_v25  ;;  %701 = vst.msk [vmem:[#allocation3 + $0x30] sm:$0xff] %vm694_vm0, %v6932_v25  ;;  %v4191_v38 = vld [vmem:[%s8497_s7] ss:$0 sm:$0xff] }
  0xf4   : > { %5317 = vmatpush3.bf16.msra.mxu0 %v5316_v10  ;;  %702 = vst.msk [vmem:[#allocation3 + $0x38] sm:$0xff] %vm694_vm0, %v6932_v25  ;;  %v4192_v41 = vld [vmem:[%s8498_s11] ss:$0 sm:$0xff] }
  0xf5   : > { %5318 = vmatprep.subr.bf16.mxu0 %v6929_v4  ;;  %712 = vst.msk [vmem:[#allocation5] sm:$0xff] %vm711_vm2, %v6931_v23  ;;  %713 = vst.msk [vmem:[#allocation5 + $0x8] sm:$0xff] %vm711_vm2, %v6931_v23 }
  0xf6   : > { %714 = vst.msk [vmem:[#allocation5 + $0x10] sm:$0xff] %vm711_vm2, %v6931_v23  ;;  %715 = vst.msk [vmem:[#allocation5 + $0x18] sm:$0xff] %vm711_vm2, %v6931_v23 }
  0xf7   : > { %716 = vst.msk [vmem:[#allocation5 + $0x20] sm:$0xff] %vm711_vm2, %v6931_v23  ;;  %717 = vst.msk [vmem:[#allocation5 + $0x28] sm:$0xff] %vm711_vm2, %v6931_v23 }
  0xf8   : > { %5320 = vmatpush3.bf16.msra.mxu0 %v5319_v17  ;;  %718 = vst.msk [vmem:[#allocation5 + $0x30] sm:$0xff] %vm711_vm2, %v6931_v23  ;;  %719 = vst.msk [vmem:[#allocation5 + $0x38] sm:$0xff] %vm711_vm2, %v6931_v23 }
  0xf9   : > { %5321 = vmatprep.subr.bf16.mxu0 %v6929_v4 }
  0xfc   : > { %5323 = vmatpush3.bf16.msra.mxu0 %v5322_v20 }
  0xfd   : > { %5324 = vmatprep.subr.bf16.mxu0 %v6929_v4 }
 0x100   : > { %5326 = vmatpush3.bf16.msra.mxu0 %v5325_v24 }
 0x101   : > { %5327 = vmatprep.subr.bf16.mxu0 %v6929_v4 }
 0x104   : > { %5329 = vmatpush3.bf16.msra.mxu0 %v5328_v28 }
 0x105   : > { %5330 = vmatprep.subr.bf16.mxu0 %v6929_v4 }
 0x108   : > { %5332 = vmatpush3.bf16.msra.mxu0 %v5331_v31 }
 0x177   : > { %v574_v11 = vpop.xlane.xlu0 %573 }
 0x178   : > { %v576_v12 = vmul.f32 0.0078125, %v574_v11 }
 0x17a   : > { %v7380_v13 = vsub.f32 %v570_v0, %v576_v12 }
 0x17c   : > { %v578_v14 = vmul.f32 %v7380_v13, %v7380_v13 }
 0x17e   : > { %579 = vadd.xlane.f32.xlu0 %v578_v14 }
 0x20b   : > { %v580_v32 = vpop.xlane.xlu0 %579 }
 0x20c   : > { %v581_v33 = vmul.f32 0.0078125, %v580_v32 }
 0x20e   : > { %v582_v34 = vadd.f32 1e-05, %v581_v33 }
 0x210   : > { %6013 = vrsqrt.f32 %v582_v34 }
 0x21a   : > { %v6014_v35 = vpop.eup %6013 }
 0x21b   : > { %v584_v37 = vmul.f32 %v6014_v35, %v7380_v13 }
 0x21d   : > { %v591_v39 = vmul.f32 %v4190_v36, %v584_v37 }
 0x21f   : > { %v598_v40 = vadd.f32 %v4191_v38, %v591_v39 }
 0x221   : > { %4691 = vmatmul.mubr.f32.vlgmr.msra.gmra.mrb[0].mxu0 %v598_v40 }
 0x2f4   : > { %v688_v42 = vpop.f32.mrb[0].mxu0 }
 0x2f5   : > { %v689_v43 = vadd.f32 %v4192_v41, %v688_v42  ;;  %v4692_v44 = vpop.f32.mrb[1].mxu0 }
 0x2f7   : > { %v692_v45 = vmul.f32 0.25, %v689_v43 }
 0x2f9   : > { %693 = vst [vmem:[#allocation2] sm:$0xff] %v692_v45 }
 0x2fa PF: > { %s8499_s0 = sld [smem:[#allocation26_spill]]  ;;  %s8500_s24 = sld [smem:[#allocation25_spill]] }
 0x300   : > { %s4193_s4 = sshll.u32 %s8499_s0, 1 }
 0x301   : > { %s722_s30 = sadd.s32 %s8500_s24, %s4193_s4 }
 0x302   : > { %s723_s1 = sld [smem:[#allocation7 + %s722_s30]] }
 0x308   : > { %p4194_p0 = scmp.eq.s32.totalorder %s723_s1, 0 }
 0x309   : > { %v745_v46 = vld [vmem:[#allocation14 + $0x8] sm:$0xff] (!%p4194_p0)  ;;  %v747_v47 = vld [vmem:[#allocation14 + $0x18] sm:$0xff] (!%p4194_p0)  ;;  %v744_v48 = vld [vmem:[#allocation14] sm:$0xff] (!%p4194_p0)  ;;  %v6933_v53 = vmov (!%p4194_p0), 0.0   ;;  %vm6935_vm3 = vmmov (!%p4194_p0), 0   ;;  %s8501_s28 = sld [smem:[#allocation39_spill]] (!%p4194_p0) }
 0x30a   : > { %727 = sbr.rel (%p4194_p0) target bundleno = 5389 (0x150d), region = 92  ;;  %v5333_v49 = vpack.c.bf16 (!%p4194_p0), %v747_v47, %v745_v46  ;;  %v746_v50 = vld [vmem:[#allocation14 + $0x10] sm:$0xff] (!%p4194_p0)  ;;  %v749_v51 = vld [vmem:[#allocation14 + $0x28] sm:$0xff] (!%p4194_p0)  ;;  %v751_v52 = vld [vmem:[#allocation14 + $0x38] sm:$0xff] (!%p4194_p0)  ;;  %852 = vmatprep.mubr.f32.mxu0 (!%p4194_p0), %v6933_v53  ;;  %v6934_v47 = vmov (!%p4194_p0), 0.0|0.0   ;;  %4725 = vmatprep.mubr.msk.f32.mxu1 (!%p4194_p0), %vm6935_vm3, %v6933_v53  ;;  %vm952_vm4 = vcmask (!%p4194_p0), 130048  }
 0x30b   : > { %v5335_v54 = vpack.c.bf16 (!%p4194_p0), %v746_v50, %v744_v48  ;;  %v5337_v55 = vpack.c.bf16 (!%p4194_p0), %v751_v52, %v749_v51  ;;  %v748_v56 = vld [vmem:[#allocation14 + $0x20] sm:$0xff] (!%p4194_p0)  ;;  %v750_v57 = vld [vmem:[#allocation14 + $0x30] sm:$0xff] (!%p4194_p0)  ;;  %v753_v58 = vld [vmem:[#allocation14 + $0x48] sm:$0xff] (!%p4194_p0)  ;;  %5365 = vmatprep.subr.bf16.mxu1 (!%p4194_p0), %v6934_v47  ;;  %v778_v48 = vlaneseq (!%p4194_p0)  ;;  %vm1100_vm8 = vcmask (!%p4194_p0), 7168   ;;  %s6939_s23 = smov (!%p4194_p0), 80   ;;  %s6940_s29 = smov (!%p4194_p0), 64  }
 0x30c   : > { %5334 = vmatprep.subr.bf16.mxu0 (!%p4194_p0), %v5333_v49  ;;  %v755_v59 = vld [vmem:[#allocation14 + $0x58] sm:$0xff] (!%p4194_p0)  ;;  %v5339_v60 = vpack.c.bf16 (!%p4194_p0), %v750_v57, %v748_v56  ;;  %v752_v62 = vld [vmem:[#allocation14 + $0x40] sm:$0xff] (!%p4194_p0)  ;;  %v754_v63 = vld [vmem:[#allocation14 + $0x50] sm:$0xff] (!%p4194_p0)  ;;  %s6941_s26 = smov (!%p4194_p0), 48   ;;  %s6942_s18 = smov (!%p4194_p0), 32  }
 0x30d   : > { %5336 = vmatpush1.bf16.msra.mxu0 (!%p4194_p0), %v5335_v54  ;;  %v5341_v61 = vpack.c.bf16 (!%p4194_p0), %v755_v59, %v753_v58  ;;  %v757_v0 = vld [vmem:[#allocation14 + $0x68] sm:$0xff] (!%p4194_p0)  ;;  %v759_v1 = vld [vmem:[#allocation14 + $0x78] sm:$0xff] (!%p4194_p0)  ;;  %v5343_v2 = vpack.c.bf16 (!%p4194_p0), %v754_v63, %v752_v62  ;;  %v756_v4 = vld [vmem:[#allocation14 + $0x60] sm:$0xff] (!%p4194_p0)  ;;  %v779_v49 = vshrl.u32 (!%p4194_p0), %v778_v48, 7  ;;  %s6943_s25 = smov (!%p4194_p0), 16  }
 0x30e   : > { %5338 = vmatprep.subr.bf16.mxu0 (!%p4194_p0), %v5337_v55  ;;  %v5345_v3 = vpack.c.bf16 (!%p4194_p0), %v759_v1, %v757_v0  ;;  %v758_v5 = vld [vmem:[#allocation14 + $0x70] sm:$0xff] (!%p4194_p0)  ;;  %v761_v6 = vld [vmem:[#allocation14 + $0x88] sm:$0xff] (!%p4194_p0)  ;;  %v763_v7 = vld [vmem:[#allocation14 + $0x98] sm:$0xff] (!%p4194_p0) }
 0x30f   : > { %v5347_v8 = vpack.c.bf16 (!%p4194_p0), %v758_v5, %v756_v4  ;;  %v5349_v9 = vpack.c.bf16 (!%p4194_p0), %v763_v7, %v761_v6  ;;  %v760_v10 = vld [vmem:[#allocation14 + $0x80] sm:$0xff] (!%p4194_p0)  ;;  %v762_v11 = vld [vmem:[#allocation14 + $0x90] sm:$0xff] (!%p4194_p0)  ;;  %v765_v12 = vld [vmem:[#allocation14 + $0xa8] sm:$0xff] (!%p4194_p0)  ;;  %v780_v50 = vsub.s32 (!%p4194_p0), 0, %v779_v49  ;;  %v784_v52 = vsub.s32 (!%p4194_p0), 1, %v779_v49 }
 0x310   : > { %v767_v13 = vld [vmem:[#allocation14 + $0xb8] sm:$0xff] (!%p4194_p0)  ;;  %v5351_v14 = vpack.c.bf16 (!%p4194_p0), %v762_v11, %v760_v10  ;;  %v764_v16 = vld [vmem:[#allocation14 + $0xa0] sm:$0xff] (!%p4194_p0)  ;;  %v766_v17 = vld [vmem:[#allocation14 + $0xb0] sm:$0xff] (!%p4194_p0) }
 0x311   : > { %5340 = vmatpush1.bf16.msra.mxu0 %v5339_v60  ;;  %v5353_v15 = vpack.c.bf16 %v767_v13, %v765_v12  ;;  %v769_v18 = vld [vmem:[#allocation14 + $0xc8] sm:$0xff]  ;;  %v771_v19 = vld [vmem:[#allocation14 + $0xd8] sm:$0xff]  ;;  %v5355_v20 = vpack.c.bf16 %v766_v17, %v764_v16  ;;  %v768_v22 = vld [vmem:[#allocation14 + $0xc0] sm:$0xff] }
 0x312   : > { %5342 = vmatprep.subr.bf16.mxu0 %v5341_v61  ;;  %v5357_v21 = vpack.c.bf16 %v771_v19, %v769_v18  ;;  %v770_v23 = vld [vmem:[#allocation14 + $0xd0] sm:$0xff]  ;;  %v773_v24 = vld [vmem:[#allocation14 + $0xe8] sm:$0xff]  ;;  %v775_v25 = vld [vmem:[#allocation14 + $0xf8] sm:$0xff] }
 0x313   : > { %v5359_v26 = vpack.c.bf16 %v770_v23, %v768_v22  ;;  %v5361_v27 = vpack.c.bf16 %v775_v25, %v773_v24  ;;  %v772_v28 = vld [vmem:[#allocation14 + $0xe0] sm:$0xff]  ;;  %v774_v29 = vld [vmem:[#allocation14 + $0xf0] sm:$0xff]  ;;  %v729_v32 = vld [vmem:[%s7349_s8 + $0x8] sm:$0xff] }
 0x314   : > { %v5363_v30 = vpack.c.bf16 %v774_v29, %v772_v28  ;;  %v728_v31 = vld [vmem:[%s7349_s8] sm:$0xff]  ;;  %v730_v33 = vld [vmem:[%s7349_s8 + $0x10] sm:$0xff]  ;;  %v731_v34 = vld [vmem:[%s7349_s8 + $0x18] sm:$0xff] }
 0x315   : > { %5344 = vmatpush1.bf16.msra.mxu0 %v5343_v2  ;;  %v732_v35 = vld [vmem:[%s7349_s8 + $0x20] sm:$0xff]  ;;  %v733_v36 = vld [vmem:[%s7349_s8 + $0x28] sm:$0xff]  ;;  %v734_v37 = vld [vmem:[%s7349_s8 + $0x30] sm:$0xff] }
 0x316   : > { %5346 = vmatprep.subr.bf16.mxu0 %v5345_v3  ;;  %v735_v38 = vld [vmem:[%s7349_s8 + $0x38] sm:$0xff]  ;;  %v736_v39 = vld [vmem:[%s7349_s8 + $0x40] sm:$0xff]  ;;  %v737_v40 = vld [vmem:[%s7349_s8 + $0x48] sm:$0xff] }
 0x317   : > { %v738_v41 = vld [vmem:[%s7349_s8 + $0x50] sm:$0xff]  ;;  %v739_v42 = vld [vmem:[%s7349_s8 + $0x58] sm:$0xff]  ;;  %v740_v43 = vld [vmem:[%s7349_s8 + $0x60] sm:$0xff] }
 0x318   : > { %v741_v44 = vld [vmem:[%s7349_s8 + $0x68] sm:$0xff]  ;;  %v742_v45 = vld [vmem:[%s7349_s8 + $0x70] sm:$0xff]  ;;  %v743_v46 = vld [vmem:[%s7349_s8 + $0x78] sm:$0xff]  ;;  %s6936_s8 = smov 112  }
 0x319   : > { %5348 = vmatpush1.bf16.msra.mxu0 %v5347_v8  ;;  %v776_v51 = vld [vmem:[%s8501_s28] sm:$0x3]  ;;  %vm7475_vm5 = vmpackc.low %vm952_vm4, %vm952_vm4 }
 0x31a   : > { %5350 = vmatprep.subr.bf16.mxu0 %v5349_v9  ;;  %v7465_v55 = vrot.slane %v776_v51, %v780_v50  ;;  %v7467_v57 = vrot.slane %v776_v51, %v784_v52 }
 0x31d   : > { %5352 = vmatpush1.bf16.msra.mxu0 %v5351_v14 }
 0x31e   : > { %5354 = vmatprep.subr.bf16.mxu0 %v5353_v15 }
 0x321   : > { %5356 = vmatpush1.bf16.msra.mxu0 %v5355_v20 }
 0x322   : > { %5358 = vmatprep.subr.bf16.mxu0 %v5357_v21 }
 0x325   : > { %5360 = vmatpush1.bf16.msra.mxu0 %v5359_v26 }
 0x326   : > { %5362 = vmatprep.subr.bf16.mxu0 %v5361_v27 }
 0x329   : > { %5364 = vmatpush1.bf16.msra.mxu0 %v5363_v30 }
 0x32a   : > { %5397 = vmatprep.subr.bf16.mxu0 %v6934_v47 }
 0x32c   : > { %853 = vmatmul.mubr.f32.vlgmr.msra.gmra.mrb[0].mxu0 %v728_v31 }
 0x32d   : > { %858 = vmatprep.mubr.f32.mxu0 %v6933_v53 }
 0x330   : > { %859 = vmatmul.mubr.f32.gmra.mrb[2].mxu0 %v729_v32 }
 0x331   : > { %864 = vmatprep.mubr.f32.mxu0 %v6933_v53 }
 0x334   : > { %865 = vmatmul.mubr.f32.gmra.mrb[4].mxu0 %v730_v33 }
 0x335   : > { %870 = vmatprep.mubr.f32.mxu0 %v6933_v53 }
 0x338   : > { %871 = vmatmul.mubr.f32.gmra.mrb[6].mxu0 %v731_v34 }
 0x339   : > { %876 = vmatprep.mubr.f32.mxu0 %v6933_v53 }
 0x33c   : > { %877 = vmatmul.mubr.f32.gmra.mrb[8].mxu0 %v732_v35 }
 0x33d   : > { %882 = vmatprep.mubr.f32.mxu0 %v6933_v53 }
 0x340   : > { %883 = vmatmul.mubr.f32.gmra.mrb[10].mxu0 %v733_v36 }
 0x341   : > { %888 = vmatprep.mubr.f32.mxu0 %v6933_v53 }
 0x344   : > { %889 = vmatmul.mubr.f32.gmra.mrb[12].mxu0 %v734_v37 }
 0x345   : > { %894 = vmatprep.mubr.f32.mxu0 %v6933_v53 }
 0x348   : > { %895 = vmatmul.mubr.f32.gmra.mrb[14].mxu0 %v735_v38 }
 0x349   : > { %900 = vmatprep.mubr.f32.mxu0 %v6933_v53 }
 0x34c   : > { %901 = vmatmul.mubr.f32.gmra.mrb[16].mxu0 %v736_v39 }
 0x34d   : > { %906 = vmatprep.mubr.f32.mxu0 %v6933_v53 }
 0x350   : > { %907 = vmatmul.mubr.f32.gmra.mrb[18].mxu0 %v737_v40 }
 0x351   : > { %912 = vmatprep.mubr.f32.mxu0 %v6933_v53 }
 0x354   : > { %913 = vmatmul.mubr.f32.gmra.mrb[20].mxu0 %v738_v41 }
 0x355   : > { %918 = vmatprep.mubr.f32.mxu0 %v6933_v53 }
 0x358   : > { %919 = vmatmul.mubr.f32.gmra.mrb[22].mxu0 %v739_v42 }
 0x359   : > { %924 = vmatprep.mubr.f32.mxu0 %v6933_v53 }
 0x35c   : > { %925 = vmatmul.mubr.f32.gmra.mrb[24].mxu0 %v740_v43 }
 0x35d   : > { %930 = vmatprep.mubr.f32.mxu0 %v6933_v53 }
 0x360   : > { %931 = vmatmul.mubr.f32.gmra.mrb[26].mxu0 %v741_v44 }
 0x361   : > { %936 = vmatprep.mubr.f32.mxu0 %v6933_v53 }
 0x364   : > { %937 = vmatmul.mubr.f32.gmra.mrb[28].mxu0 %v742_v45 }
 0x365   : > { %942 = vmatprep.mubr.f32.mxu0 %v6933_v53 }
 0x368   : > { %943 = vmatmul.mubr.f32.gmra.mrb[30].mxu0 %v743_v46 }
 0x369   : > { %4760 = vmatprep.mubr.msk.f32.mxu0 %vm6935_vm3, %v6933_v53 }
 0x3ff   : > { %v854_v54 = vpop.f32.mrb[0].mxu0 }
 0x400   : > { %v856_v56 = vpop.f32.mrb[1].mxu0  ;;  %v855_v59 = vadd.f32 %v854_v54, %v7465_v55 }
 0x401   : > { %v857_v62 = vadd.f32 %v856_v56, %v7467_v57 }
 0x403   : > { %v860_v58 = vpop.f32.mrb[2].mxu0 }
 0x404   : > { %v861_v60 = vadd.f32 %v860_v58, %v7465_v55  ;;  %v862_v61 = vpop.f32.mrb[3].mxu0 }
 0x405   : > { %v863_v63 = vadd.f32 %v862_v61, %v7467_v57 }
 0x406   : > { %v7479_v1 = vpack.i.bf16 %v861_v60, %v855_v59  ;;  %v5366_v2 = vpack.c.bf16 %v861_v60, %v855_v59 }
 0x407   : > { %v866_v3 = vpop.f32.mrb[4].mxu0  ;;  %v5398_v4 = vpack.c.bf16 %v863_v63, %v857_v62  ;;  %v7481_v5 = vpack.i.bf16 %v863_v63, %v857_v62 }
 0x408   : > { %v868_v6 = vpop.f32.mrb[5].mxu0  ;;  %6016 = vrot.lane.b32.xlu0 %v7479_v1, %s6936_s8  ;;  %5368 = vmatpush3.bf16.xpose.msk.msra.mxu1 %vm7475_vm5, %v5366_v2  ;;  %v867_v8 = vadd.f32 %v866_v3, %v7465_v55 }
 0x409   : > { %5399 = vmatpush3.bf16.msra.mxu0 %v5398_v4  ;;  %5369 = vmatprep.subr.bf16.mxu1 %v6934_v47  ;;  %v869_v11 = vadd.f32 %v868_v6, %v7467_v57 }
 0x40a   : > { %5400 = vmatprep.subr.bf16.mxu0 %v6934_v47 }
 0x40b   : > { %v872_v7 = vpop.f32.mrb[6].mxu0 }
 0x40c   : > { %v873_v9 = vadd.f32 %v872_v7, %v7465_v55  ;;  %v874_v10 = vpop.f32.mrb[7].mxu0 }
 0x40d   : > { %v875_v12 = vadd.f32 %v874_v10, %v7467_v57 }
 0x40e   : > { %v7493_v13 = vpack.i.bf16 %v873_v9, %v867_v8  ;;  %v5370_v14 = vpack.c.bf16 %v873_v9, %v867_v8 }
 0x40f   : > { %v878_v15 = vpop.f32.mrb[8].mxu0  ;;  %v5401_v16 = vpack.c.bf16 %v875_v12, %v869_v11  ;;  %v7495_v17 = vpack.i.bf16 %v875_v12, %v869_v11 }
 0x410   : > { %v880_v18 = vpop.f32.mrb[9].mxu0  ;;  %6021 = vrot.lane.b32.xlu0 %v7493_v13, %s6936_s8  ;;  %5372 = vmatpush3.bf16.xpose.msk.msra.mxu1 %vm7475_vm5, %v5370_v14  ;;  %v879_v20 = vadd.f32 %v878_v15, %v7465_v55 }
 0x411   : > { %5402 = vmatpush3.bf16.msra.mxu0 %v5401_v16  ;;  %5373 = vmatprep.subr.bf16.mxu1 %v6934_v47  ;;  %v881_v23 = vadd.f32 %v880_v18, %v7467_v57 }
 0x412   : > { %5403 = vmatprep.subr.bf16.mxu0 %v6934_v47 }
 0x413   : > { %v884_v19 = vpop.f32.mrb[10].mxu0 }
 0x414   : > { %v885_v21 = vadd.f32 %v884_v19, %v7465_v55  ;;  %v886_v22 = vpop.f32.mrb[11].mxu0 }
 0x415   : > { %v887_v24 = vadd.f32 %v886_v22, %v7467_v57 }
 0x416   : > { %v7507_v25 = vpack.i.bf16 %v885_v21, %v879_v20  ;;  %v5374_v26 = vpack.c.bf16 %v885_v21, %v879_v20 }
 0x417   : > { %v890_v27 = vpop.f32.mrb[12].mxu0  ;;  %v5404_v28 = vpack.c.bf16 %v887_v24, %v881_v23  ;;  %v7509_v29 = vpack.i.bf16 %v887_v24, %v881_v23 }
 0x418   : > { %v892_v30 = vpop.f32.mrb[13].mxu0  ;;  %6026 = vrot.lane.b32.xlu1 %v7507_v25, %s6936_s8  ;;  %5376 = vmatpush3.bf16.xpose.msk.msra.mxu1 %vm7475_vm5, %v5374_v26  ;;  %v891_v32 = vadd.f32 %v890_v27, %v7465_v55  ;;  %v7573_v26 = vld [vmem:[#allocation2] sm:$0xff] }
 0x419   : > { %5405 = vmatpush3.bf16.msra.mxu0 %v5404_v28  ;;  %5377 = vmatprep.subr.bf16.mxu1 %v6934_v47  ;;  %v893_v35 = vadd.f32 %v892_v30, %v7467_v57 }
 0x41a   : > { %5406 = vmatprep.subr.bf16.mxu0 %v6934_v47 }
 0x41b   : > { %v896_v31 = vpop.f32.mrb[14].mxu0 }
 0x41c   : > { %v897_v33 = vadd.f32 %v896_v31, %v7465_v55  ;;  %v898_v34 = vpop.f32.mrb[15].mxu0 }
 0x41d   : > { %v899_v36 = vadd.f32 %v898_v34, %v7467_v57 }
 0x41e   : > { %v7521_v37 = vpack.i.bf16 %v897_v33, %v891_v32  ;;  %v5378_v38 = vpack.c.bf16 %v897_v33, %v891_v32 }
 0x41f   : > { %v902_v39 = vpop.f32.mrb[16].mxu0  ;;  %v5407_v40 = vpack.c.bf16 %v899_v36, %v893_v35  ;;  %v7523_v41 = vpack.i.bf16 %v899_v36, %v893_v35 }
 0x420   : > { %v904_v42 = vpop.f32.mrb[17].mxu0  ;;  %6031 = vrot.lane.b32.xlu1 %v7521_v37, %s6936_s8  ;;  %5380 = vmatpush3.bf16.xpose.msk.msra.mxu1 %vm7475_vm5, %v5378_v38  ;;  %v903_v44 = vadd.f32 %v902_v39, %v7465_v55 }
 0x421   : > { %5408 = vmatpush3.bf16.msra.mxu0 %v5407_v40  ;;  %5381 = vmatprep.subr.bf16.mxu1 %v6934_v47  ;;  %v905_v48 = vadd.f32 %v904_v42, %v7467_v57 }
 0x422   : > { %5409 = vmatprep.subr.bf16.mxu0 %v6934_v47 }
 0x423   : > { %v908_v43 = vpop.f32.mrb[18].mxu0 }
 0x424   : > { %v909_v45 = vadd.f32 %v908_v43, %v7465_v55  ;;  %v910_v46 = vpop.f32.mrb[19].mxu0 }
 0x425   : > { %v911_v49 = vadd.f32 %v910_v46, %v7467_v57 }
 0x426   : > { %v7535_v50 = vpack.i.bf16 %v909_v45, %v903_v44  ;;  %v5382_v51 = vpack.c.bf16 %v909_v45, %v903_v44 }
 0x427   : > { %v914_v52 = vpop.f32.mrb[20].mxu0  ;;  %v5410_v54 = vpack.c.bf16 %v911_v49, %v905_v48  ;;  %v7537_v56 = vpack.i.bf16 %v911_v49, %v905_v48 }
 0x428   : > { %v916_v58 = vpop.f32.mrb[21].mxu0  ;;  %6036 = vrot.lane.b32.xlu0 %v7535_v50, %s6936_s8  ;;  %5384 = vmatpush3.bf16.xpose.msk.msra.mxu1 %vm7475_vm5, %v5382_v51  ;;  %v915_v60 = vadd.f32 %v914_v52, %v7465_v55 }
 0x429   : > { %5411 = vmatpush3.bf16.msra.mxu0 %v5410_v54  ;;  %5385 = vmatprep.subr.bf16.mxu1 %v6934_v47  ;;  %v917_v63 = vadd.f32 %v916_v58, %v7467_v57 }
 0x42a   : > { %5412 = vmatprep.subr.bf16.mxu0 %v6934_v47 }
 0x42b   : > { %v920_v59 = vpop.f32.mrb[22].mxu0 }
 0x42c   : > { %v921_v61 = vadd.f32 %v920_v59, %v7465_v55  ;;  %v922_v62 = vpop.f32.mrb[23].mxu0  ;;  %v6937_v59 = vmov 0  }
 0x42d   : > { %v923_v2 = vadd.f32 %v922_v62, %v7467_v57  ;;  %6055 = vset.pattern.permute.xlu0 %v6937_v59  ;;  %6081 = vset.pattern.permute.xlu1 %v6937_v59 }
 0x42e   : > { %v7549_v3 = vpack.i.bf16 %v921_v61, %v915_v60  ;;  %v5386_v4 = vpack.c.bf16 %v921_v61, %v915_v60 }
 0x42f   : > { %v926_v6 = vpop.f32.mrb[24].mxu0  ;;  %v5413_v7 = vpack.c.bf16 %v923_v2, %v917_v63  ;;  %v7551_v8 = vpack.i.bf16 %v923_v2, %v917_v63 }
 0x430   : > { %v928_v9 = vpop.f32.mrb[25].mxu0  ;;  %6041 = vrot.lane.b32.xlu1 %v7549_v3, %s6936_s8  ;;  %5388 = vmatpush3.bf16.xpose.msk.msra.mxu1 %vm7475_vm5, %v5386_v4  ;;  %v927_v11 = vadd.f32 %v926_v6, %v7465_v55 }
 0x431   : > { %5414 = vmatpush3.bf16.msra.mxu0 %v5413_v7  ;;  %5389 = vmatprep.subr.bf16.mxu1 %v6934_v47  ;;  %v929_v15 = vadd.f32 %v928_v9, %v7467_v57 }
 0x432   : > { %5415 = vmatprep.subr.bf16.mxu0 %v6934_v47 }
 0x433   : > { %v932_v10 = vpop.f32.mrb[26].mxu0 }
 0x434   : > { %v933_v12 = vadd.f32 %v932_v10, %v7465_v55  ;;  %v934_v14 = vpop.f32.mrb[27].mxu0 }
 0x435   : > { %v935_v16 = vadd.f32 %v934_v14, %v7467_v57 }
 0x436   : > { %v7563_v18 = vpack.i.bf16 %v933_v12, %v927_v11  ;;  %v5390_v19 = vpack.c.bf16 %v933_v12, %v927_v11 }
 0x437   : > { %v938_v20 = vpop.f32.mrb[28].mxu0  ;;  %v5416_v21 = vpack.c.bf16 %v935_v16, %v929_v15  ;;  %v7565_v22 = vpack.i.bf16 %v935_v16, %v929_v15 }
 0x438   : > { %v940_v23 = vpop.f32.mrb[29].mxu0  ;;  %6046 = vrot.lane.b32.xlu0 %v7563_v18, %s6936_s8  ;;  %5392 = vmatpush3.bf16.xpose.msk.msra.mxu1 %vm7475_vm5, %v5390_v19  ;;  %v939_v27 = vadd.f32 %v938_v20, %v7465_v55 }
 0x439   : > { %5417 = vmatpush3.bf16.msra.mxu0 %v5416_v21  ;;  %5393 = vmatprep.subr.bf16.mxu1 %v6934_v47  ;;  %v941_v31 = vadd.f32 %v940_v23, %v7467_v57  ;;  %v949_v21 = vld [vmem:[%s7370_s13] sm:$0x3]  ;;  %s6938_s13 = smov 96  }
 0x43a   : > { %5418 = vmatprep.subr.bf16.mxu0 %v6934_v47  ;;  %vm950_vm6 = vnez %v949_v21 }
 0x43b   : > { %v944_v24 = vpop.f32.mrb[30].mxu0  ;;  %v1074_v23 = vsel %vm950_vm6, 16843009, %v6937_v59 }
 0x43c   : > { %v945_v28 = vadd.f32 %v944_v24, %v7465_v55  ;;  %v946_v30 = vpop.f32.mrb[31].mxu0  ;;  %1184 = vrot.lane.b32.xlu0 %v7573_v26, %s6936_s8  ;;  %v1075_v24 = vunpack.c.0.s8 %v1074_v23 }
 0x43d   : > { %v947_v32 = vadd.f32 %v946_v30, %v7467_v57 }
 0x43e   : > { %v7581_v33 = vpack.i.bf16 %v945_v28, %v939_v27  ;;  %v5394_v34 = vpack.c.bf16 %v945_v28, %v939_v27  ;;  %vm7623_vm7 = vcmp.ne.s32.totalorder %v1075_v24, 0 }
 0x43f   : > { %v5419_v35 = vpack.c.bf16 %v947_v32, %v941_v31  ;;  %v7583_v36 = vpack.i.bf16 %v947_v32, %v941_v31 }
 0x440   : > { %6051 = vrot.lane.b32.xlu1 %v7581_v33, %s6936_s8  ;;  %5396 = vmatpush3.bf16.xpose.msk.msra.mxu1 %vm7475_vm5, %v5394_v34 }
 0x441   : > { %5420 = vmatpush3.bf16.msra.mxu0 %v5419_v35  ;;  %5421 = vmatprep.subr.bf16.mxu1 %v6934_v47 }
 0x442   : > { %5453 = vmatprep.subr.bf16.mxu0 %v6934_v47 }
 0x447   : > { %4726 = vmatmul.mubr.msk.f32.vlgmr.msra.gmra.mrb[0].mxu1 %vm952_vm4, %v7573_v26 }
 0x448   : > { %4795 = vmatprep.mubr.msk.f32.mxu1 %vm6935_vm3, %v6933_v53 }
 0x47a   : > { %v6017_v55 = vpop.permute.xlu0 %6016 }
 0x47b   : > { %v6019_v57 = vunpack.i.h.bf16 %v6017_v55  ;;  %v6018_v38 = vunpack.i.l.bf16 %v6017_v55  ;;  %v7644_v55 = vld [vmem:[#allocation3] sm:$0xff] }
 0x47d   : > { %v5422_v39 = vpack.c.bf16 %v6019_v57, %v6018_v38 }
 0x47f   : > { %5424 = vmatpush3.bf16.xpose.msk.msra.mxu1 %vm7475_vm5, %v5422_v39 }
 0x480   : > { %5425 = vmatprep.subr.bf16.mxu1 %v6934_v47 }
 0x482   : > { %v6022_v40 = vpop.permute.xlu0 %6021 }
 0x483   : > { %v6024_v42 = vunpack.i.h.bf16 %v6022_v40  ;;  %v6023_v43 = vunpack.i.l.bf16 %v6022_v40 }
 0x485   : > { %v5426_v44 = vpack.c.bf16 %v6024_v42, %v6023_v43  ;;  %v7663_v42 = vld [vmem:[#allocation3 + $0x8] sm:$0xff] }
 0x487   : > { %5428 = vmatpush3.bf16.xpose.msk.msra.mxu1 %vm7475_vm5, %v5426_v44 }
 0x488   : > { %5429 = vmatprep.subr.bf16.mxu1 %v6934_v47 }
 0x48a   : > { %v6027_v45 = vpop.permute.xlu1 %6026 }
 0x48b   : > { %v6029_v46 = vunpack.i.h.bf16 %v6027_v45  ;;  %v6028_v48 = vunpack.i.l.bf16 %v6027_v45 }
 0x48d   : > { %v5430_v49 = vpack.c.bf16 %v6029_v46, %v6028_v48 }
 0x48f   : > { %5432 = vmatpush3.bf16.xpose.msk.msra.mxu1 %vm7475_vm5, %v5430_v49 }
 0x490   : > { %5433 = vmatprep.subr.bf16.mxu1 %v6934_v47 }
 0x492   : > { %v6032_v51 = vpop.permute.xlu1 %6031 }
 0x493   : > { %v6034_v52 = vunpack.i.h.bf16 %v6032_v51  ;;  %v6033_v54 = vunpack.i.l.bf16 %v6032_v51 }
 0x495   : > { %v5434_v58 = vpack.c.bf16 %v6034_v52, %v6033_v54 }
 0x497   : > { %5436 = vmatpush3.bf16.xpose.msk.msra.mxu1 %vm7475_vm5, %v5434_v58 }
 0x498   : > { %5437 = vmatprep.subr.bf16.mxu1 %v6934_v47 }
 0x49a   : > { %v6037_v60 = vpop.permute.xlu0 %6036 }
 0x49b   : > { %v6039_v61 = vunpack.i.h.bf16 %v6037_v60  ;;  %v6038_v62 = vunpack.i.l.bf16 %v6037_v60 }
 0x49d   : > { %v5438_v63 = vpack.c.bf16 %v6039_v61, %v6038_v62 }
 0x49f   : > { %5440 = vmatpush3.bf16.xpose.msk.msra.mxu1 %vm7475_vm5, %v5438_v63 }
 0x4a0   : > { %5441 = vmatprep.subr.bf16.mxu1 %v6934_v47 }
 0x4a2   : > { %v6042_v2 = vpop.permute.xlu1 %6041 }
 0x4a3   : > { %v6044_v4 = vunpack.i.h.bf16 %v6042_v2  ;;  %v6043_v6 = vunpack.i.l.bf16 %v6042_v2 }
 0x4a5   : > { %v5442_v7 = vpack.c.bf16 %v6044_v4, %v6043_v6 }
 0x4a7   : > { %5444 = vmatpush3.bf16.xpose.msk.msra.mxu1 %vm7475_vm5, %v5442_v7 }
 0x4a8   : > { %5445 = vmatprep.subr.bf16.mxu1 %v6934_v47 }
 0x4aa   : > { %v6047_v9 = vpop.permute.xlu0 %6046 }
 0x4ab   : > { %v6049_v10 = vunpack.i.h.bf16 %v6047_v9  ;;  %v6048_v11 = vunpack.i.l.bf16 %v6047_v9 }
 0x4ad   : > { %v5446_v12 = vpack.c.bf16 %v6049_v10, %v6048_v11 }
 0x4ae   : > { %v1185_v20 = vpop.permute.xlu0 %1184 }
 0x4af   : > { %5448 = vmatpush3.bf16.xpose.msk.msra.mxu1 %vm7475_vm5, %v5446_v12 }
 0x4b0   : > { %5449 = vmatprep.subr.bf16.mxu1 %v6934_v47 }
 0x4b2   : > { %v6052_v14 = vpop.permute.xlu1 %6051 }
 0x4b3   : > { %v6054_v15 = vunpack.i.h.bf16 %v6052_v14  ;;  %v6053_v16 = vunpack.i.l.bf16 %v6052_v14 }
 0x4b5   : > { %v5450_v19 = vpack.c.bf16 %v6054_v15, %v6053_v16 }
 0x4b7   : > { %5452 = vmatpush3.bf16.xpose.msk.msra.mxu1 %vm7475_vm5, %v5450_v19 }
 0x4b8   : > { %5509 = vmatprep.subr.bf16.mxu1 %v6934_v47 }
 0x4be   : > { %4796 = vmatmul.mubr.msk.f32.vlgmr.msra.gmra.mrb[2].mxu1 %vm952_vm4, %v1185_v20 }
 0x4bf   : > { %4900 = vmatprep.mubr.msk.f32.mxu1 %vm6935_vm3, %v6933_v53 }
 0x51a   : > { %v1070_v28 = vpop.f32.mrb[0].mxu1 }
 0x51b   : > { %v1077_v30 = vsel %vm7623_vm7, %v1070_v28, -inf  ;;  %v4727_v31 = vpop.f32.mrb[1].mxu1 }
 0x51c   : > { %1079 = vmax.xlane.f32.xlu1 %v1077_v30 }
 0x52d   : > { %6057 = vrot.lane.b32.xlu1 %v7481_v5, %s6936_s8 }
 0x531   : > { %6062 = vrot.lane.b32.xlu1 %v7495_v17, %s6936_s8 }
 0x535   : > { %6067 = vrot.lane.b32.xlu1 %v7509_v29, %s6936_s8 }
 0x539   : > { %6072 = vrot.lane.b32.xlu1 %v7523_v41, %s6936_s8 }
 0x53d   : > { %6077 = vrot.lane.b32.xlu1 %v7537_v56, %s6936_s8 }
 0x591   : > { %v1318_v32 = vpop.f32.mrb[2].mxu1 }
 0x592   : > { %v4797_v34 = vpop.f32.mrb[3].mxu1  ;;  %v7641_v35 = vsel %vm7623_vm7, %v1318_v32, -inf }
 0x593   : > { %1325 = vmax.xlane.f32.xlu0 %v7641_v35 }
 0x5a9   : > { %v1080_v57 = vpop.xlane.xlu1 %1079 }
 0x5aa   : > { %v1081_v38 = vmax.f32 %v7644_v55, %v1080_v57 }
 0x5ac   : > { %1181 = vst.msk [vmem:[#allocation3] sm:$0xff] %vm1100_vm8, %v1081_v38  ;;  %vm1082_vm9 = vcmp.eq.f32.partialorder %v1081_v38, -inf }
 0x5ad   : > { %v7648_v39 = vsel %vm1082_vm9, 0.0, %v1081_v38  ;;  %v6058_v48 = vpop.permute.xlu1 %6057 }
 0x5ae   : > { %v1084_v40 = vsub.f32 %v7644_v55, %v7648_v39  ;;  %1089 = vperm.xlu0 %6055, %v7648_v39   ;;  %v6060_v58 = vunpack.i.h.bf16 %v6058_v48  ;;  %v6059_v59 = vunpack.i.l.bf16 %v6058_v48 }
 0x5b0   : > { %v5454_v62 = vpack.c.bf16 %v6060_v58, %v6059_v59 }
 0x5b1   : > { %v6063_v54 = vpop.permute.xlu1 %6062 }
 0x5b2   : > { %6093 = vrot.lane.b32.xlu0 %v7583_v36, %s6936_s8  ;;  %v6065_v63 = vunpack.i.h.bf16 %v6063_v54  ;;  %v6064_v2 = vunpack.i.l.bf16 %v6063_v54 }
 0x5b4   : > { %v5457_v6 = vpack.c.bf16 %v6065_v63, %v6064_v2 }
 0x5b5   : > { %v6068_v60 = vpop.permute.xlu1 %6067 }
 0x5b6   : > { %6103 = vrot.lane.b32.xlu0 %v7493_v13, %s6938_s13  ;;  %v6070_v7 = vunpack.i.h.bf16 %v6068_v60  ;;  %v6069_v9 = vunpack.i.l.bf16 %v6068_v60 }
 0x5b8   : > { %v5460_v10 = vpack.c.bf16 %v6070_v7, %v6069_v9 }
 0x5b9   : > { %v6073_v4 = vpop.permute.xlu1 %6072 }
 0x5ba   : > { %6113 = vrot.lane.b32.xlu0 %v7521_v37, %s6938_s13  ;;  %v6075_v11 = vunpack.i.h.bf16 %v6073_v4  ;;  %v6074_v12 = vunpack.i.l.bf16 %v6073_v4 }
 0x5bc   : > { %v5463_v15 = vpack.c.bf16 %v6075_v11, %v6074_v12 }
 0x5bd   : > { %v6078_v14 = vpop.permute.xlu1 %6077 }
 0x5be   : > { %6123 = vrot.lane.b32.xlu0 %v7549_v3, %s6938_s13  ;;  %v6080_v16 = vunpack.i.h.bf16 %v6078_v14  ;;  %v6079_v19 = vunpack.i.l.bf16 %v6078_v14 }
 0x5c0   : > { %v5466_v20 = vpack.c.bf16 %v6080_v16, %v6079_v19 }
 0x5c2   : > { %6133 = vrot.lane.b32.xlu0 %v7581_v33, %s6938_s13 }
 0x620   : > { %v1326_v43 = vpop.xlane.xlu0 %1325 }
 0x621   : > { %v1327_v44 = vmax.f32 %v7663_v42, %v1326_v43 }
 0x623   : > { %1492 = vst.msk [vmem:[#allocation3 + $0x8] sm:$0xff] %vm1100_vm8, %v1327_v44  ;;  %vm1328_vm10 = vcmp.eq.f32.partialorder %v1327_v44, -inf }
 0x624   : > { %v7667_v45 = vsel %vm1328_vm10, 0.0, %v1327_v44 }
 0x625   : > { %1335 = vperm.xlu1 %6081, %v7667_v45   ;;  %v1330_v46 = vsub.f32 %v7663_v42, %v7667_v45 }
 0x629   : > { %6083 = vrot.lane.b32.xlu1 %v7551_v8, %s6936_s8 }
 0x62d   : > { %6088 = vrot.lane.b32.xlu1 %v7565_v22, %s6936_s8  ;;  %v1090_v49 = vpop.permute.xlu0 %1089 }
 0x62e   : > { %v1092_v51 = vsub.f32 %v1077_v30, %v1090_v49 }
 0x630   : > { %v1093_v52 = vmul.f32 1.442695, %v1092_v51 }
 0x631   : > { %6098 = vrot.lane.b32.xlu1 %v7479_v1, %s6938_s13  ;;  %v6094_v34 = vpop.permute.xlu0 %6093 }
 0x632   : > { %6577 = vpow2.f32 %v1093_v52  ;;  %v6096_v44 = vunpack.i.h.bf16 %v6094_v34  ;;  %v6095_v48 = vunpack.i.l.bf16 %v6094_v34 }
 0x635   : > { %6108 = vrot.lane.b32.xlu1 %v7507_v25, %s6938_s13  ;;  %v6104_v2 = vpop.permute.xlu0 %6103 }
 0x636   : > { %v6106_v4 = vunpack.i.h.bf16 %v6104_v2 }
 0x639   : > { %6118 = vrot.lane.b32.xlu1 %v7535_v50, %s6938_s13 }
 0x63c   : > { %v7682_v61 = vpop.eup %6577 }
 0x63d   : > { %6128 = vrot.lane.b32.xlu1 %v7563_v18, %s6938_s13  ;;  %4761 = vmatmul.mubr.f32.vlgmr.msra.gmra.mrb[32].mxu0 %v7682_v61 }
 0x63e   : > { %5455 = vmatpush3.bf16.msra.mxu0 %v5454_v62  ;;  %4830 = vmatprep.mubr.msk.f32.mxu0 %vm6935_vm3, %v6933_v53 }
 0x63f   : > { %5456 = vmatprep.subr.bf16.mxu0 %v6934_v47 }
 0x641   : > { %1495 = vrot.lane.b32.xlu1 %v7573_v26, %s6938_s13 }
 0x642   : > { %5458 = vmatpush3.bf16.msra.mxu0 %v5457_v6  ;;  %v6105_v6 = vunpack.i.l.bf16 %v6104_v2 }
 0x643   : > { %5459 = vmatprep.subr.bf16.mxu0 %v6934_v47 }
 0x644   : > { %v5482_v9 = vpack.c.bf16 %v6106_v4, %v6105_v6 }
 0x645   : > { %6138 = vrot.lane.b32.xlu1 %v7481_v5, %s6938_s13 }
 0x646   : > { %5461 = vmatpush3.bf16.msra.mxu0 %v5460_v10 }
 0x647   : > { %5462 = vmatprep.subr.bf16.mxu0 %v6934_v47 }
 0x649   : > { %6143 = vrot.lane.b32.xlu1 %v7495_v17, %s6938_s13 }
 0x64a   : > { %5464 = vmatpush3.bf16.msra.mxu0 %v5463_v15 }
 0x64b   : > { %5465 = vmatprep.subr.bf16.mxu0 %v6934_v47 }
 0x64d   : > { %6148 = vrot.lane.b32.xlu1 %v7509_v29, %s6938_s13 }
 0x64e   : > { %5467 = vmatpush3.bf16.msra.mxu0 %v5466_v20 }
 0x64f   : > { %5468 = vmatprep.subr.bf16.mxu0 %v6934_v47 }
 0x651   : > { %6153 = vrot.lane.b32.xlu1 %v7523_v41, %s6938_s13 }
 0x655   : > { %6158 = vrot.lane.b32.xlu1 %v7537_v56, %s6938_s13 }
 0x6a4   : > { %v1336_v21 = vpop.permute.xlu1 %1335 }
 0x6a5   : > { %v1338_v23 = vsub.f32 %v7641_v35, %v1336_v21  ;;  %v5475_v35 = vpack.c.bf16 %v6096_v44, %v6095_v48 }
 0x6a7   : > { %v1339_v28 = vmul.f32 1.442695, %v1338_v23 }
 0x6a8   : > { %v6084_v24 = vpop.permute.xlu1 %6083 }
 0x6a9   : > { %v6086_v30 = vunpack.i.h.bf16 %v6084_v24  ;;  %v6085_v31 = vunpack.i.l.bf16 %v6084_v24  ;;  %6579 = vpow2.f32 %v1339_v28 }
 0x6ab   : > { %v5469_v32 = vpack.c.bf16 %v6086_v30, %v6085_v31  ;;  %v6114_v30 = vpop.permute.xlu0 %6113 }
 0x6ac   : > { %v6089_v57 = vpop.permute.xlu1 %6088 }
 0x6ad   : > { %v6091_v38 = vunpack.i.h.bf16 %v6089_v57  ;;  %v6090_v43 = vunpack.i.l.bf16 %v6089_v57  ;;  %5470 = vmatpush3.bf16.msra.mxu0 %v5469_v32  ;;  %v6116_v57 = vunpack.i.h.bf16 %v6114_v30 }
 0x6ae   : > { %5471 = vmatprep.subr.bf16.mxu0 %v6934_v47 }
 0x6af   : > { %v5472_v49 = vpack.c.bf16 %v6091_v38, %v6090_v43  ;;  %v6115_v38 = vunpack.i.l.bf16 %v6114_v30  ;;  %v6124_v6 = vpop.permute.xlu0 %6123 }
 0x6b0   : > { %v6099_v51 = vpop.permute.xlu1 %6098 }
 0x6b1   : > { %5473 = vmatpush3.bf16.msra.mxu0 %v5472_v49  ;;  %v6101_v58 = vunpack.i.h.bf16 %v6099_v51  ;;  %v6100_v59 = vunpack.i.l.bf16 %v6099_v51  ;;  %v5490_v51 = vpack.c.bf16 %v6116_v57, %v6115_v38 }
 0x6b2   : > { %5474 = vmatprep.subr.bf16.mxu0 %v6934_v47 }
 0x6b3   : > { %v7710_v54 = vpop.eup %6579  ;;  %v5478_v62 = vpack.c.bf16 %v6101_v58, %v6100_v59 }
 0x6b4   : > { %v6109_v52 = vpop.permute.xlu1 %6108 }
 0x6b5   : > { %5476 = vmatpush3.bf16.msra.mxu0 %v5475_v35  ;;  %v6111_v15 = vunpack.i.h.bf16 %v6109_v52  ;;  %v6110_v16 = vunpack.i.l.bf16 %v6109_v52 }
 0x6b6   : > { %5477 = vmatprep.subr.bf16.mxu0 %v6934_v47 }
 0x6b7   : > { %v5486_v24 = vpack.c.bf16 %v6111_v15, %v6110_v16  ;;  %v6134_v15 = vpop.permute.xlu0 %6133 }
 0x6b8   : > { %v6119_v60 = vpop.permute.xlu1 %6118  ;;  %4831 = vmatmul.mubr.f32.vlgmr.msra.gmra.mrb[34].mxu0 %v7710_v54  ;;  %v6136_v16 = vunpack.i.h.bf16 %v6134_v15 }
 0x6b9   : > { %4865 = vmatprep.mubr.msk.f32.mxu0 %vm6935_vm3, %v6933_v53  ;;  %v6120_v2 = vunpack.i.l.bf16 %v6119_v60 }
 0x6bc   : > { %v7715_v63 = vpop.permute.xlu1 %6128 }
 0x6be   : > { %5480 = vmatpush3.bf16.xpose.msk.msra.mxu0 %vm7475_vm5, %v5478_v62  ;;  %v6121_v62 = vunpack.i.h.bf16 %v6119_v60  ;;  %v6131_v60 = vunpack.i.h.bf16 %v7715_v63 }
 0x6bf   : > { %5481 = vmatprep.subr.bf16.mxu0 %v6934_v47 }
 0x6c0   : > { %v7720_v7 = vpop.permute.xlu1 %1495  ;;  %v5494_v4 = vpack.c.bf16 %v6121_v62, %v6120_v2 }
 0x6c4   : > { %v6139_v10 = vpop.permute.xlu1 %6138 }
 0x6c5   : > { %v6141_v11 = vunpack.i.h.bf16 %v6139_v10  ;;  %v6140_v12 = vunpack.i.l.bf16 %v6139_v10  ;;  %v6125_v10 = vunpack.i.l.bf16 %v6124_v6 }
 0x6c6   : > { %5484 = vmatpush3.bf16.xpose.msk.msra.mxu0 %vm7475_vm5, %v5482_v9  ;;  %v6126_v9 = vunpack.i.h.bf16 %v6124_v6 }
 0x6c7   : > { %v5510_v14 = vpack.c.bf16 %v6141_v11, %v6140_v12  ;;  %5485 = vmatprep.subr.bf16.mxu0 %v6934_v47  ;;  %v6130_v12 = vunpack.i.l.bf16 %v7715_v63 }
 0x6c8   : > { %v6144_v19 = vpop.permute.xlu1 %6143  ;;  %v5498_v11 = vpack.c.bf16 %v6126_v9, %v6125_v10 }
 0x6c9   : > { %v6146_v20 = vunpack.i.h.bf16 %v6144_v19  ;;  %v6145_v21 = vunpack.i.l.bf16 %v6144_v19  ;;  %5511 = vmatpush3.bf16.msra.mxu1 %v5510_v14  ;;  %v5502_v14 = vpack.c.bf16 %v6131_v60, %v6130_v12  ;;  %v6135_v19 = vunpack.i.l.bf16 %v6134_v15 }
 0x6ca   : > { %5512 = vmatprep.subr.bf16.mxu1 %v6934_v47 }
 0x6cb   : > { %v5513_v23 = vpack.c.bf16 %v6146_v20, %v6145_v21  ;;  %v5506_v20 = vpack.c.bf16 %v6136_v16, %v6135_v19 }
 0x6cc   : > { %v6149_v28 = vpop.permute.xlu1 %6148 }
 0x6cd   : > { %v6151_v31 = vunpack.i.h.bf16 %v6149_v28  ;;  %v6150_v32 = vunpack.i.l.bf16 %v6149_v28  ;;  %5514 = vmatpush3.bf16.msra.mxu1 %v5513_v23 }
 0x6ce   : > { %5488 = vmatpush3.bf16.xpose.msk.msra.mxu0 %vm7475_vm5, %v5486_v24  ;;  %5515 = vmatprep.subr.bf16.mxu1 %v6934_v47 }
 0x6cf   : > { %v5516_v34 = vpack.c.bf16 %v6151_v31, %v6150_v32  ;;  %5489 = vmatprep.subr.bf16.mxu0 %v6934_v47 }
 0x6d0   : > { %v6154_v43 = vpop.permute.xlu1 %6153 }
 0x6d1   : > { %v6156_v44 = vunpack.i.h.bf16 %v6154_v43  ;;  %v6155_v48 = vunpack.i.l.bf16 %v6154_v43  ;;  %5517 = vmatpush3.bf16.msra.mxu1 %v5516_v34 }
 0x6d2   : > { %5518 = vmatprep.subr.bf16.mxu1 %v6934_v47 }
 0x6d3   : > { %v5519_v49 = vpack.c.bf16 %v6156_v44, %v6155_v48 }
 0x6d4   : > { %v6159_v35 = vpop.permute.xlu1 %6158 }
 0x6d5   : > { %v6161_v52 = vunpack.i.h.bf16 %v6159_v35  ;;  %v6160_v58 = vunpack.i.l.bf16 %v6159_v35  ;;  %5520 = vmatpush3.bf16.msra.mxu1 %v5519_v49 }
 0x6d6   : > { %5492 = vmatpush3.bf16.xpose.msk.msra.mxu0 %vm7475_vm5, %v5490_v51  ;;  %5521 = vmatprep.subr.bf16.mxu1 %v6934_v47 }
 0x6d7   : > { %v5522_v59 = vpack.c.bf16 %v6161_v52, %v6160_v58  ;;  %5493 = vmatprep.subr.bf16.mxu0 %v6934_v47 }
 0x6d9   : > { %5523 = vmatpush3.bf16.msra.mxu1 %v5522_v59 }
 0x6da   : > { %5524 = vmatprep.subr.bf16.mxu1 %v6934_v47 }
 0x6de   : > { %5496 = vmatpush3.bf16.xpose.msk.msra.mxu0 %vm7475_vm5, %v5494_v4 }
 0x6df   : > { %5497 = vmatprep.subr.bf16.mxu0 %v6934_v47 }
 0x6e6   : > { %5500 = vmatpush3.bf16.xpose.msk.msra.mxu0 %vm7475_vm5, %v5498_v11 }
 0x6e7   : > { %5501 = vmatprep.subr.bf16.mxu0 %v6934_v47 }
 0x6ee   : > { %5504 = vmatpush3.bf16.xpose.msk.msra.mxu0 %vm7475_vm5, %v5502_v14 }
 0x6ef   : > { %5505 = vmatprep.subr.bf16.mxu0 %v6934_v47 }
 0x6f6   : > { %5508 = vmatpush3.bf16.xpose.msk.msra.mxu0 %vm7475_vm5, %v5506_v20 }
 0x6f7   : > { %5565 = vmatprep.subr.bf16.mxu0 %v6934_v47 }
 0x6fd   : > { %4866 = vmatmul.mubr.msk.f32.vlgmr.msra.gmra.mrb[36].mxu0 %vm952_vm4, %v7720_v7  ;;  %v7766_v7 = vld [vmem:[#allocation3 + $0x10] sm:$0xff] }
 0x6fe   : > { %4970 = vmatprep.mubr.msk.f32.mxu0 %vm6935_vm3, %v6933_v53 }
 0x710   : > { %v7754_v63 = vpop.f32.mrb[32].mxu0 }
 0x711   : > { %v4762_v21 = vpop.f32.mrb[33].mxu0 }
 0x78b   : > { %v7756_v23 = vpop.f32.mrb[34].mxu0 }
 0x78c   : > { %v4832_v24 = vpop.f32.mrb[35].mxu0 }
 0x7d0   : > { %v1629_v28 = vpop.f32.mrb[36].mxu0 }
 0x7d1   : > { %v4867_v30 = vpop.f32.mrb[37].mxu0  ;;  %v1633_v31 = vsel %vm7623_vm7, %v1629_v28, -inf }
 0x7d2   : > { %1636 = vmax.xlane.f32.xlu0 %v1633_v31 }
 0x7e8   : > { %6173 = vrot.lane.b32.xlu0 %v7583_v36, %s6938_s13 }
 0x7ec   : > { %6203 = vrot.lane.b32.xlu0 %v7549_v3, %s6939_s23 }
 0x7f0   : > { %6213 = vrot.lane.b32.xlu0 %v7581_v33, %s6939_s23 }
 0x85f   : > { %v1637_v32 = vpop.xlane.xlu0 %1636 }
 0x860   : > { %v1638_v34 = vmax.f32 %v7766_v7, %v1637_v32 }
 0x862   : > { %1787 = vst.msk [vmem:[#allocation3 + $0x10] sm:$0xff] %vm1100_vm8, %v1638_v34  ;;  %vm1639_vm11 = vcmp.eq.f32.partialorder %v1638_v34, -inf }
 0x863   : > { %v7770_v57 = vsel %vm1639_vm11, 0.0, %v1638_v34  ;;  %v6174_v58 = vpop.permute.xlu0 %6173 }
 0x864   : > { %1646 = vperm.xlu1 %6081, %v7770_v57   ;;  %v1641_v38 = vsub.f32 %v7766_v7, %v7770_v57  ;;  %v6176_v4 = vunpack.i.h.bf16 %v6174_v58  ;;  %v6175_v6 = vunpack.i.l.bf16 %v6174_v58 }
 0x866   : > { %v5531_v11 = vpack.c.bf16 %v6176_v4, %v6175_v6 }
 0x868   : > { %6163 = vrot.lane.b32.xlu1 %v7551_v8, %s6938_s13 }
 0x86c   : > { %6168 = vrot.lane.b32.xlu1 %v7565_v22, %s6938_s13 }
 0x870   : > { %6178 = vrot.lane.b32.xlu1 %v7479_v1, %s6939_s23 }
 0x874   : > { %6183 = vrot.lane.b32.xlu1 %v7493_v13, %s6939_s23 }
 0x878   : > { %6188 = vrot.lane.b32.xlu1 %v7507_v25, %s6939_s23 }
 0x87c   : > { %6193 = vrot.lane.b32.xlu1 %v7521_v37, %s6939_s23 }
 0x880   : > { %6198 = vrot.lane.b32.xlu1 %v7535_v50, %s6939_s23 }
 0x884   : > { %6208 = vrot.lane.b32.xlu1 %v7563_v18, %s6939_s23 }
 0x888   : > { %1790 = vrot.lane.b32.xlu1 %v7573_v26, %s6939_s23 }
 0x88c   : > { %6218 = vrot.lane.b32.xlu1 %v7481_v5, %s6939_s23 }
 0x890   : > { %6223 = vrot.lane.b32.xlu1 %v7495_v17, %s6939_s23 }
 0x894   : > { %6228 = vrot.lane.b32.xlu1 %v7509_v29, %s6939_s23 }
 0x898   : > { %6233 = vrot.lane.b32.xlu1 %v7523_v41, %s6939_s23 }
 0x89c   : > { %6238 = vrot.lane.b32.xlu1 %v7537_v56, %s6939_s23 }
 0x8e3   : > { %v1647_v43 = vpop.permute.xlu1 %1646 }
 0x8e4   : > { %v1649_v44 = vsub.f32 %v1633_v31, %v1647_v43 }
 0x8e6   : > { %v1650_v49 = vmul.f32 1.442695, %v1649_v44 }
 0x8e7   : > { %v6164_v48 = vpop.permute.xlu1 %6163 }
 0x8e8   : > { %v6166_v51 = vunpack.i.h.bf16 %v6164_v48  ;;  %v6165_v35 = vunpack.i.l.bf16 %v6164_v48  ;;  %6581 = vpow2.f32 %v1650_v49 }
 0x8ea   : > { %v5525_v52 = vpack.c.bf16 %v6166_v51, %v6165_v35 }
 0x8eb   : > { %v6169_v59 = vpop.permute.xlu1 %6168 }
 0x8ec   : > { %v6171_v62 = vunpack.i.h.bf16 %v6169_v59  ;;  %v6170_v2 = vunpack.i.l.bf16 %v6169_v59  ;;  %5526 = vmatpush3.bf16.msra.mxu1 %v5525_v52 }
 0x8ed   : > { %5527 = vmatprep.subr.bf16.mxu1 %v6934_v47 }
 0x8ee   : > { %v5528_v9 = vpack.c.bf16 %v6171_v62, %v6170_v2 }
 0x8ef   : > { %v6179_v10 = vpop.permute.xlu1 %6178 }
 0x8f0   : > { %5529 = vmatpush3.bf16.msra.mxu1 %v5528_v9  ;;  %v6181_v14 = vunpack.i.h.bf16 %v6179_v10  ;;  %v6180_v15 = vunpack.i.l.bf16 %v6179_v10 }
 0x8f1   : > { %5530 = vmatprep.subr.bf16.mxu1 %v6934_v47 }
 0x8f2   : > { %v7806_v12 = vpop.eup %6581  ;;  %v5534_v19 = vpack.c.bf16 %v6181_v14, %v6180_v15 }
 0x8f3   : > { %v6184_v60 = vpop.permute.xlu1 %6183 }
 0x8f4   : > { %5532 = vmatpush3.bf16.msra.mxu1 %v5531_v11  ;;  %v6186_v21 = vunpack.i.h.bf16 %v6184_v60  ;;  %v6185_v24 = vunpack.i.l.bf16 %v6184_v60 }
 0x8f5   : > { %5533 = vmatprep.subr.bf16.mxu1 %v6934_v47 }
 0x8f6   : > { %v5538_v30 = vpack.c.bf16 %v6186_v21, %v6185_v24 }
 0x8f7   : > { %v6189_v16 = vpop.permute.xlu1 %6188  ;;  %4901 = vmatmul.mubr.f32.vlgmr.msra.gmra.mrb[4].mxu1 %v7806_v12 }
 0x8f8   : > { %4935 = vmatprep.mubr.msk.f32.mxu1 %vm6935_vm3, %v6933_v53  ;;  %v6191_v32 = vunpack.i.h.bf16 %v6189_v16  ;;  %v6190_v34 = vunpack.i.l.bf16 %v6189_v16 }
 0x8fa   : > { %v5542_v44 = vpack.c.bf16 %v6191_v32, %v6190_v34  ;;  %v6204_v32 = vpop.permute.xlu0 %6203 }
 0x8fb   : > { %v6194_v20 = vpop.permute.xlu1 %6193 }
 0x8fc   : > { %v6196_v52 = vunpack.i.h.bf16 %v6194_v20  ;;  %v6195_v58 = vunpack.i.l.bf16 %v6194_v20 }
 0x8fd   : > { %5536 = vmatpush3.bf16.xpose.msk.msra.mxu1 %vm7475_vm5, %v5534_v19 }
 0x8fe   : > { %5537 = vmatprep.subr.bf16.mxu1 %v6934_v47  ;;  %v5546_v6 = vpack.c.bf16 %v6196_v52, %v6195_v58 }
 0x8ff   : > { %v6199_v28 = vpop.permute.xlu1 %6198 }
 0x900   : > { %v6201_v14 = vunpack.i.h.bf16 %v6199_v28  ;;  %v6200_v15 = vunpack.i.l.bf16 %v6199_v28  ;;  %v6206_v28 = vunpack.i.h.bf16 %v6204_v32 }
 0x902   : > { %v5550_v24 = vpack.c.bf16 %v6201_v14, %v6200_v15 }
 0x903   : > { %v6209_v31 = vpop.permute.xlu1 %6208 }
 0x904   : > { %v6210_v52 = vunpack.i.l.bf16 %v6209_v31 }
 0x905   : > { %5540 = vmatpush3.bf16.xpose.msk.msra.mxu1 %vm7475_vm5, %v5538_v30 }
 0x906   : > { %5541 = vmatprep.subr.bf16.mxu1 %v6934_v47 }
 0x907   : > { %v1791_v43 = vpop.permute.xlu1 %1790 }
 0x90b   : > { %v6219_v48 = vpop.permute.xlu1 %6218 }
 0x90c   : > { %v6221_v49 = vunpack.i.h.bf16 %v6219_v48  ;;  %v6220_v51 = vunpack.i.l.bf16 %v6219_v48 }
 0x90d   : > { %5544 = vmatpush3.bf16.xpose.msk.msra.mxu1 %vm7475_vm5, %v5542_v44 }
 0x90e   : > { %v5566_v35 = vpack.c.bf16 %v6221_v49, %v6220_v51  ;;  %5545 = vmatprep.subr.bf16.mxu1 %v6934_v47  ;;  %v6205_v49 = vunpack.i.l.bf16 %v6204_v32 }
 0x90f   : > { %v6224_v59 = vpop.permute.xlu1 %6223 }
 0x910   : > { %v6226_v62 = vunpack.i.h.bf16 %v6224_v59  ;;  %v6225_v2 = vunpack.i.l.bf16 %v6224_v59  ;;  %5567 = vmatpush3.bf16.msra.mxu0 %v5566_v35  ;;  %v5554_v51 = vpack.c.bf16 %v6206_v28, %v6205_v49  ;;  %v6211_v35 = vunpack.i.h.bf16 %v6209_v31  ;;  %v6214_v59 = vpop.permute.xlu0 %6213 }
 0x911   : > { %5568 = vmatprep.subr.bf16.mxu0 %v6934_v47 }
 0x912   : > { %v5569_v4 = vpack.c.bf16 %v6226_v62, %v6225_v2  ;;  %v5558_v58 = vpack.c.bf16 %v6211_v35, %v6210_v52  ;;  %v6216_v62 = vunpack.i.h.bf16 %v6214_v59  ;;  %v6215_v2 = vunpack.i.l.bf16 %v6214_v59 }
 0x913   : > { %v6229_v9 = vpop.permute.xlu1 %6228 }
 0x914   : > { %v6231_v10 = vunpack.i.h.bf16 %v6229_v9  ;;  %v6230_v11 = vunpack.i.l.bf16 %v6229_v9  ;;  %5570 = vmatpush3.bf16.msra.mxu0 %v5569_v4  ;;  %v5562_v4 = vpack.c.bf16 %v6216_v62, %v6215_v2 }
 0x915   : > { %5548 = vmatpush3.bf16.xpose.msk.msra.mxu1 %vm7475_vm5, %v5546_v6  ;;  %5571 = vmatprep.subr.bf16.mxu0 %v6934_v47 }
 0x916   : > { %v5572_v60 = vpack.c.bf16 %v6231_v10, %v6230_v11  ;;  %5549 = vmatprep.subr.bf16.mxu1 %v6934_v47 }
 0x917   : > { %v6234_v16 = vpop.permute.xlu1 %6233 }
 0x918   : > { %v6236_v19 = vunpack.i.h.bf16 %v6234_v16  ;;  %v6235_v20 = vunpack.i.l.bf16 %v6234_v16  ;;  %5573 = vmatpush3.bf16.msra.mxu0 %v5572_v60 }
 0x919   : > { %5574 = vmatprep.subr.bf16.mxu0 %v6934_v47 }
 0x91a   : > { %v5575_v21 = vpack.c.bf16 %v6236_v19, %v6235_v20 }
 0x91b   : > { %v6239_v30 = vpop.permute.xlu1 %6238 }
 0x91c   : > { %v6241_v34 = vunpack.i.h.bf16 %v6239_v30  ;;  %v6240_v44 = vunpack.i.l.bf16 %v6239_v30  ;;  %5576 = vmatpush3.bf16.msra.mxu0 %v5575_v21 }
 0x91d   : > { %5552 = vmatpush3.bf16.xpose.msk.msra.mxu1 %vm7475_vm5, %v5550_v24  ;;  %5577 = vmatprep.subr.bf16.mxu0 %v6934_v47 }
 0x91e   : > { %v5578_v48 = vpack.c.bf16 %v6241_v34, %v6240_v44  ;;  %5553 = vmatprep.subr.bf16.mxu1 %v6934_v47 }
 0x920   : > { %5579 = vmatpush3.bf16.msra.mxu0 %v5578_v48 }
 0x921   : > { %5580 = vmatprep.subr.bf16.mxu0 %v6934_v47 }
 0x925   : > { %5556 = vmatpush3.bf16.xpose.msk.msra.mxu1 %vm7475_vm5, %v5554_v51 }
 0x926   : > { %5557 = vmatprep.subr.bf16.mxu1 %v6934_v47 }
 0x92d   : > { %5560 = vmatpush3.bf16.xpose.msk.msra.mxu1 %vm7475_vm5, %v5558_v58 }
 0x92e   : > { %5561 = vmatprep.subr.bf16.mxu1 %v6934_v47 }
 0x935   : > { %5564 = vmatpush3.bf16.xpose.msk.msra.mxu1 %vm7475_vm5, %v5562_v4 }
 0x936   : > { %5621 = vmatprep.subr.bf16.mxu1 %v6934_v47 }
 0x93c   : > { %4936 = vmatmul.mubr.msk.f32.vlgmr.msra.gmra.mrb[6].mxu1 %vm952_vm4, %v1791_v43  ;;  %v7853_v43 = vld [vmem:[#allocation3 + $0x18] sm:$0xff] }
 0x93d   : > { %5040 = vmatprep.mubr.msk.f32.mxu1 %vm6935_vm3, %v6933_v53 }
 0x9ca   : > { %v7843_v31 = vpop.f32.mrb[4].mxu1 }
 0x9cb   : > { %v4902_v6 = vpop.f32.mrb[5].mxu1 }
 0xa0f   : > { %v1924_v9 = vpop.f32.mrb[6].mxu1 }
 0xa10   : > { %v4937_v10 = vpop.f32.mrb[7].mxu1  ;;  %v1928_v11 = vsel %vm7623_vm7, %v1924_v9, -inf }
 0xa11   : > { %1931 = vmax.xlane.f32.xlu0 %v1928_v11 }
 0xa27   : > { %6253 = vrot.lane.b32.xlu0 %v7583_v36, %s6939_s23 }
 0xa2b   : > { %6283 = vrot.lane.b32.xlu0 %v7549_v3, %s6940_s29 }
 0xa2f   : > { %6293 = vrot.lane.b32.xlu0 %v7581_v33, %s6940_s29 }
 0xa9e   : > { %v1932_v60 = vpop.xlane.xlu0 %1931 }
 0xa9f   : > { %v1933_v14 = vmax.f32 %v7853_v43, %v1932_v60 }
 0xaa1   : > { %2082 = vst.msk [vmem:[#allocation3 + $0x18] sm:$0xff] %vm1100_vm8, %v1933_v14  ;;  %vm1934_vm12 = vcmp.eq.f32.partialorder %v1933_v14, -inf }
 0xaa2   : > { %v7857_v15 = vsel %vm1934_vm12, 0.0, %v1933_v14  ;;  %v6254_v34 = vpop.permute.xlu0 %6253 }
 0xaa3   : > { %1941 = vperm.xlu1 %6081, %v7857_v15   ;;  %v6256_v49 = vunpack.i.h.bf16 %v6254_v34  ;;  %v6255_v51 = vunpack.i.l.bf16 %v6254_v34 }
 0xaa5   : > { %v5587_v58 = vpack.c.bf16 %v6256_v49, %v6255_v51 }
 0xaa7   : > { %6243 = vrot.lane.b32.xlu1 %v7551_v8, %s6939_s23 }
 0xaab   : > { %6248 = vrot.lane.b32.xlu1 %v7565_v22, %s6939_s23 }
 0xaaf   : > { %6258 = vrot.lane.b32.xlu1 %v7479_v1, %s6940_s29 }
 0xab3   : > { %6263 = vrot.lane.b32.xlu1 %v7493_v13, %s6940_s29 }
 0xab7   : > { %6268 = vrot.lane.b32.xlu1 %v7507_v25, %s6940_s29 }
 0xabb   : > { %6273 = vrot.lane.b32.xlu1 %v7521_v37, %s6940_s29 }
 0xabf   : > { %6278 = vrot.lane.b32.xlu1 %v7535_v50, %s6940_s29 }
 0xac3   : > { %6288 = vrot.lane.b32.xlu1 %v7563_v18, %s6940_s29 }
 0xac7   : > { %2085 = vrot.lane.b32.xlu1 %v7573_v26, %s6940_s29 }
 0xacb   : > { %6298 = vrot.lane.b32.xlu1 %v7481_v5, %s6940_s29 }
 0xacf   : > { %6303 = vrot.lane.b32.xlu1 %v7495_v17, %s6940_s29 }
 0xad3   : > { %6308 = vrot.lane.b32.xlu1 %v7509_v29, %s6940_s29 }
 0xad7   : > { %6313 = vrot.lane.b32.xlu1 %v7523_v41, %s6940_s29 }
 0xadb   : > { %6318 = vrot.lane.b32.xlu1 %v7537_v56, %s6940_s29 }
 0xb22   : > { %v1942_v19 = vpop.permute.xlu1 %1941 }
 0xb23   : > { %v1944_v20 = vsub.f32 %v1928_v11, %v1942_v19 }
 0xb25   : > { %v1945_v24 = vmul.f32 1.442695, %v1944_v20 }
 0xb26   : > { %v6244_v21 = vpop.permute.xlu1 %6243 }
 0xb27   : > { %v6246_v26 = vunpack.i.h.bf16 %v6244_v21  ;;  %v6245_v30 = vunpack.i.l.bf16 %v6244_v21  ;;  %6583 = vpow2.f32 %v1945_v24 }
 0xb29   : > { %v5581_v32 = vpack.c.bf16 %v6246_v26, %v6245_v30 }
 0xb2a   : > { %v6249_v44 = vpop.permute.xlu1 %6248 }
 0xb2b   : > { %v6251_v48 = vunpack.i.h.bf16 %v6249_v44  ;;  %v6250_v28 = vunpack.i.l.bf16 %v6249_v44  ;;  %5582 = vmatpush3.bf16.msra.mxu0 %v5581_v32 }
 0xb2c   : > { %5583 = vmatprep.subr.bf16.mxu0 %v6934_v47 }
 0xb2d   : > { %v5584_v35 = vpack.c.bf16 %v6251_v48, %v6250_v28 }
 0xb2e   : > { %v6259_v52 = vpop.permute.xlu1 %6258 }
 0xb2f   : > { %5585 = vmatpush3.bf16.msra.mxu0 %v5584_v35  ;;  %v6261_v2 = vunpack.i.h.bf16 %v6259_v52  ;;  %v6260_v4 = vunpack.i.l.bf16 %v6259_v52 }
 0xb30   : > { %5586 = vmatprep.subr.bf16.mxu0 %v6934_v47 }
 0xb31   : > { %v7893_v62 = vpop.eup %6583  ;;  %v5590_v9 = vpack.c.bf16 %v6261_v2, %v6260_v4 }
 0xb32   : > { %v6264_v59 = vpop.permute.xlu1 %6263 }
 0xb33   : > { %5588 = vmatpush3.bf16.msra.mxu0 %v5587_v58  ;;  %v6266_v11 = vunpack.i.h.bf16 %v6264_v59  ;;  %v6265_v60 = vunpack.i.l.bf16 %v6264_v59 }
 0xb34   : > { %5589 = vmatprep.subr.bf16.mxu0 %v6934_v47 }
 0xb35   : > { %v5594_v19 = vpack.c.bf16 %v6266_v11, %v6265_v60 }
 0xb36   : > { %v6269_v6 = vpop.permute.xlu1 %6268  ;;  %4971 = vmatmul.mubr.f32.vlgmr.msra.gmra.mrb[38].mxu0 %v7893_v62 }
 0xb37   : > { %5005 = vmatprep.mubr.msk.f32.mxu0 %vm6935_vm3, %v6933_v53  ;;  %v6271_v21 = vunpack.i.h.bf16 %v6269_v6  ;;  %v6270_v24 = vunpack.i.l.bf16 %v6269_v6 }
 0xb39   : > { %v5598_v30 = vpack.c.bf16 %v6271_v21, %v6270_v24 }
 0xb3a   : > { %v6274_v10 = vpop.permute.xlu1 %6273 }
 0xb3b   : > { %v6276_v28 = vunpack.i.h.bf16 %v6274_v10  ;;  %v6275_v49 = vunpack.i.l.bf16 %v6274_v10 }
 0xb3c   : > { %5592 = vmatpush3.bf16.xpose.msk.msra.mxu0 %vm7475_vm5, %v5590_v9 }
 0xb3d   : > { %5593 = vmatprep.subr.bf16.mxu0 %v6934_v47  ;;  %v5602_v59 = vpack.c.bf16 %v6276_v28, %v6275_v49 }
 0xb3e   : > { %v6279_v14 = vpop.permute.xlu1 %6278 }
 0xb3f   : > { %v6281_v10 = vunpack.i.h.bf16 %v6279_v14  ;;  %v6280_v11 = vunpack.i.l.bf16 %v6279_v14 }
 0xb42   : > { %v6289_v20 = vpop.permute.xlu1 %6288 }
 0xb44   : > { %5596 = vmatpush3.bf16.xpose.msk.msra.mxu0 %vm7475_vm5, %v5594_v19 }
 0xb45   : > { %5597 = vmatprep.subr.bf16.mxu0 %v6934_v47 }
 0xb46   : > { %v2086_v26 = vpop.permute.xlu1 %2085 }
 0xb4a   : > { %v6299_v32 = vpop.permute.xlu1 %6298 }
 0xb4b   : > { %v6301_v34 = vunpack.i.h.bf16 %v6299_v32  ;;  %v6300_v44 = vunpack.i.l.bf16 %v6299_v32 }
 0xb4c   : > { %5600 = vmatpush3.bf16.xpose.msk.msra.mxu0 %vm7475_vm5, %v5598_v30  ;;  %v5606_v30 = vpack.c.bf16 %v6281_v10, %v6280_v11 }
 0xb4d   : > { %v5622_v48 = vpack.c.bf16 %v6301_v34, %v6300_v44  ;;  %5601 = vmatprep.subr.bf16.mxu0 %v6934_v47  ;;  %v6284_v34 = vpop.permute.xlu0 %6283 }
 0xb4e   : > { %v6304_v51 = vpop.permute.xlu1 %6303  ;;  %v6286_v14 = vunpack.i.h.bf16 %v6284_v34  ;;  %v6285_v49 = vunpack.i.l.bf16 %v6284_v34 }
 0xb4f   : > { %v6306_v35 = vunpack.i.h.bf16 %v6304_v51  ;;  %v6305_v52 = vunpack.i.l.bf16 %v6304_v51  ;;  %5623 = vmatpush3.bf16.msra.mxu1 %v5622_v48 }
 0xb50   : > { %5624 = vmatprep.subr.bf16.mxu1 %v6934_v47  ;;  %v5610_v51 = vpack.c.bf16 %v6286_v14, %v6285_v49 }
 0xb51   : > { %v5625_v58 = vpack.c.bf16 %v6306_v35, %v6305_v52  ;;  %v6291_v35 = vunpack.i.h.bf16 %v6289_v20  ;;  %v6290_v52 = vunpack.i.l.bf16 %v6289_v20 }
 0xb52   : > { %v6309_v2 = vpop.permute.xlu1 %6308 }
 0xb53   : > { %v6311_v4 = vunpack.i.h.bf16 %v6309_v2  ;;  %v6310_v6 = vunpack.i.l.bf16 %v6309_v2  ;;  %5626 = vmatpush3.bf16.msra.mxu1 %v5625_v58  ;;  %v5614_v58 = vpack.c.bf16 %v6291_v35, %v6290_v52 }
 0xb54   : > { %5604 = vmatpush3.bf16.xpose.msk.msra.mxu0 %vm7475_vm5, %v5602_v59  ;;  %5627 = vmatprep.subr.bf16.mxu1 %v6934_v47  ;;  %v6294_v59 = vpop.permute.xlu0 %6293 }
 0xb55   : > { %v5628_v9 = vpack.c.bf16 %v6311_v4, %v6310_v6  ;;  %5605 = vmatprep.subr.bf16.mxu0 %v6934_v47  ;;  %v6296_v2 = vunpack.i.h.bf16 %v6294_v59  ;;  %v6295_v4 = vunpack.i.l.bf16 %v6294_v59 }
 0xb56   : > { %v6314_v60 = vpop.permute.xlu1 %6313 }
 0xb57   : > { %v6316_v19 = vunpack.i.h.bf16 %v6314_v60  ;;  %v6315_v21 = vunpack.i.l.bf16 %v6314_v60  ;;  %5629 = vmatpush3.bf16.msra.mxu1 %v5628_v9  ;;  %v5618_v6 = vpack.c.bf16 %v6296_v2, %v6295_v4 }
 0xb58   : > { %5630 = vmatprep.subr.bf16.mxu1 %v6934_v47 }
 0xb59   : > { %v5631_v24 = vpack.c.bf16 %v6316_v19, %v6315_v21  ;;  %v7955_v19 = vld [vmem:[#allocation3 + $0x20] sm:$0xff] }
 0xb5a   : > { %v6319_v32 = vpop.permute.xlu1 %6318 }
 0xb5b   : > { %v6321_v44 = vunpack.i.h.bf16 %v6319_v32  ;;  %v6320_v48 = vunpack.i.l.bf16 %v6319_v32  ;;  %5632 = vmatpush3.bf16.msra.mxu1 %v5631_v24 }
 0xb5c   : > { %5608 = vmatpush3.bf16.xpose.msk.msra.mxu0 %vm7475_vm5, %v5606_v30  ;;  %5633 = vmatprep.subr.bf16.mxu1 %v6934_v47 }
 0xb5d   : > { %v5634_v28 = vpack.c.bf16 %v6321_v44, %v6320_v48  ;;  %5609 = vmatprep.subr.bf16.mxu0 %v6934_v47 }
 0xb5f   : > { %5635 = vmatpush3.bf16.msra.mxu1 %v5634_v28 }
 0xb60   : > { %5636 = vmatprep.subr.bf16.mxu1 %v6934_v47 }
 0xb64   : > { %5612 = vmatpush3.bf16.xpose.msk.msra.mxu0 %vm7475_vm5, %v5610_v51 }
 0xb65   : > { %5613 = vmatprep.subr.bf16.mxu0 %v6934_v47 }
 0xb6c   : > { %5616 = vmatpush3.bf16.xpose.msk.msra.mxu0 %vm7475_vm5, %v5614_v58 }
 0xb6d   : > { %5617 = vmatprep.subr.bf16.mxu0 %v6934_v47 }
 0xb74   : > { %5620 = vmatpush3.bf16.xpose.msk.msra.mxu0 %vm7475_vm5, %v5618_v6 }
 0xb75   : > { %5677 = vmatprep.subr.bf16.mxu0 %v6934_v47 }
 0xb7b   : > { %5006 = vmatmul.mubr.msk.f32.vlgmr.msra.gmra.mrb[40].mxu0 %vm952_vm4, %v2086_v26  ;;  %v7941_v26 = vld [vmem:[#allocation2] sm:$0xff] }
 0xb7c   : > { %5110 = vmatprep.mubr.msk.f32.mxu0 %vm6935_vm3, %v6933_v53 }
 0xc09   : > { %v7930_v20 = vpop.f32.mrb[38].mxu0 }
 0xc0a   : > { %v4972_v9 = vpop.f32.mrb[39].mxu0 }
 0xc4e   : > { %v2219_v10 = vpop.f32.mrb[40].mxu0 }
 0xc4f   : > { %v5007_v11 = vpop.f32.mrb[41].mxu0  ;;  %v7934_v60 = vsel %vm7623_vm7, %v2219_v10, -inf }
 0xc50   : > { %2226 = vmax.xlane.f32.xlu0 %v7934_v60 }
 0xc66   : > { %6333 = vrot.lane.b32.xlu0 %v7583_v36, %s6940_s29 }
 0xc6a   : > { %6368 = vrot.lane.b32.xlu0 %v7563_v18, %s6941_s26 }
 0xc6e   : > { %2380 = vrot.lane.b32.xlu0 %v7941_v26, %s6941_s26 }
 0xc72   : > { %6378 = vrot.lane.b32.xlu0 %v7481_v5, %s6941_s26 }
 0xc76   : > { %6383 = vrot.lane.b32.xlu0 %v7495_v17, %s6941_s26 }
 0xc7a   : > { %6388 = vrot.lane.b32.xlu0 %v7509_v29, %s6941_s26 }
 0xc7e   : > { %6393 = vrot.lane.b32.xlu0 %v7523_v41, %s6941_s26 }
 0xc82   : > { %6398 = vrot.lane.b32.xlu0 %v7537_v56, %s6941_s26 }
 0xcdd   : > { %v2227_v21 = vpop.xlane.xlu0 %2226 }
 0xcde   : > { %v2228_v24 = vmax.f32 %v7955_v19, %v2227_v21 }
 0xce0   : > { %2377 = vst.msk [vmem:[#allocation3 + $0x20] sm:$0xff] %vm1100_vm8, %v2228_v24  ;;  %vm2229_vm13 = vcmp.eq.f32.partialorder %v2228_v24, -inf }
 0xce1   : > { %v7959_v30 = vpop.permute.xlu0 %6333  ;;  %v7961_v32 = vsel %vm2229_vm13, 0.0, %v2228_v24 }
 0xce2   : > { %2236 = vperm.xlu1 %6081, %v7961_v32  }
 0xce5   : > { %v7966_v44 = vpop.permute.xlu0 %6368 }
 0xce6   : > { %6323 = vrot.lane.b32.xlu1 %v7551_v8, %s6940_s29 }
 0xce9   : > { %v7970_v48 = vpop.permute.xlu0 %2380 }
 0xcea   : > { %6328 = vrot.lane.b32.xlu1 %v7565_v22, %s6940_s29 }
 0xced   : > { %v6379_v28 = vpop.permute.xlu0 %6378 }
 0xcee   : > { %v6381_v14 = vunpack.i.h.bf16 %v6379_v28  ;;  %v6380_v49 = vunpack.i.l.bf16 %v6379_v28  ;;  %6338 = vrot.lane.b32.xlu1 %v7479_v1, %s6941_s26 }
 0xcf0   : > { %v5678_v51 = vpack.c.bf16 %v6381_v14, %v6380_v49 }
 0xcf1   : > { %v6384_v35 = vpop.permute.xlu0 %6383 }
 0xcf2   : > { %v6386_v52 = vunpack.i.h.bf16 %v6384_v35  ;;  %v6385_v58 = vunpack.i.l.bf16 %v6384_v35  ;;  %6343 = vrot.lane.b32.xlu1 %v7493_v13, %s6941_s26  ;;  %5679 = vmatpush3.bf16.msra.mxu0 %v5678_v51 }
 0xcf3   : > { %5680 = vmatprep.subr.bf16.mxu0 %v6934_v47 }
 0xcf4   : > { %v5681_v59 = vpack.c.bf16 %v6386_v52, %v6385_v58 }
 0xcf5   : > { %v6389_v2 = vpop.permute.xlu0 %6388 }
 0xcf6   : > { %v6391_v4 = vunpack.i.h.bf16 %v6389_v2  ;;  %v6390_v6 = vunpack.i.l.bf16 %v6389_v2  ;;  %6348 = vrot.lane.b32.xlu1 %v7507_v25, %s6941_s26  ;;  %5682 = vmatpush3.bf16.msra.mxu0 %v5681_v59 }
 0xcf7   : > { %5683 = vmatprep.subr.bf16.mxu0 %v6934_v47 }
 0xcf8   : > { %v5684_v9 = vpack.c.bf16 %v6391_v4, %v6390_v6 }
 0xcf9   : > { %v6394_v10 = vpop.permute.xlu0 %6393 }
 0xcfa   : > { %v6396_v11 = vunpack.i.h.bf16 %v6394_v10  ;;  %v6395_v21 = vunpack.i.l.bf16 %v6394_v10  ;;  %6353 = vrot.lane.b32.xlu1 %v7521_v37, %s6941_s26  ;;  %5685 = vmatpush3.bf16.msra.mxu0 %v5684_v9 }
 0xcfb   : > { %5686 = vmatprep.subr.bf16.mxu0 %v6934_v47 }
 0xcfc   : > { %v5687_v24 = vpack.c.bf16 %v6396_v11, %v6395_v21  ;;  %v6336_v21 = vunpack.i.h.bf16 %v7959_v30 }
 0xcfd   : > { %v6399_v28 = vpop.permute.xlu0 %6398 }
 0xcfe   : > { %v6401_v14 = vunpack.i.h.bf16 %v6399_v28  ;;  %v6400_v49 = vunpack.i.l.bf16 %v6399_v28  ;;  %6358 = vrot.lane.b32.xlu1 %v7535_v50, %s6941_s26  ;;  %5688 = vmatpush3.bf16.msra.mxu0 %v5687_v24  ;;  %v6335_v24 = vunpack.i.l.bf16 %v7959_v30 }
 0xcff   : > { %5689 = vmatprep.subr.bf16.mxu0 %v6934_v47 }
 0xd00   : > { %v5690_v51 = vpack.c.bf16 %v6401_v14, %v6400_v49 }
 0xd02   : > { %6363 = vrot.lane.b32.xlu1 %v7549_v3, %s6941_s26  ;;  %5691 = vmatpush3.bf16.msra.mxu0 %v5690_v51 }
 0xd03   : > { %5692 = vmatprep.subr.bf16.mxu0 %v6934_v47 }
 0xd06   : > { %6373 = vrot.lane.b32.xlu1 %v7581_v33, %s6941_s26 }
 0xd61   : > { %v2237_v35 = vpop.permute.xlu1 %2236 }
 0xd62   : > { %v2239_v52 = vsub.f32 %v7934_v60, %v2237_v35  ;;  %v5643_v60 = vpack.c.bf16 %v6336_v21, %v6335_v24 }
 0xd64   : > { %v2240_v59 = vmul.f32 1.442695, %v2239_v52 }
 0xd65   : > { %v6324_v58 = vpop.permute.xlu1 %6323 }
 0xd66   : > { %v6326_v2 = vunpack.i.h.bf16 %v6324_v58  ;;  %v6325_v4 = vunpack.i.l.bf16 %v6324_v58  ;;  %6585 = vpow2.f32 %v2240_v59 }
 0xd68   : > { %v5637_v6 = vpack.c.bf16 %v6326_v2, %v6325_v4 }
 0xd69   : > { %v6329_v9 = vpop.permute.xlu1 %6328 }
 0xd6a   : > { %v6331_v10 = vunpack.i.h.bf16 %v6329_v9  ;;  %v6330_v11 = vunpack.i.l.bf16 %v6329_v9  ;;  %5638 = vmatpush3.bf16.msra.mxu1 %v5637_v6 }
 0xd6b   : > { %5639 = vmatprep.subr.bf16.mxu1 %v6934_v47 }
 0xd6c   : > { %v5640_v28 = vpack.c.bf16 %v6331_v10, %v6330_v11 }
 0xd6d   : > { %v6339_v14 = vpop.permute.xlu1 %6338 }
 0xd6e   : > { %5641 = vmatpush3.bf16.msra.mxu1 %v5640_v28  ;;  %v6341_v51 = vunpack.i.h.bf16 %v6339_v14  ;;  %v6340_v35 = vunpack.i.l.bf16 %v6339_v14 }
 0xd6f   : > { %5642 = vmatprep.subr.bf16.mxu1 %v6934_v47 }
 0xd70   : > { %v7999_v49 = vpop.eup %6585  ;;  %v5646_v52 = vpack.c.bf16 %v6341_v51, %v6340_v35 }
 0xd71   : > { %v6344_v30 = vpop.permute.xlu1 %6343 }
 0xd72   : > { %5644 = vmatpush3.bf16.msra.mxu1 %v5643_v60  ;;  %v6346_v58 = vunpack.i.h.bf16 %v6344_v30  ;;  %v6345_v59 = vunpack.i.l.bf16 %v6344_v30 }
 0xd73   : > { %5645 = vmatprep.subr.bf16.mxu1 %v6934_v47 }
 0xd74   : > { %v5650_v2 = vpack.c.bf16 %v6346_v58, %v6345_v59 }
 0xd75   : > { %5041 = vmatmul.mubr.f32.vlgmr.msra.gmra.mrb[8].mxu1 %v7999_v49  ;;  %v6349_v4 = vpop.permute.xlu1 %6348 }
 0xd76   : > { %5075 = vmatprep.mubr.msk.f32.mxu1 %vm6935_vm3, %v6933_v53  ;;  %v6351_v6 = vunpack.i.h.bf16 %v6349_v4  ;;  %v6350_v9 = vunpack.i.l.bf16 %v6349_v4  ;;  %v6370_v4 = vunpack.i.l.bf16 %v7966_v44 }
 0xd78   : > { %v5654_v10 = vpack.c.bf16 %v6351_v6, %v6350_v9 }
 0xd79   : > { %v6354_v11 = vpop.permute.xlu1 %6353 }
 0xd7a   : > { %v6356_v21 = vunpack.i.h.bf16 %v6354_v11  ;;  %v6355_v24 = vunpack.i.l.bf16 %v6354_v11 }
 0xd7b   : > { %5648 = vmatpush3.bf16.xpose.msk.msra.mxu1 %vm7475_vm5, %v5646_v52 }
 0xd7c   : > { %5649 = vmatprep.subr.bf16.mxu1 %v6934_v47  ;;  %v5658_v28 = vpack.c.bf16 %v6356_v21, %v6355_v24 }
 0xd7d   : > { %v6359_v60 = vpop.permute.xlu1 %6358 }
 0xd7e   : > { %v6361_v14 = vunpack.i.h.bf16 %v6359_v60  ;;  %v6360_v51 = vunpack.i.l.bf16 %v6359_v60 }
 0xd80   : > { %v5662_v35 = vpack.c.bf16 %v6361_v14, %v6360_v51 }
 0xd81   : > { %v6364_v52 = vpop.permute.xlu1 %6363 }
 0xd82   : > { %v6366_v30 = vunpack.i.h.bf16 %v6364_v52  ;;  %v6365_v58 = vunpack.i.l.bf16 %v6364_v52 }
 0xd83   : > { %5652 = vmatpush3.bf16.xpose.msk.msra.mxu1 %vm7475_vm5, %v5650_v2  ;;  %v6371_v2 = vunpack.i.h.bf16 %v7966_v44 }
 0xd84   : > { %5653 = vmatprep.subr.bf16.mxu1 %v6934_v47  ;;  %v5666_v59 = vpack.c.bf16 %v6366_v30, %v6365_v58 }
 0xd85   : > { %v5670_v6 = vpack.c.bf16 %v6371_v2, %v6370_v4  ;;  %v6374_v9 = vpop.permute.xlu1 %6373 }
 0xd86   : > { %v6375_v11 = vunpack.i.l.bf16 %v6374_v9 }
 0xd8b   : > { %5656 = vmatpush3.bf16.xpose.msk.msra.mxu1 %vm7475_vm5, %v5654_v10  ;;  %v6376_v10 = vunpack.i.h.bf16 %v6374_v9 }
 0xd8c   : > { %5657 = vmatprep.subr.bf16.mxu1 %v6934_v47 }
 0xd8d   : > { %v5674_v21 = vpack.c.bf16 %v6376_v10, %v6375_v11 }
 0xd93   : > { %5660 = vmatpush3.bf16.xpose.msk.msra.mxu1 %vm7475_vm5, %v5658_v28 }
 0xd94   : > { %5661 = vmatprep.subr.bf16.mxu1 %v6934_v47 }
 0xd9b   : > { %5664 = vmatpush3.bf16.xpose.msk.msra.mxu1 %vm7475_vm5, %v5662_v35 }
 0xd9c   : > { %5665 = vmatprep.subr.bf16.mxu1 %v6934_v47 }
 0xda3   : > { %5668 = vmatpush3.bf16.xpose.msk.msra.mxu1 %vm7475_vm5, %v5666_v59 }
 0xda4   : > { %5669 = vmatprep.subr.bf16.mxu1 %v6934_v47 }
 0xdab   : > { %5672 = vmatpush3.bf16.xpose.msk.msra.mxu1 %vm7475_vm5, %v5670_v6 }
 0xdac   : > { %5673 = vmatprep.subr.bf16.mxu1 %v6934_v47 }
 0xdb3   : > { %5676 = vmatpush3.bf16.xpose.msk.msra.mxu1 %vm7475_vm5, %v5674_v21 }
 0xdb4   : > { %5733 = vmatprep.subr.bf16.mxu1 %v6934_v47 }
 0xdba   : > { %5076 = vmatmul.mubr.msk.f32.vlgmr.msra.gmra.mrb[10].mxu1 %vm952_vm4, %v7970_v48  ;;  %v8057_v48 = vld [vmem:[#allocation3 + $0x28] sm:$0xff] }
 0xdbb   : > { %5180 = vmatprep.mubr.msk.f32.mxu1 %vm6935_vm3, %v6933_v53 }
 0xe48   : > { %v8034_v44 = vpop.f32.mrb[8].mxu1 }
 0xe49   : > { %v5042_v24 = vpop.f32.mrb[9].mxu1 }
 0xe8d   : > { %v2514_v28 = vpop.f32.mrb[10].mxu1 }
 0xe8e   : > { %v8038_v60 = vsel %vm7623_vm7, %v2514_v28, -inf  ;;  %v5077_v14 = vpop.f32.mrb[11].mxu1 }
 0xe8f   : > { %2521 = vmax.xlane.f32.xlu1 %v8038_v60 }
 0xea0   : > { %6418 = vrot.lane.b32.xlu1 %v7479_v1, %s6942_s18 }
 0xea4   : > { %6448 = vrot.lane.b32.xlu1 %v7563_v18, %s6942_s18 }
 0xea8   : > { %2675 = vrot.lane.b32.xlu1 %v7941_v26, %s6942_s18 }
 0xeac   : > { %6458 = vrot.lane.b32.xlu1 %v7481_v5, %s6942_s18 }
 0xeb0   : > { %6463 = vrot.lane.b32.xlu1 %v7495_v17, %s6942_s18 }
 0xeb4   : > { %6468 = vrot.lane.b32.xlu1 %v7509_v29, %s6942_s18 }
 0xeb8   : > { %6473 = vrot.lane.b32.xlu1 %v7523_v41, %s6942_s18 }
 0xebc   : > { %6478 = vrot.lane.b32.xlu1 %v7537_v56, %s6942_s18 }
 0xf1c   : > { %v2522_v51 = vpop.xlane.xlu1 %2521 }
 0xf1d   : > { %v2523_v35 = vmax.f32 %v8057_v48, %v2522_v51 }
 0xf1f   : > { %2672 = vst.msk [vmem:[#allocation3 + $0x28] sm:$0xff] %vm1100_vm8, %v2523_v35  ;;  %vm2524_vm14 = vcmp.eq.f32.partialorder %v2523_v35, -inf }
 0xf20   : > { %v8061_v52 = vpop.permute.xlu1 %6418  ;;  %v8063_v30 = vsel %vm2524_vm14, 0.0, %v2523_v35 }
 0xf21   : > { %2531 = vperm.xlu0 %6055, %v8063_v30  }
 0xf24   : > { %v8068_v59 = vpop.permute.xlu1 %6448 }
 0xf25   : > { %6403 = vrot.lane.b32.xlu0 %v7551_v8, %s6941_s26 }
 0xf28   : > { %v8072_v2 = vpop.permute.xlu1 %2675 }
 0xf29   : > { %6408 = vrot.lane.b32.xlu0 %v7565_v22, %s6941_s26 }
 0xf2c   : > { %v6459_v4 = vpop.permute.xlu1 %6458 }
 0xf2d   : > { %v6461_v6 = vunpack.i.h.bf16 %v6459_v4  ;;  %v6460_v9 = vunpack.i.l.bf16 %v6459_v4  ;;  %6413 = vrot.lane.b32.xlu0 %v7583_v36, %s6941_s26 }
 0xf2f   : > { %v5734_v10 = vpack.c.bf16 %v6461_v6, %v6460_v9 }
 0xf30   : > { %v6464_v11 = vpop.permute.xlu1 %6463 }
 0xf31   : > { %v6466_v21 = vunpack.i.h.bf16 %v6464_v11  ;;  %v6465_v24 = vunpack.i.l.bf16 %v6464_v11  ;;  %6423 = vrot.lane.b32.xlu0 %v7493_v13, %s6942_s18  ;;  %5735 = vmatpush3.bf16.msra.mxu1 %v5734_v10 }
 0xf32   : > { %5736 = vmatprep.subr.bf16.mxu1 %v6934_v47 }
 0xf33   : > { %v5737_v28 = vpack.c.bf16 %v6466_v21, %v6465_v24 }
 0xf34   : > { %v6469_v14 = vpop.permute.xlu1 %6468 }
 0xf35   : > { %v6471_v51 = vunpack.i.h.bf16 %v6469_v14  ;;  %v6470_v35 = vunpack.i.l.bf16 %v6469_v14  ;;  %6428 = vrot.lane.b32.xlu0 %v7507_v25, %s6942_s18  ;;  %5738 = vmatpush3.bf16.msra.mxu1 %v5737_v28 }
 0xf36   : > { %5739 = vmatprep.subr.bf16.mxu1 %v6934_v47 }
 0xf37   : > { %v5740_v4 = vpack.c.bf16 %v6471_v51, %v6470_v35 }
 0xf38   : > { %v6474_v6 = vpop.permute.xlu1 %6473 }
 0xf39   : > { %v6476_v9 = vunpack.i.h.bf16 %v6474_v6  ;;  %v6475_v11 = vunpack.i.l.bf16 %v6474_v6  ;;  %6433 = vrot.lane.b32.xlu0 %v7521_v37, %s6942_s18  ;;  %5741 = vmatpush3.bf16.msra.mxu1 %v5740_v4 }
 0xf3a   : > { %5742 = vmatprep.subr.bf16.mxu1 %v6934_v47 }
 0xf3b   : > { %v5743_v10 = vpack.c.bf16 %v6476_v9, %v6475_v11 }
 0xf3c   : > { %v6479_v21 = vpop.permute.xlu1 %6478 }
 0xf3d   : > { %v6481_v24 = vunpack.i.h.bf16 %v6479_v21  ;;  %v6480_v14 = vunpack.i.l.bf16 %v6479_v21  ;;  %6438 = vrot.lane.b32.xlu0 %v7535_v50, %s6942_s18  ;;  %5744 = vmatpush3.bf16.msra.mxu1 %v5743_v10 }
 0xf3e   : > { %5745 = vmatprep.subr.bf16.mxu1 %v6934_v47 }
 0xf3f   : > { %v5746_v28 = vpack.c.bf16 %v6481_v24, %v6480_v14 }
 0xf41   : > { %6443 = vrot.lane.b32.xlu0 %v7549_v3, %s6942_s18  ;;  %5747 = vmatpush3.bf16.msra.mxu1 %v5746_v28 }
 0xf42   : > { %5748 = vmatprep.subr.bf16.mxu1 %v6934_v47 }
 0xf45   : > { %6453 = vrot.lane.b32.xlu0 %v7581_v33, %s6942_s18 }
 0xfa0   : > { %v2532_v51 = vpop.permute.xlu0 %2531 }
 0xfa1   : > { %v2534_v35 = vsub.f32 %v8038_v60, %v2532_v51 }
 0xfa3   : > { %v2535_v6 = vmul.f32 1.442695, %v2534_v35  ;;  %v6421_v35 = vunpack.i.h.bf16 %v8061_v52 }
 0xfa4   : > { %v6404_v4 = vpop.permute.xlu0 %6403 }
 0xfa5   : > { %v6406_v9 = vunpack.i.h.bf16 %v6404_v4  ;;  %v6405_v11 = vunpack.i.l.bf16 %v6404_v4  ;;  %6587 = vpow2.f32 %v2535_v6  ;;  %v6420_v4 = vunpack.i.l.bf16 %v8061_v52 }
 0xfa7   : > { %v5693_v10 = vpack.c.bf16 %v6406_v9, %v6405_v11  ;;  %v5702_v6 = vpack.c.bf16 %v6421_v35, %v6420_v4 }
 0xfa8   : > { %v6409_v21 = vpop.permute.xlu0 %6408 }
 0xfa9   : > { %v6411_v24 = vunpack.i.h.bf16 %v6409_v21  ;;  %v6410_v14 = vunpack.i.l.bf16 %v6409_v21  ;;  %5694 = vmatpush3.bf16.msra.mxu0 %v5693_v10 }
 0xfaa   : > { %5695 = vmatprep.subr.bf16.mxu0 %v6934_v47 }
 0xfab   : > { %v5696_v28 = vpack.c.bf16 %v6411_v24, %v6410_v14 }
 0xfac   : > { %v6414_v34 = vpop.permute.xlu0 %6413 }
 0xfad   : > { %v6416_v58 = vunpack.i.h.bf16 %v6414_v34  ;;  %v6415_v16 = vunpack.i.l.bf16 %v6414_v34  ;;  %5697 = vmatpush3.bf16.msra.mxu0 %v5696_v28 }
 0xfae   : > { %5698 = vmatprep.subr.bf16.mxu0 %v6934_v47 }
 0xfaf   : > { %v5699_v60 = vpack.c.bf16 %v6416_v58, %v6415_v16  ;;  %v8099_v51 = vpop.eup %6587 }
 0xfb0   : > { %v6424_v34 = vpop.permute.xlu0 %6423 }
 0xfb1   : > { %5700 = vmatpush3.bf16.msra.mxu0 %v5699_v60  ;;  %v6426_v16 = vunpack.i.h.bf16 %v6424_v34  ;;  %v6425_v58 = vunpack.i.l.bf16 %v6424_v34 }
 0xfb2   : > { %5701 = vmatprep.subr.bf16.mxu0 %v6934_v47 }
 0xfb3   : > { %v5706_v9 = vpack.c.bf16 %v6426_v16, %v6425_v58 }
 0xfb4   : > { %5111 = vmatmul.mubr.f32.vlgmr.msra.gmra.mrb[42].mxu0 %v8099_v51  ;;  %v6429_v11 = vpop.permute.xlu0 %6428 }
 0xfb5   : > { %5145 = vmatprep.mubr.msk.f32.mxu0 %vm6935_vm3, %v6933_v53  ;;  %v6431_v52 = vunpack.i.h.bf16 %v6429_v11  ;;  %v6430_v10 = vunpack.i.l.bf16 %v6429_v11 }
 0xfb7   : > { %v5710_v21 = vpack.c.bf16 %v6431_v52, %v6430_v10  ;;  %v6451_v52 = vunpack.i.h.bf16 %v8068_v59  ;;  %v6450_v10 = vunpack.i.l.bf16 %v8068_v59 }
 0xfb8   : > { %v6434_v24 = vpop.permute.xlu0 %6433 }
 0xfb9   : > { %v6436_v14 = vunpack.i.h.bf16 %v6434_v24  ;;  %v6435_v28 = vunpack.i.l.bf16 %v6434_v24 }
 0xfba   : > { %5704 = vmatpush3.bf16.xpose.msk.msra.mxu0 %vm7475_vm5, %v5702_v6 }
 0xfbb   : > { %5705 = vmatprep.subr.bf16.mxu0 %v6934_v47  ;;  %v5714_v60 = vpack.c.bf16 %v6436_v14, %v6435_v28 }
 0xfbc   : > { %v6439_v35 = vpop.permute.xlu0 %6438 }
 0xfbd   : > { %v6441_v4 = vunpack.i.h.bf16 %v6439_v35  ;;  %v6440_v6 = vunpack.i.l.bf16 %v6439_v35 }
 0xfbf   : > { %v5718_v34 = vpack.c.bf16 %v6441_v4, %v6440_v6 }
 0xfc0   : > { %v6444_v16 = vpop.permute.xlu0 %6443 }
 0xfc1   : > { %v6446_v58 = vunpack.i.h.bf16 %v6444_v16 }
 0xfc2   : > { %5708 = vmatpush3.bf16.xpose.msk.msra.mxu0 %vm7475_vm5, %v5706_v9  ;;  %v6445_v9 = vunpack.i.l.bf16 %v6444_v16 }
 0xfc3   : > { %5709 = vmatprep.subr.bf16.mxu0 %v6934_v47 }
 0xfc4   : > { %v5722_v11 = vpack.c.bf16 %v6446_v58, %v6445_v9  ;;  %v6454_v24 = vpop.permute.xlu0 %6453 }
 0xfc5   : > { %v6456_v14 = vunpack.i.h.bf16 %v6454_v24  ;;  %v6455_v28 = vunpack.i.l.bf16 %v6454_v24 }
 0xfca   : > { %5712 = vmatpush3.bf16.xpose.msk.msra.mxu0 %vm7475_vm5, %v5710_v21  ;;  %v5726_v21 = vpack.c.bf16 %v6451_v52, %v6450_v10 }
 0xfcb   : > { %5713 = vmatprep.subr.bf16.mxu0 %v6934_v47 }
 0xfd2   : > { %5716 = vmatpush3.bf16.xpose.msk.msra.mxu0 %vm7475_vm5, %v5714_v60  ;;  %v5730_v60 = vpack.c.bf16 %v6456_v14, %v6455_v28 }
 0xfd3   : > { %5717 = vmatprep.subr.bf16.mxu0 %v6934_v47 }
 0xfda   : > { %5720 = vmatpush3.bf16.xpose.msk.msra.mxu0 %vm7475_vm5, %v5718_v34 }
 0xfdb   : > { %5721 = vmatprep.subr.bf16.mxu0 %v6934_v47 }
 0xfe2   : > { %5724 = vmatpush3.bf16.xpose.msk.msra.mxu0 %vm7475_vm5, %v5722_v11 }
 0xfe3   : > { %5725 = vmatprep.subr.bf16.mxu0 %v6934_v47 }
 0xfea   : > { %5728 = vmatpush3.bf16.xpose.msk.msra.mxu0 %vm7475_vm5, %v5726_v21 }
 0xfeb   : > { %5729 = vmatprep.subr.bf16.mxu0 %v6934_v47 }
 0xff2   : > { %5732 = vmatpush3.bf16.xpose.msk.msra.mxu0 %vm7475_vm5, %v5730_v60 }
 0xff3   : > { %5789 = vmatprep.subr.bf16.mxu0 %v6934_v47 }
 0xff9   : > { %5146 = vmatmul.mubr.msk.f32.vlgmr.msra.gmra.mrb[44].mxu0 %vm952_vm4, %v8072_v2  ;;  %v8146_v2 = vld [vmem:[#allocation3 + $0x30] sm:$0xff] }
 0xffa   : > { %5250 = vmatprep.mubr.msk.f32.mxu0 %vm6935_vm3, %v6933_v53 }
0x1087   : > { %v8136_v59 = vpop.f32.mrb[42].mxu0 }
0x1088   : > { %v5112_v35 = vpop.f32.mrb[43].mxu0 }
0x10cc   : > { %v2809_v4 = vpop.f32.mrb[44].mxu0 }
0x10cd   : > { %v5147_v6 = vpop.f32.mrb[45].mxu0  ;;  %v2813_v34 = vsel %vm7623_vm7, %v2809_v4, -inf }
0x10ce   : > { %2816 = vmax.xlane.f32.xlu0 %v2813_v34 }
0x10e4   : > { %6493 = vrot.lane.b32.xlu0 %v7583_v36, %s6942_s18 }
0x10e8   : > { %6528 = vrot.lane.b32.xlu0 %v7563_v18, %s6943_s25 }
0x10ec   : > { %2970 = vrot.lane.b32.xlu0 %v7941_v26, %s6943_s25 }
0x115b   : > { %v2817_v16 = vpop.xlane.xlu0 %2816 }
0x115c   : > { %v2818_v58 = vmax.f32 %v8146_v2, %v2817_v16 }
0x115e   : > { %2967 = vst.msk [vmem:[#allocation3 + $0x30] sm:$0xff] %vm1100_vm8, %v2818_v58  ;;  %vm2819_vm15 = vcmp.eq.f32.partialorder %v2818_v58, -inf }
0x115f   : > { %v8150_v9 = vsel %vm2819_vm15, 0.0, %v2818_v58 }
0x1160   : > { %2826 = vperm.xlu1 %6081, %v8150_v9   ;;  %v2821_v11 = vsub.f32 %v8146_v2, %v8150_v9 }
0x1164   : > { %6483 = vrot.lane.b32.xlu1 %v7551_v8, %s6942_s18 }
0x1168   : > { %6488 = vrot.lane.b32.xlu1 %v7565_v22, %s6942_s18 }
0x116c   : > { %6498 = vrot.lane.b32.xlu1 %v7479_v1, %s6943_s25  ;;  %v1331_v1 = vmul.f32 1.442695, %v1330_v46 }
0x116e   : > { %6589 = vpow2.f32 %v1331_v1 }
0x1170   : > { %6503 = vrot.lane.b32.xlu1 %v7493_v13, %s6943_s25 }
0x1174   : > { %6508 = vrot.lane.b32.xlu1 %v7507_v25, %s6943_s25 }
0x1178   : > { %6513 = vrot.lane.b32.xlu1 %v7521_v37, %s6943_s25  ;;  %v8178_v13 = vpop.eup %6589 }
0x117c   : > { %6518 = vrot.lane.b32.xlu1 %v7535_v50, %s6943_s25 }
0x1180   : > { %6523 = vrot.lane.b32.xlu1 %v7549_v3, %s6943_s25 }
0x1184   : > { %6533 = vrot.lane.b32.xlu1 %v7581_v33, %s6943_s25 }
0x11a8   : > { %1097 = vadd.xlane.f32.xlu1 %v7682_v61 }
0x11ac   : > { %1344 = vadd.xlane.f32.xlu1 %v7710_v54  ;;  %v6494_v54 = vpop.permute.xlu0 %6493 }
0x11ad   : > { %v6496_v46 = vunpack.i.h.bf16 %v6494_v54  ;;  %v6495_v52 = vunpack.i.l.bf16 %v6494_v54 }
0x11bd   : > { %1486 = vperm.xlu1 %6081, %v8178_v13  }
0x11c1   : > { %6543 = vrot.lane.b32.xlu1 %v7495_v17, %s6943_s25  ;;  %v5755_v17 = vpack.c.bf16 %v6496_v46, %v6495_v52  ;;  %v6529_v52 = vpop.permute.xlu0 %6528 }
0x11df   : > { %v2827_v25 = vpop.permute.xlu1 %2826 }
0x11e0   : > { %v2829_v37 = vsub.f32 %v2813_v34, %v2827_v25 }
0x11e2   : > { %v2830_v3 = vmul.f32 1.442695, %v2829_v37 }
0x11e3   : > { %v6484_v50 = vpop.permute.xlu1 %6483 }
0x11e4   : > { %v6486_v18 = vunpack.i.h.bf16 %v6484_v50  ;;  %v6485_v33 = vunpack.i.l.bf16 %v6484_v50  ;;  %6591 = vpow2.f32 %v2830_v3 }
0x11e6   : > { %v5749_v61 = vpack.c.bf16 %v6486_v18, %v6485_v33 }
0x11e7   : > { %v6489_v26 = vpop.permute.xlu1 %6488 }
0x11e8   : > { %v6491_v42 = vunpack.i.h.bf16 %v6489_v26  ;;  %v6490_v45 = vunpack.i.l.bf16 %v6489_v26  ;;  %5750 = vmatpush3.bf16.msra.mxu1 %v5749_v61 }
0x11e9   : > { %5751 = vmatprep.subr.bf16.mxu1 %v6934_v47 }
0x11ea   : > { %v5752_v10 = vpack.c.bf16 %v6491_v42, %v6490_v45 }
0x11eb   : > { %v6499_v21 = vpop.permute.xlu1 %6498 }
0x11ec   : > { %5753 = vmatpush3.bf16.msra.mxu1 %v5752_v10  ;;  %v6501_v14 = vunpack.i.h.bf16 %v6499_v21  ;;  %v6500_v28 = vunpack.i.l.bf16 %v6499_v21  ;;  %v1085_v10 = vmul.f32 1.442695, %v1084_v40  ;;  %v6530_v21 = vunpack.i.l.bf16 %v6529_v52  ;;  %v2971_v40 = vpop.permute.xlu0 %2970 }
0x11ed   : > { %5754 = vmatprep.subr.bf16.mxu1 %v6934_v47 }
0x11ee   : > { %v8186_v24 = vpop.eup %6591  ;;  %v5758_v60 = vpack.c.bf16 %v6501_v14, %v6500_v28  ;;  %6593 = vpow2.f32 %v1085_v10 }
0x11ef   : > { %v6504_v35 = vpop.permute.xlu1 %6503 }
0x11f0   : > { %5756 = vmatpush3.bf16.msra.mxu1 %v5755_v17  ;;  %v6506_v4 = vunpack.i.h.bf16 %v6504_v35  ;;  %v6505_v6 = vunpack.i.l.bf16 %v6504_v35  ;;  %v6531_v17 = vunpack.i.h.bf16 %v6529_v52 }
0x11f1   : > { %5757 = vmatprep.subr.bf16.mxu1 %v6934_v47 }
0x11f2   : > { %v5762_v34 = vpack.c.bf16 %v6506_v4, %v6505_v6  ;;  %v5782_v14 = vpack.c.bf16 %v6531_v17, %v6530_v21 }
0x11f3   : > { %5181 = vmatmul.mubr.f32.vlgmr.msra.gmra.mrb[12].mxu1 %v8186_v24  ;;  %v6509_v16 = vpop.permute.xlu1 %6508 }
0x11f4   : > { %5215 = vmatprep.mubr.msk.f32.mxu1 %vm6935_vm3, %v6933_v53  ;;  %v6511_v58 = vunpack.i.h.bf16 %v6509_v16  ;;  %v6510_v1 = vunpack.i.l.bf16 %v6509_v16  ;;  %v1342_v16 = vld [vmem:[#allocation4 + $0x8] sm:$0xff] }
0x11f6   : > { %v5766_v25 = vpack.c.bf16 %v6511_v58, %v6510_v1  ;;  %v1343_v1 = vmul.f32 %v8178_v13, %v1342_v16  ;;  %v2833_v16 = vld [vmem:[#allocation4 + $0x30] sm:$0xff] }
0x11f7   : > { %v6514_v53 = vpop.permute.xlu1 %6513 }
0x11f8   : > { %v6516_v37 = vunpack.i.h.bf16 %v6514_v53  ;;  %v6515_v50 = vunpack.i.l.bf16 %v6514_v53  ;;  %v6594_v6 = vpop.eup %6593 }
0x11f9   : > { %5760 = vmatpush3.bf16.xpose.msk.msra.mxu1 %vm7475_vm5, %v5758_v60 }
0x11fa   : > { %5761 = vmatprep.subr.bf16.mxu1 %v6934_v47  ;;  %v5770_v3 = vpack.c.bf16 %v6516_v37, %v6515_v50  ;;  %v1483_v37 = vld [vmem:[#allocation5 + $0x8] sm:$0xff] }
0x11fb   : > { %v6519_v18 = vpop.permute.xlu1 %6518 }
0x11fc   : > { %v6521_v33 = vunpack.i.h.bf16 %v6519_v18  ;;  %v6520_v61 = vunpack.i.l.bf16 %v6519_v18 }
0x11fe   : > { %v5774_v54 = vpack.c.bf16 %v6521_v33, %v6520_v61 }
0x11ff   : > { %v6524_v26 = vpop.permute.xlu1 %6523 }
0x1200   : > { %v6526_v42 = vunpack.i.h.bf16 %v6524_v26  ;;  %v6525_v45 = vunpack.i.l.bf16 %v6524_v26 }
0x1201   : > { %5764 = vmatpush3.bf16.xpose.msk.msra.mxu1 %vm7475_vm5, %v5762_v34  ;;  %v1095_v34 = vld [vmem:[#allocation4] sm:$0xff] }
0x1202   : > { %5765 = vmatprep.subr.bf16.mxu1 %v6934_v47  ;;  %v5778_v46 = vpack.c.bf16 %v6526_v42, %v6525_v45  ;;  %v1096_v55 = vmul.f32 %v6594_v6, %v1095_v34  ;;  %v1948_v34 = vld [vmem:[#allocation4 + $0x18] sm:$0xff] }
0x1203   : > { %v6534_v28 = vpop.permute.xlu1 %6533 }
0x1204   : > { %v6536_v60 = vunpack.i.h.bf16 %v6534_v28  ;;  %v6535_v35 = vunpack.i.l.bf16 %v6534_v28 }
0x1206   : > { %v5786_v4 = vpack.c.bf16 %v6536_v60, %v6535_v35 }
0x1209   : > { %5768 = vmatpush3.bf16.xpose.msk.msra.mxu1 %vm7475_vm5, %v5766_v25 }
0x120a   : > { %5769 = vmatprep.subr.bf16.mxu1 %v6934_v47 }
0x1211   : > { %5772 = vmatpush3.bf16.xpose.msk.msra.mxu1 %vm7475_vm5, %v5770_v3 }
0x1212   : > { %5773 = vmatprep.subr.bf16.mxu1 %v6934_v47 }
0x1219   : > { %5776 = vmatpush3.bf16.xpose.msk.msra.mxu1 %vm7475_vm5, %v5774_v54 }
0x121a   : > { %5777 = vmatprep.subr.bf16.mxu1 %v6934_v47 }
0x1221   : > { %5780 = vmatpush3.bf16.xpose.msk.msra.mxu1 %vm7475_vm5, %v5778_v46 }
0x1222   : > { %5781 = vmatprep.subr.bf16.mxu1 %v6934_v47 }
0x1229   : > { %5784 = vmatpush3.bf16.xpose.msk.msra.mxu1 %vm7475_vm5, %v5782_v14 }
0x122a   : > { %5785 = vmatprep.subr.bf16.mxu1 %v6934_v47 }
0x1231   : > { %5788 = vmatpush3.bf16.xpose.msk.msra.mxu1 %vm7475_vm5, %v5786_v4 }
0x1235   : > { %v1098_v39 = vpop.xlane.xlu1 %1097 }
0x1236   : > { %v1099_v58 = vadd.f32 %v1098_v39, %v1096_v55 }
0x1238   : > { %1101 = vst.msk [vmem:[#allocation4] sm:$0xff] %vm1100_vm8, %v1099_v58  ;;  %5216 = vmatmul.mubr.msk.f32.vlgmr.msra.gmra.mrb[14].mxu1 %vm952_vm4, %v2971_v40 }
0x1239   : > { %v1345_v25 = vpop.xlane.xlu1 %1344 }
0x123a   : > { %v1346_v53 = vadd.f32 %v1345_v25, %v1343_v1 }
0x123c   : > { %1347 = vst.msk [vmem:[#allocation4 + $0x8] sm:$0xff] %vm1100_vm8, %v1346_v53  ;;  %v1778_v53 = vld [vmem:[#allocation5 + $0x10] sm:$0xff] }
0x123d   : > { %v1487_v50 = vpop.permute.xlu1 %1486 }
0x123e   : > { %v1489_v0 = vmul.f32 %v1487_v50, %v1483_v37 }
0x1240   : > { %v1490_v3 = vadd.f32 %v1489_v0, %v7756_v23 }
0x1242   : > { %1491 = vst.msk [vmem:[#allocation5 + $0x8] sm:$0xff] %vm952_vm4, %v1490_v3  ;;  %v2073_v3 = vld [vmem:[#allocation5 + $0x18] sm:$0xff] }
0x12c6   : > { %v8223_v18 = vpop.f32.mrb[12].mxu1 }
0x12c7   : > { %v5182_v33 = vpop.f32.mrb[13].mxu1 }
0x130b   : > { %v3104_v61 = vpop.f32.mrb[14].mxu1 }
0x130c   : > { %v5217_v54 = vpop.f32.mrb[15].mxu1  ;;  %v8227_v26 = vsel %vm7623_vm7, %v3104_v61, -inf }
0x130d   : > { %3111 = vmax.xlane.f32.xlu0 %v8227_v26 }
0x1323   : > { %6538 = vrot.lane.b32.xlu0 %v7481_v5, %s6943_s25  ;;  %v1642_v5 = vmul.f32 1.442695, %v1641_v38 }
0x1325   : > { %6595 = vpow2.f32 %v1642_v5  ;;  %v2663_v5 = vld [vmem:[#allocation5 + $0x28] sm:$0xff] }
0x1327   : > { %6548 = vrot.lane.b32.xlu0 %v7509_v29, %s6943_s25  ;;  %v8506_v29 = vsub.f32 %v7853_v43, %v7857_v15  ;;  %v8260_v43 = vld [vmem:[#allocation3 + $0x38] sm:$0xff] }
0x1329   : > { %v1937_v27 = vmul.f32 1.442695, %v8506_v29 }
0x132b   : > { %6553 = vrot.lane.b32.xlu0 %v7523_v41, %s6943_s25  ;;  %6597 = vpow2.f32 %v1937_v27  ;;  %v8507_v41 = vsub.f32 %v8057_v48, %v8063_v30  ;;  %v6544_v48 = vpop.permute.xlu1 %6543 }
0x132c   : > { %v6545_v42 = vunpack.i.l.bf16 %v6544_v48 }
0x132f   : > { %6563 = vrot.lane.b32.xlu0 %v7551_v8, %s6943_s25  ;;  %v2527_v8 = vmul.f32 1.442695, %v8507_v41  ;;  %v8254_v23 = vpop.eup %6595 }
0x1331   : > { %6599 = vpow2.f32 %v2527_v8  ;;  %v2958_v8 = vld [vmem:[#allocation5 + $0x30] sm:$0xff] }
0x1333   : > { %6573 = vrot.lane.b32.xlu0 %v7583_v36, %s6943_s25  ;;  %v2822_v36 = vmul.f32 1.442695, %v2821_v11 }
0x1335   : > { %6601 = vpow2.f32 %v2822_v36  ;;  %v6598_v7 = vpop.eup %6597 }
0x1336   : > { %v1949_v55 = vmul.f32 %v6598_v7, %v1948_v34  ;;  %v2538_v34 = vld [vmem:[#allocation4 + $0x28] sm:$0xff] }
0x133b   : > { %v8257_v57 = vpop.eup %6599 }
0x133f   : > { %v6602_v38 = vpop.eup %6601 }
0x1352   : > { %1950 = vadd.xlane.f32.xlu0 %v7893_v62 }
0x1356   : > { %2835 = vadd.xlane.f32.xlu0 %v8186_v24  ;;  %v6546_v24 = vunpack.i.h.bf16 %v6544_v48 }
0x1358   : > { %v5793_v52 = vpack.c.bf16 %v6546_v24, %v6545_v42 }
0x136c   : > { %1175 = vperm.xlu0 %6055, %v6594_v6  }
0x1370   : > { %1781 = vperm.xlu0 %6055, %v8254_v23  }
0x1374   : > { %2076 = vperm.xlu0 %6055, %v6598_v7  }
0x1378   : > { %2666 = vperm.xlu0 %6055, %v8257_v57  }
0x137c   : > { %2961 = vperm.xlu0 %6055, %v6602_v38  }
0x139a   : > { %v3112_v15 = vpop.xlane.xlu0 %3111 }
0x139b   : > { %v3113_v62 = vmax.f32 %v8260_v43, %v3112_v15 }
0x139d   : > { %3262 = vst.msk [vmem:[#allocation3 + $0x38] sm:$0xff] %vm1100_vm8, %v3113_v62  ;;  %vm3114_vm0 = vcmp.eq.f32.partialorder %v3113_v62, -inf }
0x139e   : > { %v6539_v30 = vpop.permute.xlu0 %6538  ;;  %v8264_v2 = vsel %vm3114_vm0, 0.0, %v3113_v62 }
0x139f   : > { %v6541_v9 = vunpack.i.h.bf16 %v6539_v30  ;;  %v6540_v11 = vunpack.i.l.bf16 %v6539_v30  ;;  %3121 = vperm.xlu1 %6081, %v8264_v2   ;;  %v3116_v13 = vsub.f32 %v8260_v43, %v8264_v2 }
0x13a1   : > { %v5790_v45 = vpack.c.bf16 %v6541_v9, %v6540_v11 }
0x13a2   : > { %v6549_v46 = vpop.permute.xlu0 %6548 }
0x13a3   : > { %6558 = vrot.lane.b32.xlu1 %v7537_v56, %s6943_s25  ;;  %5791 = vmatpush3.bf16.msra.mxu0 %v5790_v45  ;;  %v6551_v10 = vunpack.i.h.bf16 %v6549_v46  ;;  %v6550_v17 = vunpack.i.l.bf16 %v6549_v46 }
0x13a4   : > { %5792 = vmatprep.subr.bf16.mxu0 %v6934_v47 }
0x13a5   : > { %v5796_v14 = vpack.c.bf16 %v6551_v10, %v6550_v17  ;;  %v3117_v10 = vmul.f32 1.442695, %v3116_v13  ;;  %v2368_v13 = vld [vmem:[#allocation5 + $0x20] sm:$0xff] }
0x13a6   : > { %v6554_v21 = vpop.permute.xlu0 %6553 }
0x13a7   : > { %6568 = vrot.lane.b32.xlu1 %v7565_v22, %s6943_s25  ;;  %5794 = vmatpush3.bf16.msra.mxu0 %v5793_v52  ;;  %v6556_v28 = vunpack.i.h.bf16 %v6554_v21  ;;  %v6555_v60 = vunpack.i.l.bf16 %v6554_v21  ;;  %v8508_v22 = vsub.f32 %v7955_v19, %v7961_v32  ;;  %v1172_v19 = vld [vmem:[#allocation5] sm:$0xff] }
0x13a8   : > { %5795 = vmatprep.subr.bf16.mxu0 %v6934_v47 }
0x13a9   : > { %v5799_v56 = vpack.c.bf16 %v6556_v28, %v6555_v60  ;;  %v2232_v35 = vmul.f32 1.442695, %v8508_v22 }
0x13aa   : > { %v6564_v4 = vpop.permute.xlu0 %6563 }
0x13ab   : > { %5797 = vmatpush3.bf16.msra.mxu0 %v5796_v14  ;;  %6603 = vpow2.f32 %v2232_v35  ;;  %v6566_v9 = vunpack.i.h.bf16 %v6564_v4  ;;  %v1653_v14 = vld [vmem:[#allocation4 + $0x10] sm:$0xff] }
0x13ac   : > { %5798 = vmatprep.subr.bf16.mxu0 %v6934_v47  ;;  %v1654_v28 = vmul.f32 %v8254_v23, %v1653_v14  ;;  %v2539_v23 = vmul.f32 %v8257_v57, %v2538_v34 }
0x13ae   : > { %v8282_v6 = vpop.permute.xlu0 %6573 }
0x13af   : > { %5800 = vmatpush3.bf16.msra.mxu0 %v5799_v56  ;;  %v6575_v46 = vunpack.i.l.bf16 %v8282_v6  ;;  %v2243_v56 = vld [vmem:[#allocation4 + $0x20] sm:$0xff] }
0x13b0   : > { %5801 = vmatprep.subr.bf16.mxu0 %v6934_v47 }
0x13b5   : > { %v8284_v39 = vpop.eup %6603 }
0x13b6   : > { %v2244_v35 = vmul.f32 %v8284_v39, %v2243_v56 }
0x13cb   : > { %1655 = vadd.xlane.f32.xlu1 %v7806_v12  ;;  %v2834_v12 = vmul.f32 %v6602_v38, %v2833_v16  ;;  %v3128_v16 = vld [vmem:[#allocation4 + $0x38] sm:$0xff] }
0x13cf   : > { %2245 = vadd.xlane.f32.xlu1 %v7999_v49 }
0x13df   : > { %v1951_v40 = vpop.xlane.xlu0 %1950 }
0x13e0   : > { %v1952_v58 = vadd.f32 %v1951_v40, %v1949_v55  ;;  %2371 = vperm.xlu1 %6081, %v8284_v39  }
0x13e2   : > { %1953 = vst.msk [vmem:[#allocation4 + $0x18] sm:$0xff] %vm1100_vm8, %v1952_v58 }
0x13e3   : > { %v2836_v49 = vpop.xlane.xlu0 %2835 }
0x13e4   : > { %v2837_v1 = vadd.f32 %v2836_v49, %v2834_v12  ;;  %v3253_v49 = vld [vmem:[#allocation5 + $0x38] sm:$0xff] }
0x13e6   : > { %2838 = vst.msk [vmem:[#allocation4 + $0x30] sm:$0xff] %vm1100_vm8, %v2837_v1 }
0x13eb   : > { %v1176_v32 = vpop.permute.xlu0 %1175 }
0x13ec   : > { %v1178_v25 = vmul.f32 %v1176_v32, %v1172_v19 }
0x13ee   : > { %v1179_v37 = vadd.f32 %v1178_v25, %v7754_v63 }
0x13ef   : > { %v1782_v50 = vpop.permute.xlu0 %1781 }
0x13f0   : > { %1180 = vst.msk [vmem:[#allocation5] sm:$0xff] %vm952_vm4, %v1179_v37  ;;  %v1784_v0 = vmul.f32 %v1782_v50, %v1778_v53 }
0x13f2   : > { %v1785_v33 = vadd.f32 %v1784_v0, %v7843_v31 }
0x13f3   : > { %v2077_v61 = vpop.permute.xlu0 %2076 }
0x13f4   : > { %1786 = vst.msk [vmem:[#allocation5 + $0x10] sm:$0xff] %vm952_vm4, %v1785_v33  ;;  %v2079_v54 = vmul.f32 %v2077_v61, %v2073_v3 }
0x13f6   : > { %v2080_v29 = vadd.f32 %v2079_v54, %v7930_v20 }
0x13f7   : > { %v2667_v27 = vpop.permute.xlu0 %2666 }
0x13f8   : > { %2081 = vst.msk [vmem:[#allocation5 + $0x18] sm:$0xff] %vm952_vm4, %v2080_v29  ;;  %v2669_v41 = vmul.f32 %v2667_v27, %v2663_v5 }
0x13fa   : > { %v2670_v63 = vadd.f32 %v2669_v41, %v8136_v59  ;;  %v6565_v59 = vunpack.i.l.bf16 %v6564_v4 }
0x13fb   : > { %v2962_v36 = vpop.permute.xlu0 %2961 }
0x13fc   : > { %2671 = vst.msk [vmem:[#allocation5 + $0x28] sm:$0xff] %vm952_vm4, %v2670_v63  ;;  %v2964_v7 = vmul.f32 %v2962_v36, %v2958_v8 }
0x13fe   : > { %v2965_v31 = vadd.f32 %v2964_v7, %v8223_v18  ;;  %v5805_v18 = vpack.c.bf16 %v6566_v9, %v6565_v59 }
0x1400   : > { %2966 = vst.msk [vmem:[#allocation5 + $0x30] sm:$0xff] %vm952_vm4, %v2965_v31 }
0x1404   : > { %2540 = vadd.xlane.f32.xlu1 %v8099_v51 }
0x141e   : > { %v3122_v38 = vpop.permute.xlu1 %3121 }
0x141f   : > { %v3124_v20 = vsub.f32 %v8227_v26, %v3122_v38  ;;  %v6576_v26 = vunpack.i.h.bf16 %v8282_v6 }
0x1421   : > { %v3125_v15 = vmul.f32 1.442695, %v3124_v20  ;;  %v5811_v17 = vpack.c.bf16 %v6576_v26, %v6575_v46 }
0x1422   : > { %v6559_v62 = vpop.permute.xlu1 %6558 }
0x1423   : > { %6605 = vpow2.f32 %v3125_v15  ;;  %v6561_v48 = vunpack.i.h.bf16 %v6559_v62  ;;  %v6560_v30 = vunpack.i.l.bf16 %v6559_v62 }
0x1424   : > { %6607 = vpow2.f32 %v3117_v10 }
0x1425   : > { %v5802_v11 = vpack.c.bf16 %v6561_v48, %v6560_v30 }
0x1426   : > { %v6569_v24 = vpop.permute.xlu1 %6568 }
0x1427   : > { %5803 = vmatpush3.bf16.msra.mxu0 %v5802_v11  ;;  %v6571_v42 = vunpack.i.h.bf16 %v6569_v24  ;;  %v6570_v45 = vunpack.i.l.bf16 %v6569_v24 }
0x1428   : > { %5804 = vmatprep.subr.bf16.mxu0 %v6934_v47 }
0x1429   : > { %v5808_v52 = vpack.c.bf16 %v6571_v42, %v6570_v45 }
0x142b   : > { %5806 = vmatpush3.bf16.msra.mxu0 %v5805_v18 }
0x142c   : > { %5807 = vmatprep.subr.bf16.mxu0 %v6934_v47 }
0x142d   : > { %v6606_v51 = vpop.eup %6605 }
0x142e   : > { %3130 = vadd.xlane.f32.xlu1 %v6606_v51  ;;  %v6608_v21 = vpop.eup %6607 }
0x142f   : > { %5809 = vmatpush3.bf16.msra.mxu0 %v5808_v52  ;;  %v3129_v39 = vmul.f32 %v6608_v21, %v3128_v16 }
0x1430   : > { %5810 = vmatprep.subr.bf16.mxu0 %v6934_v47 }
0x1433   : > { %5812 = vmatpush3.bf16.msra.mxu0 %v5811_v17 }
0x1436   : > { %5251 = vmatmul.mubr.f32.vlgmr.msra.gmra.mrb[46].mxu0 %v6606_v51 }
0x143f   : > { %3256 = vperm.xlu1 %6081, %v6608_v21  }
0x1458   : > { %v1656_v60 = vpop.xlane.xlu1 %1655 }
0x1459   : > { %v1657_v22 = vadd.f32 %v1656_v60, %v1654_v28 }
0x145b   : > { %1658 = vst.msk [vmem:[#allocation4 + $0x10] sm:$0xff] %vm1100_vm8, %v1657_v22 }
0x145c   : > { %v2246_v43 = vpop.xlane.xlu1 %2245 }
0x145d   : > { %v2247_v2 = vadd.f32 %v2246_v43, %v2244_v35 }
0x145f   : > { %2248 = vst.msk [vmem:[#allocation4 + $0x20] sm:$0xff] %vm1100_vm8, %v2247_v2 }
0x1460   : > { %v2372_v47 = vpop.permute.xlu1 %2371 }
0x1461   : > { %v2374_v4 = vmul.f32 %v2372_v47, %v2368_v13 }
0x1463   : > { %v2375_v6 = vadd.f32 %v2374_v4, %v8034_v44 }
0x1465   : > { %2376 = vst.msk [vmem:[#allocation5 + $0x20] sm:$0xff] %vm952_vm4, %v2375_v6 }
0x1491   : > { %v2541_v55 = vpop.xlane.xlu1 %2540 }
0x1492   : > { %v2542_v40 = vadd.f32 %v2541_v55, %v2539_v23 }
0x1494   : > { %2543 = vst.msk [vmem:[#allocation4 + $0x28] sm:$0xff] %vm1100_vm8, %v2542_v40 }
0x14bb   : > { %v3131_v58 = vpop.xlane.xlu1 %3130 }
0x14bc   : > { %v3132_v12 = vadd.f32 %v3131_v58, %v3129_v39 }
0x14be   : > { %3133 = vst.msk [vmem:[#allocation4 + $0x38] sm:$0xff] %vm1100_vm8, %v3132_v12 }
0x14bf   : > { %v3257_v1 = vpop.permute.xlu1 %3256 }
0x14c0   : > { %v3259_v19 = vmul.f32 %v3257_v1, %v3253_v49 }
0x1509   : > { %v3248_v32 = vpop.f32.mrb[46].mxu0 }
0x150a   : > { %v3260_v44 = vadd.f32 %v3259_v19, %v3248_v32  ;;  %v5252_v25 = vpop.f32.mrb[47].mxu0 }
0x150c   : > { %3261 = vst.msk [vmem:[#allocation5 + $0x38] sm:$0xff] %vm952_vm4, %v3260_v44 }
0x150d PF: > { %s8509_s7 = sld [smem:[#allocation25_spill]] }
0x1513   : > { %p4331_p11 = scmp.ne.s32.totalorder %s8509_s7, 1 }
0x1514   : > { %v3365_v57 = vld [vmem:[#allocation4 + $0x8] sm:$0xff] (!%p4331_p11)  ;;  %v3276_v53 = vld [vmem:[#allocation4] sm:$0xff] (!%p4331_p11)  ;;  %v6944_v50 = vmov (!%p4331_p11), 0   ;;  %v3810_v3 = vld [vmem:[#allocation4 + $0x30] sm:$0xff] (!%p4331_p11)  ;;  %v6945_v33 = vmov (!%p4331_p11), 0.0|0.0   ;;  %vm6946_vm6 = vmmov (!%p4331_p11), 0  }
0x1515   : > { %3266 = sbr.rel (%p4331_p11) target bundleno = 5783 (0x1697), region = 96  ;;  %v3721_v37 = vld [vmem:[#allocation4 + $0x28] sm:$0xff] (!%p4331_p11)  ;;  %6610 = vset.pattern.permute.xlu1 (!%p4331_p11), %v6944_v50  ;;  %6609 = vset.pattern.permute.xlu0 (!%p4331_p11), %v6944_v50  ;;  %6611 = vrcp.f32 (!%p4331_p11), %v3365_v57  ;;  %v3632_v0 = vld [vmem:[#allocation4 + $0x20] sm:$0xff] (!%p4331_p11)  ;;  %v3287_v61 = vld [vmem:[#allocation16] sm:$0xff] (!%p4331_p11)  ;;  %vm3366_vm1 = vcmp.gt.f32.partialorder (!%p4331_p11), %v3365_v57, 0.0  ;;  %vm3277_vm2 = vcmp.gt.f32.partialorder (!%p4331_p11), %v3276_v53, 0.0 }
0x1516   : > { %6613 = vrcp.f32 (!%p4331_p11), %v3276_v53  ;;  %5813 = vmatprep.subr.bf16.mxu1 (!%p4331_p11), %v6945_v33  ;;  %5825 = vmatprep.subr.bf16.mxu0 (!%p4331_p11), %v6945_v33  ;;  %v3454_v54 = vld [vmem:[#allocation4 + $0x10] sm:$0xff] (!%p4331_p11)  ;;  %v3288_v5 = vld [vmem:[#allocation16 + $0x8] sm:$0xff] (!%p4331_p11)  ;;  %vm3722_vm3 = vcmp.gt.f32.partialorder (!%p4331_p11), %v3721_v37, 0.0  ;;  %vm3633_vm4 = vcmp.gt.f32.partialorder (!%p4331_p11), %v3632_v0, 0.0  ;;  %vm3811_vm5 = vcmp.gt.f32.partialorder (!%p4331_p11), %v3810_v3, 0.0  ;;  %v3377_v46 = vld [vmem:[#allocation16 + $0x10] sm:$0xff] (!%p4331_p11) }
0x1517   : > { %6615 = vrcp.f32 (!%p4331_p11), %v3721_v37  ;;  %v5814_v29 = vpack.c.bf16 (!%p4331_p11), %v3288_v5, %v3287_v61  ;;  %v3899_v27 = vld [vmem:[#allocation4 + $0x38] sm:$0xff] (!%p4331_p11)  ;;  %v3644_v15 = vld [vmem:[#allocation16 + $0x40] sm:$0xff] (!%p4331_p11)  ;;  %v6947_v9 = vmov (!%p4331_p11), 0.0   ;;  %vm3455_vm7 = vcmp.gt.f32.partialorder (!%p4331_p11), %v3454_v54, 0.0  ;;  %v3378_v52 = vld [vmem:[#allocation16 + $0x18] sm:$0xff] (!%p4331_p11)  ;;  %s8510_s11 = sld [smem:[#allocation41_spill]] (!%p4331_p11) }
0x1518   : > { %6617 = vrcp.f32 (!%p4331_p11), %v3632_v0  ;;  %v3543_v41 = vld [vmem:[#allocation4 + $0x18] sm:$0xff] (!%p4331_p11)  ;;  %5257 = vmatprep.mubr.msk.f32.mxu1 (!%p4331_p11), %vm6946_vm6, %v6947_v9  ;;  %5285 = vmatprep.mubr.msk.f32.mxu0 (!%p4331_p11), %vm6946_vm6, %v6947_v9  ;;  %vm3900_vm8 = vcmp.gt.f32.partialorder (!%p4331_p11), %v3899_v27, 0.0  ;;  %v3280_v10 = vld [vmem:[#allocation5] sm:$0xff] (!%p4331_p11)  ;;  %vm3289_vm10 = vcmask (!%p4331_p11), 130048   ;;  %v5817_v21 = vpack.c.bf16 (!%p4331_p11), %v3378_v52, %v3377_v46  ;;  %v3734_v60 = vld [vmem:[#allocation16 + $0x58] sm:$0xff] (!%p4331_p11) }
0x1519   : > { %6619 = vrcp.f32 (!%p4331_p11), %v3810_v3  ;;  %5815 = vmatpush3.bf16.msra.mxu1 (!%p4331_p11), %v5814_v29  ;;  %v3645_v62 = vld [vmem:[#allocation16 + $0x48] sm:$0xff] (!%p4331_p11)  ;;  %vm3544_vm9 = vcmp.gt.f32.partialorder (!%p4331_p11), %v3543_v41, 0.0  ;;  %v3733_v28 = vld [vmem:[#allocation16 + $0x50] sm:$0xff] (!%p4331_p11)  ;;  %v3370_v22 = vld [vmem:[#allocation5 + $0x8] sm:$0xff] (!%p4331_p11) }
0x151a   : > { %6621 = vrcp.f32 (!%p4331_p11), %v3454_v54  ;;  %5816 = vmatprep.subr.bf16.mxu1 (!%p4331_p11), %v6945_v33  ;;  %v5826_v59 = vpack.c.bf16 (!%p4331_p11), %v3645_v62, %v3644_v15  ;;  %v3637_v56 = vld [vmem:[#allocation5 + $0x20] sm:$0xff] (!%p4331_p11)  ;;  %v5829_v43 = vpack.c.bf16 (!%p4331_p11), %v3734_v60, %v3733_v28  ;;  %v3466_v13 = vld [vmem:[#allocation16 + $0x20] sm:$0xff] (!%p4331_p11)  ;;  %v3467_v47 = vld [vmem:[#allocation16 + $0x28] sm:$0xff] (!%p4331_p11) }
0x151b   : > { %6623 = vrcp.f32 (!%p4331_p11), %v3899_v27  ;;  %v5820_v34 = vpack.c.bf16 (!%p4331_p11), %v3467_v47, %v3466_v13  ;;  %v3822_v23 = vld [vmem:[#allocation16 + $0x60] sm:$0xff] (!%p4331_p11)  ;;  %v3823_v55 = vld [vmem:[#allocation16 + $0x68] sm:$0xff] (!%p4331_p11)  ;;  %v3726_v40 = vld [vmem:[#allocation5 + $0x28] sm:$0xff] (!%p4331_p11) }
0x151c   : > { %6625 = vrcp.f32 %v3543_v41  ;;  %5827 = vmatpush3.bf16.msra.mxu0 %v5826_v59  ;;  %v5832_v39 = vpack.c.bf16 %v3823_v55, %v3822_v23  ;;  %v3555_v12 = vld [vmem:[#allocation16 + $0x30] sm:$0xff]  ;;  %v3556_v49 = vld [vmem:[#allocation16 + $0x38] sm:$0xff]  ;;  %v3459_v1 = vld [vmem:[#allocation5 + $0x10] sm:$0xff] }
0x151d   : > { %5828 = vmatprep.subr.bf16.mxu0 %v6945_v33  ;;  %v5823_v32 = vpack.c.bf16 %v3556_v49, %v3555_v12  ;;  %v3911_v25 = vld [vmem:[#allocation16 + $0x70] sm:$0xff]  ;;  %v3912_v57 = vld [vmem:[#allocation16 + $0x78] sm:$0xff]  ;;  %v3815_v53 = vld [vmem:[#allocation5 + $0x30] sm:$0xff] }
0x151e   : > { %v5835_v50 = vpack.c.bf16 %v3912_v57, %v3911_v25  ;;  %v3548_v3 = vld [vmem:[#allocation5 + $0x18] sm:$0xff]  ;;  %v3267_v27 = vld [vmem:[%s7341_s12] sm:$0xff] }
0x151f   : > { %v6612_v8 = vpop.eup %6611  ;;  %v3904_v54 = vld [vmem:[#allocation5 + $0x38] sm:$0xff]  ;;  %v4332_v41 = vld [vmem:[%s8510_s11] ss:$0 sm:$0xff] }
0x1520   : > { %v6614_v63 = vpop.eup %6613  ;;  %v3368_v36 = vsel %vm3366_vm1, %v6612_v8, 0.0  ;;  %v3275_v8 = vadd.f32 %v4332_v41, %v3267_v27 }
0x1521   : > { %v6616_v7 = vpop.eup %6615  ;;  %3373 = vperm.xlu1 %6610, %v3368_v36   ;;  %v3279_v31 = vsel %vm3277_vm2, %v6614_v63, 0.0 }
0x1522   : > { %v6618_v38 = vpop.eup %6617  ;;  %3283 = vperm.xlu0 %6609, %v3279_v31   ;;  %v3724_v20 = vsel %vm3722_vm3, %v6616_v7, 0.0 }
0x1523   : > { %v6620_v48 = vpop.eup %6619  ;;  %v3635_v30 = vsel %vm3633_vm4, %v6618_v38, 0.0 }
0x1524   : > { %v6622_v11 = vpop.eup %6621  ;;  %v3813_v24 = vsel %vm3811_vm5, %v6620_v48, 0.0 }
0x1525   : > { %3729 = vperm.xlu1 %6610, %v3724_v20   ;;  %v6624_v18 = vpop.eup %6623  ;;  %v3457_v42 = vsel %vm3455_vm7, %v6622_v11, 0.0 }
0x1526   : > { %3640 = vperm.xlu0 %6609, %v3635_v30   ;;  %v6626_v45 = vpop.eup %6625  ;;  %v3902_v51 = vsel %vm3900_vm8, %v6624_v18, 0.0 }
0x1527   : > { %v3546_v26 = vsel %vm3544_vm9, %v6626_v45, 0.0 }
0x1529   : > { %3818 = vperm.xlu1 %6610, %v3813_v24  }
0x152a   : > { %3462 = vperm.xlu0 %6609, %v3457_v42  }
0x152d   : > { %3907 = vperm.xlu1 %6610, %v3902_v51  }
0x152e   : > { %3551 = vperm.xlu0 %6609, %v3546_v26  }
0x15a0   : > { %v3374_v4 = vpop.permute.xlu1 %3373 }
0x15a1   : > { %v3284_v17 = vpop.permute.xlu0 %3283  ;;  %v3376_v6 = vmul.f32 %v3374_v4, %v3370_v22 }
0x15a2   : > { %v3286_v14 = vmul.f32 %v3284_v17, %v3280_v10 }
0x15a4   : > { %5258 = vmatmul.mubr.msk.f32.vlgmr.msra.gmra.mrb[0].mxu1 %vm3289_vm10, %v3286_v14  ;;  %v3730_v16 = vpop.permute.xlu1 %3729 }
0x15a5   : > { %v3641_v35 = vpop.permute.xlu0 %3640  ;;  %5818 = vmatpush3.bf16.msra.mxu1 %v5817_v21  ;;  %5264 = vmatprep.mubr.msk.f32.mxu1 %vm6946_vm6, %v6947_v9  ;;  %v3732_v58 = vmul.f32 %v3730_v16, %v3726_v40 }
0x15a6   : > { %v3643_v2 = vmul.f32 %v3641_v35, %v3637_v56  ;;  %5819 = vmatprep.subr.bf16.mxu1 %v6945_v33 }
0x15a8   : > { %5286 = vmatmul.mubr.msk.f32.vlgmr.msra.gmra.mrb[0].mxu0 %vm3289_vm10, %v3643_v2  ;;  %v3819_v37 = vpop.permute.xlu1 %3818 }
0x15a9   : > { %5830 = vmatpush3.bf16.msra.mxu0 %v5829_v43  ;;  %5292 = vmatprep.mubr.msk.f32.mxu0 %vm6946_vm6, %v6947_v9  ;;  %v3463_v19 = vpop.permute.xlu0 %3462  ;;  %v3821_v0 = vmul.f32 %v3819_v37, %v3815_v53 }
0x15aa   : > { %5831 = vmatprep.subr.bf16.mxu0 %v6945_v33  ;;  %v3465_v44 = vmul.f32 %v3463_v19, %v3459_v1 }
0x15ac   : > { %5265 = vmatmul.mubr.msk.f32.vlgmr.msra.gmra.mrb[0].mxu1 %vm3289_vm10, %v3376_v6  ;;  %v3908_v5 = vpop.permute.xlu1 %3907 }
0x15ad   : > { %5821 = vmatpush3.bf16.msra.mxu1 %v5820_v34  ;;  %5271 = vmatprep.mubr.msk.f32.mxu1 %vm6946_vm6, %v6947_v9  ;;  %v3552_v61 = vpop.permute.xlu0 %3551  ;;  %v3910_v29 = vmul.f32 %v3908_v5, %v3904_v54 }
0x15ae   : > { %5822 = vmatprep.subr.bf16.mxu1 %v6945_v33 }
0x15b0   : > { %5293 = vmatmul.mubr.msk.f32.vlgmr.msra.gmra.mrb[0].mxu0 %vm3289_vm10, %v3732_v58 }
0x15b1   : > { %5833 = vmatpush3.bf16.msra.mxu0 %v5832_v39  ;;  %5299 = vmatprep.mubr.msk.f32.mxu0 %vm6946_vm6, %v6947_v9 }
0x15b2   : > { %5834 = vmatprep.subr.bf16.mxu0 %v6945_v33  ;;  %v3554_v33 = vmul.f32 %v3552_v61, %v3548_v3 }
0x15b4   : > { %5272 = vmatmul.mubr.msk.f32.vlgmr.msra.gmra.mrb[0].mxu1 %vm3289_vm10, %v3465_v44 }
0x15b5   : > { %5824 = vmatpush3.bf16.msra.mxu1 %v5823_v32  ;;  %5278 = vmatprep.mubr.msk.f32.mxu1 %vm6946_vm6, %v6947_v9 }
0x15b8   : > { %5300 = vmatmul.mubr.msk.f32.vlgmr.msra.gmra.mrb[0].mxu0 %vm3289_vm10, %v3821_v0 }
0x15b9   : > { %5836 = vmatpush3.bf16.msra.mxu0 %v5835_v50  ;;  %5306 = vmatprep.mubr.msk.f32.mxu0 %vm6946_vm6, %v6947_v9 }
0x15bc   : > { %5279 = vmatmul.mubr.msk.f32.vlgmr.msra.gmra.mrb[0].mxu1 %vm3289_vm10, %v3554_v33 }
0x15c0   : > { %5307 = vmatmul.mubr.msk.f32.vlgmr.msra.gmra.mrb[0].mxu0 %vm3289_vm10, %v3910_v29 }
0x168f   : > { %v3626_v63 = vpop.f32.mrb[0].mxu1 }
0x1690   : > { %v5280_v36 = vpop.f32.mrb[1].mxu1  ;;  %v5837_v7 = vadd.f32 %v3626_v63, %v3275_v8 }
0x1693   : > { %v3982_v31 = vpop.f32.mrb[0].mxu0 }
0x1694   : > { %v5838_v38 = vadd.f32 %v5837_v7, %v3982_v31  ;;  %v5308_v20 = vpop.f32.mrb[1].mxu0 }
0x1696   : > { %3987 = vst [vmem:[%s7372_s19] sm:$0xff] %v5838_v38 }
0x1697 PF: > { %s8511_s0 = sld [smem:[#allocation26_spill]]  ;;  %s8512_s30 = sld [smem:[#allocation42_spill]] }
0x1698   : > { %s4003_s10 = sshll.u32 %s7372_s19, 4  ;;  %s3989_s27 = scalar_lea.sflag [#allocation10], %s7337_s5  ;;  %s4004_s10 = int_to_ptr.vmem [resolvable:$true] %s4003_s10 }
0x1699   : > { %s6781_s28 = scalar_lea.vmem %s4004_s10, 128  ;;  %p8513_p10 = scmp.ne.s32.totalorder %s8479_s9, 0 }
0x169a   : > { %p6782_p1 = scmp.ne.s32.totalorder %s4004_s10, %s6781_s28  ;;  %s6948_s8 = smov [#allocation17]  }
0x169b   : > { %s6785_s13 = sshll.u32 %s6948_s8, 4  ;;  %s6786_s13 = int_to_ptr.vmem [resolvable:$false] %s6785_s13 }
0x169c   : > { %p6783_p12 = pnand %p6782_p1, %p8513_p10  ;;  %s6787_s23 = scalar_lea.vmem %s6786_s13, 256 }
0x169d   : > { %s4342_s24 = sshll.u32 %s8511_s0, 7  ;;  %p6788_p7 = scmp.lt.s32.totalorder %s4004_s10, %s6786_s13 }
0x169e   : > { %s8361_s1 = scalar_lea.hbm %s8512_s30, %s4342_s24  ;;  %p6784_p4 = pneg %p6783_p12 }
0x169f   : > { %p6789_p9 = scmp.lt.s32.totalorder %s6787_s23, %s6781_s28 }
0x16a1   : > { %p6790_p13 = por %p6789_p9, %p6788_p7 }
0x16a3   : > { %p6791_p8 = pnand %p6790_p13, %p6784_p4 }
0x16a5   : > { %6794 = shalt.err (!%p6791_p8)
}
0x16a6   : > { %s6795_s5 = scalar_lea.hbm %s8361_s1, 128  ;;  %s6799_s26 = scalar_lea.hbm %s8512_s30, 256 }
0x16a7   : > { %p6796_p2 = scmp.ne.s32.totalorder %s8361_s1, %s6795_s5  ;;  %p6800_p6 = scmp.lt.u32.totalorder %s8361_s1, %s8512_s30 }
0x16a8   : > { %p6801_p0 = scmp.lt.u32.totalorder %s6799_s26, %s6795_s5  ;;  %p6803_p1 = scmp.lt.u32.totalorder %s6795_s5, %s8361_s1 }
0x16a9   : > { %p6797_p3 = pnand %p6796_p2, %p8513_p10 }
0x16aa   : > { %p6802_p11 = por %p6801_p0, %p6800_p6 }
0x16ab   : > { %p6798_p5 = pneg %p6797_p3 }
0x16ac   : > { %p6804_p12 = por %p6803_p1, %p6802_p11 }
0x16ae   : > { %p6805_p4 = pnand %p6804_p12, %p6798_p5 }
0x16b0   : > { %6808 = shalt.err (!%p6805_p4)
}
0x16b1   : > { %5867 = dma.vmem_to_hbm [thread:$0]  (%p8513_p10), %s4004_s10, 128, %s8361_s1, %s3989_s27  }
0x16b2 PF: > { %s8514_s7 = sld [smem:[#allocation31_spill]]  ;;  %p5897_p7 = scmp.ge.s32.totalorder %s6917_s22, 2 }
0x16b3   : > { %s4015_s3 = sand.u32 1, %s6889_s16  }
0x16b4   : > { %s4016_s6 = scalar_lea.sflag [#allocation10], %s4015_s3 }
0x16b8   : > { %p8515_p9 = scmp.ne.s32.totalorder %s8514_s7, 0 }
0x16ba   : > { %p5887_p13 = pnand %p5897_p7, %p8515_p9 }
0x16bc   : > { %6872 = dma.done.wait (!%p5887_p13), %s4016_s6, 128  }
0x16bd   : > { %6874 = vsyncadd (!%p5887_p13), %s4016_s6, 4294967168  ;;  %s36_s22 = sadd.s32 1, %s6917_s22   ;;  %s8516_s11 = sld [smem:[#allocation30_spill]] }
0x16be   : > { %p33_p8 = scmp.ge.s32.totalorder %s36_s22, 6   ;;  %s8517_s9 = sld [smem:[#allocation24_spill]] }
0x16bf   : > { %s8518_s0 = sld [smem:[#allocation29_spill]]  ;;  %s8519_s24 = sld [smem:[#allocation27_spill]] }
0x16c0   : > { %s8520_s4 = sld [smem:[#allocation28_spill]]  ;;  %s8521_s13 = smov %s6881_s14 }
0x16c1   : > { %s8522_s14 = smov %s6885_s15  ;;  %s8524_s16 = smov %s6893_s17 }
0x16c2   : > { %s8526_s18 = smov %s6909_s20  ;;  %s8527_s19 = smov %s6913_s21 }
0x16c3   : > { %s8523_s15 = smov %s8516_s11  ;;  %35 = sbr.rel (!%p33_p8) target bundleno = 30 (0x1e), region = 184 }
0x16c4   : > { %s8525_s17 = smov %s8517_s9 }
0x16c5   : > { %s8528_s20 = smov %s8519_s24 }
0x16c6   : > { %s8529_s21 = smov %s8520_s4 }
0x16ca   :  { %4021 = vsyncpa [#allocation9], 1 }
0x16cb   :  { %4023 = vsyncpa [#allocation9 + $0x1], 1 }
0x16cc   :  { %4024 = vsyncpa [#allocation12], 1 }
0x16cd   :  { %4026 = vsyncpa [#allocation12 + $0x1], 1 }
0x16ce   :  { %4027 = vsyncpa [#allocation15], 1 }
0x16cf   :  { %4028 = vsyncpa [#allocation10], 1 }
0x16d0   :  { %4030 = vsyncpa [#allocation10 + $0x1], 1 }

</bundles_post_ra>
